<compile_context>
chip_gen: v7x
topology: tpu7x:2x2x1
jax: 0.10.0
libtpu: 0.0.40
codegen_flags: <defaults>
</compile_context>

<pallas_src>
import functools

import jax
import jax.numpy as jnp
from jax.experimental import pallas as pl
from jax.experimental.pallas import tpu as pltpu


def _round_up(x, m):
    return ((x + m - 1) // m) * m


# ----------------------------------------------------------------------------
# Hardware queries (import-time, defensive: fall back to safe defaults)
# ----------------------------------------------------------------------------
def _query_vmem_capacity_bytes():
    try:
        info = pltpu.get_tpu_info()
        for attr in ("vmem_capacity_bytes", "vmem_bytes", "vmem_size_bytes"):
            v = getattr(info, attr, None)
            if isinstance(v, int) and v > 0:
                return int(v)
    except Exception:
        pass
    return 64 << 20  # conservative fallback (v7x per-TensorCore VMEM)


def _query_tensorcores_per_chip():
    # Only split the batch axis on chips with 2 TensorCores (v7x); on v5e/v6e the
    # "parallel" grid axis is just a serial loop and splitting halves MXU occupancy.
    try:
        dk = jax.devices()[0].device_kind.lower()
    except Exception:
        return 1
    return 2 if ("v7" in dk or "7x" in dk) else 1


_VMEM_CAP = _query_vmem_capacity_bytes()
_NUM_TC = _query_tensorcores_per_chip()


# ----------------------------------------------------------------------------
# GRU recurrence Pallas kernel (one layer, input projection pre-computed)
# ----------------------------------------------------------------------------
def _gru_recurrence_kernel(gi_ref, whh_ref, bhn_ref, out_ref, hlast_ref, h_ref):
    """Grid = (batch_blocks [parallel], time_blocks [arbitrary], time innermost).

    gi_ref    : (Tt, Bt, 3Hp) bf16  precomputed x@W_ih^T + b_ih (+ b_hh for r,z gates)
    whh_ref   : (Hp, 3Hp)     bf16  hidden->gates weight, gate columns [r|z|n]
    bhn_ref   : (1, Hp)       f32   n-gate hidden bias (b_hn)
    out_ref   : (Tt, Bt, Hp)  bf16/f32  per-step hidden states
    hlast_ref : (Bt, Hp)      f32   final hidden state of this batch block
    h_ref     : (Bt, Hp)      f32   VMEM scratch carrying h across time blocks.
                                    NOTE: with the batch axis "parallel" each core
                                    owns its own scratch instance; with a single core
                                    the t_blk==0 reset below re-initializes it per
                                    batch block (time is the innermost grid axis).
    """
    t_blk = pl.program_id(1)

    @pl.when(t_blk == 0)
    def _init():
        h_ref[...] = jnp.zeros(h_ref.shape, h_ref.dtype)

    Tt, Bt, Hp = out_ref.shape
    # Hoist the tiny bias broadcast out of the time loop (JAX doesn't CSE broadcasts).
    b_hn = jnp.broadcast_to(bhn_ref[...], (Bt, Hp))

    def step(t, h):
        gi = gi_ref[t].astype(jnp.float32)                     # (Bt, 3Hp) f32 gate math
        gh = jnp.dot(h.astype(whh_ref.dtype), whh_ref[...],    # bf16 MXU matmul
                     preferred_element_type=jnp.float32)       # (Bt, 3Hp) f32
        r = jax.nn.sigmoid(gi[:, :Hp] + gh[:, :Hp])
        z = jax.nn.sigmoid(gi[:, Hp:2 * Hp] + gh[:, Hp:2 * Hp])
        n = jnp.tanh(gi[:, 2 * Hp:] + r * (gh[:, 2 * Hp:] + b_hn))
        h_new = (1.0 - z) * n + z * h                          # f32 blend
        out_ref[t] = h_new.astype(out_ref.dtype)
        return h_new

    # Adaptive unroll: full unroll only when the per-step live set is small; at large
    # Bt*Hp deep unrolling forces vreg spills that saturate the vld/vst slots.
    step_vregs = max(1, Bt // 8) * max(1, Hp // 128)
    if step_vregs <= 4:
        unroll = Tt
    elif step_vregs <= 16:
        unroll = min(Tt, 4)
    else:
        unroll = min(Tt, 2)

    h_final = jax.lax.fori_loop(0, Tt, step, h_ref[...], unroll=unroll)
    h_ref[...] = h_final
    hlast_ref[...] = h_final   # resident output block (same index across t); f32 state


def _gru_recurrence(gi, w_hh_t, b_hn, *, time_block, out_dtype, num_b, vmem_cap):
    """gi: (S_pad, B_pad, 3Hp) bf16.  Returns (out (S_pad,B_pad,Hp), h_last (B_pad,Hp))."""
    S_pad, B_pad, three_hp = gi.shape
    Hp = three_hp // 3
    num_t = S_pad // time_block
    Bt = B_pad // num_b
    out_itemsize = jnp.dtype(out_dtype).itemsize

    # VMEM actually needed by this call (double-buffered streamed blocks + weights
    # + scratch), with headroom; clamp to physical capacity.
    need = (2 * time_block * Bt * three_hp * gi.dtype.itemsize   # gi blocks
            + 2 * time_block * Bt * Hp * out_itemsize            # out blocks
            + 2 * Hp * three_hp * w_hh_t.dtype.itemsize          # whh
            + 2 * Hp * 4                                         # bhn
            + 2 * Bt * Hp * 4                                    # h_last output
            + Bt * Hp * 4)                                       # h scratch
    vmem_limit = int(min(vmem_cap, max(need + (4 << 20), 32 << 20)))

    out, h_last = pl.pallas_call(
        _gru_recurrence_kernel,
        out_shape=(jax.ShapeDtypeStruct((S_pad, B_pad, Hp), out_dtype),
                   jax.ShapeDtypeStruct((B_pad, Hp), jnp.float32)),
        grid_spec=pltpu.PrefetchScalarGridSpec(
            num_scalar_prefetch=0,
            grid=(num_b, num_t),
            in_specs=[
                pl.BlockSpec((time_block, Bt, three_hp), lambda b, t: (t, b, 0)),
                pl.BlockSpec((Hp, three_hp), lambda b, t: (0, 0)),   # constant block
                pl.BlockSpec((1, Hp), lambda b, t: (0, 0)),          # constant block
            ],
            out_specs=(
                pl.BlockSpec((time_block, Bt, Hp), lambda b, t: (t, b, 0)),
                pl.BlockSpec((Bt, Hp), lambda b, t: (b, 0)),
            ),
            scratch_shapes=[pltpu.VMEM((Bt, Hp), jnp.float32)],
        ),
        compiler_params=pltpu.CompilerParams(
            dimension_semantics=("parallel", "arbitrary"),
            vmem_limit_bytes=vmem_limit),
    )(gi, w_hh_t, b_hn)
    return out, h_last


# ----------------------------------------------------------------------------
# Tile-size heuristics
# ----------------------------------------------------------------------------
def _max_time_block(Bt, Hp, out_itemsize, vmem_cap):
    """Largest Tt such that double-buffered gi+out blocks + weights fit the budget."""
    budget = (vmem_cap * 3) // 4                               # headroom for compiler scratch
    fixed = 2 * (Hp * 3 * Hp * 2) + 2 * (Hp * 4) + 3 * Bt * Hp * 4 + (2 << 20)
    per_step = 2 * Bt * (3 * Hp * 2 + Hp * out_itemsize)       # 2 buffers of gi + out per step
    return max(1, (budget - fixed) // per_step)


def _pick_time_block(S, cap):
    """Pick Tt <= cap minimizing ragged-time padding waste (dead trailing steps)."""
    cap = max(1, int(cap))
    if S <= cap:
        return S
    best, best_waste = cap, (-S) % cap
    for tb in range(cap, max(cap // 2, 1) - 1, -1):
        w = (-S) % tb
        if w < best_waste:
            best, best_waste = tb, w
            if w == 0:
                break
    return best


# ----------------------------------------------------------------------------
# Parameters: raw (PyTorch layout) + prepared (padded / transposed / bf16) forms
# ----------------------------------------------------------------------------
def init_encoder_params(key, vocab_size, embed_size, num_hiddens, num_layers):
    """Raw PyTorch-layout parameters (deterministic synthetic init)."""
    params = {}
    keys = jax.random.split(key, 1 + 4 * num_layers)
    params["embedding"] = jax.random.normal(
        keys[0], (vocab_size, embed_size), jnp.float32) * 0.1
    bound = 1.0 / jnp.sqrt(jnp.float32(num_hiddens))
    layers = []
    for l in range(num_layers):
        in_size = embed_size if l == 0 else num_hiddens
        k_wih, k_whh, k_bih, k_bhh = keys[1 + 4 * l: 5 + 4 * l]
        layers.append(dict(
            w_ih=jax.random.uniform(k_wih, (3 * num_hiddens, in_size),
                                    jnp.float32, -bound, bound),
            w_hh=jax.random.uniform(k_whh, (3 * num_hiddens, num_hiddens),
                                    jnp.float32, -bound, bound),
            b_ih=jax.random.uniform(k_bih, (3 * num_hiddens,),
                                    jnp.float32, -bound, bound),
            b_hh=jax.random.uniform(k_bhh, (3 * num_hiddens,),
                                    jnp.float32, -bound, bound),
        ))
    params["layers"] = layers
    return params


def _pad_gates_t(w, in_dim_pad, H, Hp):
    """(3H, in_dim) torch-layout -> (in_dim_pad, 3Hp) transposed, gate cols [r|z|n]."""
    blocks = []
    for g in range(3):
        g_t = w[g * H:(g + 1) * H].T                       # (in_dim, H)
        g_t = jnp.pad(g_t, ((0, in_dim_pad - g_t.shape[0]), (0, Hp - H)))
        blocks.append(g_t)
    return jnp.concatenate(blocks, axis=1)                 # (in_dim_pad, 3Hp)


def _pad1(v, n):
    return jnp.pad(v, (0, n - v.shape[0]))


def prepare_kernel_params(raw, num_hiddens):
    """Pad H->Hp (128-lane multiple), pre-transpose, bf16-cast weights, fold biases.

    Note: per-gate padding H->Hp multiplies gi traffic / matmul width by Hp/H; for
    production H>=128 this is free, for small H it is the documented overhead.
    """
    H = num_hiddens
    Hp = _round_up(H, 128)
    kp = {"embedding": raw["embedding"]}
    layers = []
    for l, lp in enumerate(raw["layers"]):
        w_ih, w_hh = lp["w_ih"], lp["w_hh"]
        b_ih, b_hh = lp["b_ih"], lp["b_hh"]
        in_pad = w_ih.shape[1] if l == 0 else Hp           # layer>0 input is padded Hp
        # Combined GI bias: r,z gates get b_ih+b_hh; n gate keeps only b_ih here
        # (PyTorch semantics: n = tanh(i_n + b_in + r*(h_n + b_hn))).
        b_comb = jnp.concatenate([
            _pad1(b_ih[:H] + b_hh[:H], Hp),
            _pad1(b_ih[H:2 * H] + b_hh[H:2 * H], Hp),
            _pad1(b_ih[2 * H:], Hp),
        ]).reshape(1, -1).astype(jnp.float32)
        layers.append(dict(
            w_ih_t=_pad_gates_t(w_ih, in_pad, H, Hp).astype(jnp.bfloat16),
            w_hh_t=_pad_gates_t(w_hh, Hp, H, Hp).astype(jnp.bfloat16),
            b_comb=b_comb,
            b_hn=_pad1(b_hh[2 * H:], Hp).reshape(1, -1).astype(jnp.float32),
        ))
    kp["layers"] = layers
    return kp


# ----------------------------------------------------------------------------
# Encoder forward: embedding gather (plain JAX) + hoisted GI matmul + Pallas GRU
# ----------------------------------------------------------------------------
@functools.partial(jax.jit, static_argnames=("num_hiddens",))
def encoder_forward(kparams, X, *, num_hiddens):
    """X: (batch, seq) int32 -> (output (seq,batch,H), state (num_layers,batch,H))."""
    H = num_hiddens
    Hp = kparams["layers"][0]["w_hh_t"].shape[0]
    num_layers = len(kparams["layers"])

    emb = kparams["embedding"][X.T]                  # (S, B, E) directly (== permute(1,0,2))
    S, B, _ = emb.shape

    # Batch padded to a 16-sublane multiple so bf16 streamed blocks are natively tiled.
    B_pad = _round_up(max(B, 16), 16)
    # Split the batch axis only on 2-TC chips (v7x); each half must stay 16-aligned.
    num_b = 2 if (_NUM_TC >= 2 and B_pad >= 32 and B_pad % 32 == 0) else 1
    Bt = B_pad // num_b

    # Time block sized from the VMEM budget (worst case: f32 out stream, last layer),
    # then adjusted to minimize ragged-time padding waste.
    tmax = _max_time_block(Bt, Hp, 4, _VMEM_CAP)
    time_block = _pick_time_block(S, min(32, tmax))
    S_pad = _round_up(S, time_block)

    x_pad = jnp.pad(emb, ((0, S_pad - S), (0, B_pad - B), (0, 0)))

    states = []
    layer_in = x_pad                                 # padded; stays padded between layers
    for li, lp in enumerate(kparams["layers"]):
        # Hoisted input projection: one big bf16 matmul over the whole sequence,
        # then stream gi to the kernel in bf16 (gate math is done in f32 in-kernel).
        gi = (jnp.einsum("sbi,ij->sbj",
                         layer_in.astype(jnp.bfloat16), lp["w_ih_t"],
                         preferred_element_type=jnp.float32) + lp["b_comb"]
              ).astype(jnp.bfloat16)
        out_dtype = jnp.float32 if li == num_layers - 1 else jnp.bfloat16
        out, h_last = _gru_recurrence(gi, lp["w_hh_t"], lp["b_hn"],
                                      time_block=time_block, out_dtype=out_dtype,
                                      num_b=num_b, vmem_cap=_VMEM_CAP)
        states.append(h_last[:B, :H])                # exact f32 final state of this layer
        layer_in = out                               # (S_pad, B_pad, Hp), bf16 except last

    output = layer_in[:S, :B, :H]                    # last layer is f32
    state = jnp.stack(states, axis=0)                # (num_layers, B, H) f32
    return output, state


# ----------------------------------------------------------------------------
# Pure-JAX reference: PyTorch GRU semantics with matched precision
# (bf16 weights, bf16 gi stream, f32 hidden-state carry and gate math)
# ----------------------------------------------------------------------------
def encoder_forward_ref(raw, X, num_hiddens):
    H = num_hiddens
    emb = raw["embedding"][X.T]                      # (S, B, E)
    layer_in = emb
    states = []
    for lp in raw["layers"]:
        w_ih_t = lp["w_ih"].T.astype(jnp.bfloat16)
        w_hh_t = lp["w_hh"].T.astype(jnp.bfloat16)
        b_ih, b_hh = lp["b_ih"], lp["b_hh"]
        b_comb = jnp.concatenate([b_ih[:2 * H] + b_hh[:2 * H], b_ih[2 * H:]])
        b_hn = b_hh[2 * H:]
        gi_all = (jnp.einsum("sbi,ij->sbj", layer_in.astype(jnp.bfloat16), w_ih_t,
                             preferred_element_type=jnp.float32) + b_comb
                  ).astype(jnp.bfloat16)

        def step(h, gi, w_hh_t=w_hh_t, b_hn=b_hn):
            gi = gi.astype(jnp.float32)
            gh = jnp.dot(h.astype(jnp.bfloat16), w_hh_t,
                         preferred_element_type=jnp.float32)
            r = jax.nn.sigmoid(gi[:, :H] + gh[:, :H])
            z = jax.nn.sigmoid(gi[:, H:2 * H] + gh[:, H:2 * H])
            n = jnp.tanh(gi[:, 2 * H:] + r * (gh[:, 2 * H:] + b_hn))
            h_new = (1.0 - z) * n + z * h
            return h_new, h_new

        h0 = jnp.zeros((layer_in.shape[1], H), jnp.float32)
        h_last, out = jax.lax.scan(step, h0, gi_all)
        states.append(h_last)
        layer_in = out
    return layer_in, jnp.stack(states, axis=0)


if __name__ == "__main__":
    vocab_size, embed_size, num_hiddens, num_layers = 50, 32, 32, 2
    batch, seq = 2, 8

    key = jax.random.PRNGKey(0)
    pkey, xkey = jax.random.split(key)
    raw_params = init_encoder_params(pkey, vocab_size, embed_size,
                                     num_hiddens, num_layers)
    kparams = prepare_kernel_params(raw_params, num_hiddens)
    X = jax.random.randint(xkey, (batch, seq), 0, vocab_size, jnp.int32)

    output, state = encoder_forward(kparams, X, num_hiddens=num_hiddens)
    output, state = jax.block_until_ready((output, state))

    ref_out, ref_state = encoder_forward_ref(raw_params, X, num_hiddens)

    assert output.shape == (seq, batch, num_hiddens), output.shape
    assert state.shape == (num_layers, batch, num_hiddens), state.shape
    assert jnp.allclose(output, ref_out, atol=2e-3, rtol=2e-3), \
        float(jnp.max(jnp.abs(output - ref_out)))
    assert jnp.allclose(state, ref_state, atol=2e-3, rtol=2e-3), \
        float(jnp.max(jnp.abs(state - ref_state)))

    print("KERNEL_OK")
</pallas_src>

<mosaic_0001>
module attributes {stable_mosaic.version = 11 : i64} {
  func.func @_gru_recurrence_kernel(%arg0: i32, %arg1: i32, %arg2: memref<8x16x384xbf16, #tpu.memory_space<vmem>>, %arg3: memref<128x384xbf16, #tpu.memory_space<vmem>>, %arg4: memref<1x128xf32, #tpu.memory_space<vmem>>, %arg5: memref<8x16x128xbf16, #tpu.memory_space<vmem>>, %arg6: memref<16x128xf32, #tpu.memory_space<vmem>>, %arg7: memref<16x128xf32, #tpu.memory_space<vmem>>) attributes {dimension_semantics = [#tpu.dimension_semantics<parallel>, #tpu.dimension_semantics<arbitrary>], iteration_bounds = array<i64: 1, 1>, scalar_prefetch = 0 : i64, scratch_operands = 1 : i64, tpu.core_type = #tpu.core_type<tc>, window_params = [{transform_indices = @transform_0, window_bounds = array<i64: 8, 16, 384>}, {pipeline_mode = #tpu.pipeline_mode<synchronous>, transform_indices = @transform_1, window_bounds = array<i64: 128, 384>}, {pipeline_mode = #tpu.pipeline_mode<synchronous>, transform_indices = @transform_2, window_bounds = array<i64: 1, 128>}, {transform_indices = @transform_3, window_bounds = array<i64: 8, 16, 128>}, {transform_indices = @transform_4, window_bounds = array<i64: 16, 128>}]} {
    %c0_i32 = arith.constant 0 : i32
    %0 = arith.cmpi eq, %arg1, %c0_i32 : i32
    %1 = arith.extui %0 : i1 to i32
    %c0_i32_0 = arith.constant 0 : i32
    %2 = arith.cmpi ne, %1, %c0_i32_0 : i32
    scf.if %2 {
      %cst_88 = arith.constant 0.000000e+00 : f32
      %321 = vector.broadcast %cst_88 : f32 to vector<16x128xf32>
      %c0_89 = arith.constant 0 : index
      %c0_90 = arith.constant 0 : index
      %322 = vector.load %arg7[%c0_89, %c0_90] : memref<16x128xf32, #tpu.memory_space<vmem>>, vector<16x128xf32>
      tpu.vector_store %arg7[%c0_89, %c0_90], %321 {strides = array<i32>} : memref<16x128xf32, #tpu.memory_space<vmem>>, vector<16x128xf32>,
    } else {
    }
    %c0 = arith.constant 0 : index
    %c0_1 = arith.constant 0 : index
    %3 = vector.load %arg4[%c0, %c0_1] : memref<1x128xf32, #tpu.memory_space<vmem>>, vector<1x128xf32>
    %4 = vector.shape_cast %3 : vector<1x128xf32> to vector<1x128xf32>
    %5 = vector.broadcast %4 : vector<1x128xf32> to vector<16x128xf32>
    %c0_2 = arith.constant 0 : index
    %c0_3 = arith.constant 0 : index
    %6 = vector.load %arg7[%c0_2, %c0_3] : memref<16x128xf32, #tpu.memory_space<vmem>>, vector<16x128xf32>
    %c0_i32_4 = arith.constant 0 : i32
    %7 = arith.index_cast %c0_i32_4 : i32 to index
    %c0_5 = arith.constant 0 : index
    %c0_6 = arith.constant 0 : index
    %8 = vector.load %arg2[%7, %c0_5, %c0_6] : memref<8x16x384xbf16, #tpu.memory_space<vmem>>, vector<1x16x384xbf16>
    %9 = vector.shape_cast %8 : vector<1x16x384xbf16> to vector<16x384xbf16>
    %10 = arith.extf %9 : vector<16x384xbf16> to vector<16x384xf32>
    %11 = arith.truncf %6 : vector<16x128xf32> to vector<16x128xbf16>
    %c0_7 = arith.constant 0 : index
    %c0_8 = arith.constant 0 : index
    %12 = vector.load %arg3[%c0_7, %c0_8] : memref<128x384xbf16, #tpu.memory_space<vmem>>, vector<128x384xbf16>
    %cst = arith.constant dense<0.000000e+00> : vector<16x384xf32>
    %13 = tpu.matmul %11, %12, %cst {dimension_numbers = #tpu.dot_dimension_numbers<[1], [0], [0], [1], [0, 0, 1, 1], [], []>} : vector<16x128xbf16>, vector<128x384xbf16>, vector<16x384xf32> -> vector<16x384xf32>
    %14 = vector.extract_strided_slice %10 {offsets = [0, 0], sizes = [16, 128], strides = [1, 1]} : vector<16x384xf32> to vector<16x128xf32>
    %15 = vector.extract_strided_slice %13 {offsets = [0, 0], sizes = [16, 128], strides = [1, 1]} : vector<16x384xf32> to vector<16x128xf32>
    %16 = arith.addf %14, %15 : vector<16x128xf32>
    %17 = arith.negf %16 : vector<16x128xf32>
    %18 = math.exp %17 : vector<16x128xf32>
    %cst_9 = arith.constant 1.000000e+00 : f32
    %19 = vector.broadcast %cst_9 : f32 to vector<16x128xf32>
    %20 = arith.addf %19, %18 : vector<16x128xf32>
    %21 = arith.divf %19, %20 : vector<16x128xf32>
    %22 = vector.extract_strided_slice %10 {offsets = [0, 128], sizes = [16, 128], strides = [1, 1]} : vector<16x384xf32> to vector<16x128xf32>
    %23 = vector.extract_strided_slice %13 {offsets = [0, 128], sizes = [16, 128], strides = [1, 1]} : vector<16x384xf32> to vector<16x128xf32>
    %24 = arith.addf %22, %23 : vector<16x128xf32>
    %25 = arith.negf %24 : vector<16x128xf32>
    %26 = math.exp %25 : vector<16x128xf32>
    %cst_10 = arith.constant 1.000000e+00 : f32
    %27 = vector.broadcast %cst_10 : f32 to vector<16x128xf32>
    %28 = arith.addf %27, %26 : vector<16x128xf32>
    %29 = arith.divf %27, %28 : vector<16x128xf32>
    %30 = vector.extract_strided_slice %10 {offsets = [0, 256], sizes = [16, 128], strides = [1, 1]} : vector<16x384xf32> to vector<16x128xf32>
    %31 = vector.extract_strided_slice %13 {offsets = [0, 256], sizes = [16, 128], strides = [1, 1]} : vector<16x384xf32> to vector<16x128xf32>
    %32 = arith.addf %31, %5 : vector<16x128xf32>
    %33 = arith.mulf %21, %32 : vector<16x128xf32>
    %34 = arith.addf %30, %33 : vector<16x128xf32>
    %35 = math.tanh %34 : vector<16x128xf32>
    %cst_11 = arith.constant 1.000000e+00 : f32
    %36 = vector.broadcast %cst_11 : f32 to vector<16x128xf32>
    %37 = arith.subf %36, %29 : vector<16x128xf32>
    %38 = arith.mulf %37, %35 : vector<16x128xf32>
    %39 = arith.mulf %29, %6 : vector<16x128xf32>
    %40 = arith.addf %38, %39 : vector<16x128xf32>
    %41 = arith.truncf %40 : vector<16x128xf32> to vector<16x128xbf16>
    %42 = arith.index_cast %c0_i32_4 : i32 to index
    %c0_12 = arith.constant 0 : index
    %c0_13 = arith.constant 0 : index
    %43 = vector.load %arg5[%42, %c0_12, %c0_13] : memref<8x16x128xbf16, #tpu.memory_space<vmem>>, vector<1x16x128xbf16>
    %44 = vector.shape_cast %43 : vector<1x16x128xbf16> to vector<16x128xbf16>
    %45 = vector.shape_cast %41 : vector<16x128xbf16> to vector<1x16x128xbf16>
    tpu.vector_store %arg5[%42, %c0_12, %c0_13], %45 {strides = array<i32>} : memref<8x16x128xbf16, #tpu.memory_space<vmem>>, vector<1x16x128xbf16>,
    %c1_i32 = arith.constant 1 : i32
    %46 = arith.index_cast %c1_i32 : i32 to index
    %c0_14 = arith.constant 0 : index
    %c0_15 = arith.constant 0 : index
    %47 = vector.load %arg2[%46, %c0_14, %c0_15] : memref<8x16x384xbf16, #tpu.memory_space<vmem>>, vector<1x16x384xbf16>
    %48 = vector.shape_cast %47 : vector<1x16x384xbf16> to vector<16x384xbf16>
    %49 = arith.extf %48 : vector<16x384xbf16> to vector<16x384xf32>
    %50 = arith.truncf %40 : vector<16x128xf32> to vector<16x128xbf16>
    %c0_16 = arith.constant 0 : index
    %c0_17 = arith.constant 0 : index
    %51 = vector.load %arg3[%c0_16, %c0_17] : memref<128x384xbf16, #tpu.memory_space<vmem>>, vector<128x384xbf16>
    %cst_18 = arith.constant dense<0.000000e+00> : vector<16x384xf32>
    %52 = tpu.matmul %50, %51, %cst_18 {dimension_numbers = #tpu.dot_dimension_numbers<[1], [0], [0], [1], [0, 0, 1, 1], [], []>} : vector<16x128xbf16>, vector<128x384xbf16>, vector<16x384xf32> -> vector<16x384xf32>
    %53 = vector.extract_strided_slice %49 {offsets = [0, 0], sizes = [16, 128], strides = [1, 1]} : vector<16x384xf32> to vector<16x128xf32>
    %54 = vector.extract_strided_slice %52 {offsets = [0, 0], sizes = [16, 128], strides = [1, 1]} : vector<16x384xf32> to vector<16x128xf32>
    %55 = arith.addf %53, %54 : vector<16x128xf32>
    %56 = arith.negf %55 : vector<16x128xf32>
    %57 = math.exp %56 : vector<16x128xf32>
    %cst_19 = arith.constant 1.000000e+00 : f32
    %58 = vector.broadcast %cst_19 : f32 to vector<16x128xf32>
    %59 = arith.addf %58, %57 : vector<16x128xf32>
    %60 = arith.divf %58, %59 : vector<16x128xf32>
    %61 = vector.extract_strided_slice %49 {offsets = [0, 128], sizes = [16, 128], strides = [1, 1]} : vector<16x384xf32> to vector<16x128xf32>
    %62 = vector.extract_strided_slice %52 {offsets = [0, 128], sizes = [16, 128], strides = [1, 1]} : vector<16x384xf32> to vector<16x128xf32>
    %63 = arith.addf %61, %62 : vector<16x128xf32>
    %64 = arith.negf %63 : vector<16x128xf32>
    %65 = math.exp %64 : vector<16x128xf32>
    %cst_20 = arith.constant 1.000000e+00 : f32
    %66 = vector.broadcast %cst_20 : f32 to vector<16x128xf32>
    %67 = arith.addf %66, %65 : vector<16x128xf32>
    %68 = arith.divf %66, %67 : vector<16x128xf32>
    %69 = vector.extract_strided_slice %49 {offsets = [0, 256], sizes = [16, 128], strides = [1, 1]} : vector<16x384xf32> to vector<16x128xf32>
    %70 = vector.extract_strided_slice %52 {offsets = [0, 256], sizes = [16, 128], strides = [1, 1]} : vector<16x384xf32> to vector<16x128xf32>
    %71 = arith.addf %70, %5 : vector<16x128xf32>
    %72 = arith.mulf %60, %71 : vector<16x128xf32>
    %73 = arith.addf %69, %72 : vector<16x128xf32>
    %74 = math.tanh %73 : vector<16x128xf32>
    %cst_21 = arith.constant 1.000000e+00 : f32
    %75 = vector.broadcast %cst_21 : f32 to vector<16x128xf32>
    %76 = arith.subf %75, %68 : vector<16x128xf32>
    %77 = arith.mulf %76, %74 : vector<16x128xf32>
    %78 = arith.mulf %68, %40 : vector<16x128xf32>
    %79 = arith.addf %77, %78 : vector<16x128xf32>
    %80 = arith.truncf %79 : vector<16x128xf32> to vector<16x128xbf16>
    %81 = arith.index_cast %c1_i32 : i32 to index
    %c0_22 = arith.constant 0 : index
    %c0_23 = arith.constant 0 : index
    %82 = vector.load %arg5[%81, %c0_22, %c0_23] : memref<8x16x128xbf16, #tpu.memory_space<vmem>>, vector<1x16x128xbf16>
    %83 = vector.shape_cast %82 : vector<1x16x128xbf16> to vector<16x128xbf16>
    %84 = vector.shape_cast %80 : vector<16x128xbf16> to vector<1x16x128xbf16>
    tpu.vector_store %arg5[%81, %c0_22, %c0_23], %84 {strides = array<i32>} : memref<8x16x128xbf16, #tpu.memory_space<vmem>>, vector<1x16x128xbf16>,
    %c2_i32 = arith.constant 2 : i32
    %85 = arith.index_cast %c2_i32 : i32 to index
    %c0_24 = arith.constant 0 : index
    %c0_25 = arith.constant 0 : index
    %86 = vector.load %arg2[%85, %c0_24, %c0_25] : memref<8x16x384xbf16, #tpu.memory_space<vmem>>, vector<1x16x384xbf16>
    %87 = vector.shape_cast %86 : vector<1x16x384xbf16> to vector<16x384xbf16>
    %88 = arith.extf %87 : vector<16x384xbf16> to vector<16x384xf32>
    %89 = arith.truncf %79 : vector<16x128xf32> to vector<16x128xbf16>
    %c0_26 = arith.constant 0 : index
    %c0_27 = arith.constant 0 : index
    %90 = vector.load %arg3[%c0_26, %c0_27] : memref<128x384xbf16, #tpu.memory_space<vmem>>, vector<128x384xbf16>
    %cst_28 = arith.constant dense<0.000000e+00> : vector<16x384xf32>
    %91 = tpu.matmul %89, %90, %cst_28 {dimension_numbers = #tpu.dot_dimension_numbers<[1], [0], [0], [1], [0, 0, 1, 1], [], []>} : vector<16x128xbf16>, vector<128x384xbf16>, vector<16x384xf32> -> vector<16x384xf32>
    %92 = vector.extract_strided_slice %88 {offsets = [0, 0], sizes = [16, 128], strides = [1, 1]} : vector<16x384xf32> to vector<16x128xf32>
    %93 = vector.extract_strided_slice %91 {offsets = [0, 0], sizes = [16, 128], strides = [1, 1]} : vector<16x384xf32> to vector<16x128xf32>
    %94 = arith.addf %92, %93 : vector<16x128xf32>
    %95 = arith.negf %94 : vector<16x128xf32>
    %96 = math.exp %95 : vector<16x128xf32>
    %cst_29 = arith.constant 1.000000e+00 : f32
    %97 = vector.broadcast %cst_29 : f32 to vector<16x128xf32>
    %98 = arith.addf %97, %96 : vector<16x128xf32>
    %99 = arith.divf %97, %98 : vector<16x128xf32>
    %100 = vector.extract_strided_slice %88 {offsets = [0, 128], sizes = [16, 128], strides = [1, 1]} : vector<16x384xf32> to vector<16x128xf32>
    %101 = vector.extract_strided_slice %91 {offsets = [0, 128], sizes = [16, 128], strides = [1, 1]} : vector<16x384xf32> to vector<16x128xf32>
    %102 = arith.addf %100, %101 : vector<16x128xf32>
    %103 = arith.negf %102 : vector<16x128xf32>
    %104 = math.exp %103 : vector<16x128xf32>
    %cst_30 = arith.constant 1.000000e+00 : f32
    %105 = vector.broadcast %cst_30 : f32 to vector<16x128xf32>
    %106 = arith.addf %105, %104 : vector<16x128xf32>
    %107 = arith.divf %105, %106 : vector<16x128xf32>
    %108 = vector.extract_strided_slice %88 {offsets = [0, 256], sizes = [16, 128], strides = [1, 1]} : vector<16x384xf32> to vector<16x128xf32>
    %109 = vector.extract_strided_slice %91 {offsets = [0, 256], sizes = [16, 128], strides = [1, 1]} : vector<16x384xf32> to vector<16x128xf32>
    %110 = arith.addf %109, %5 : vector<16x128xf32>
    %111 = arith.mulf %99, %110 : vector<16x128xf32>
    %112 = arith.addf %108, %111 : vector<16x128xf32>
    %113 = math.tanh %112 : vector<16x128xf32>
    %cst_31 = arith.constant 1.000000e+00 : f32
    %114 = vector.broadcast %cst_31 : f32 to vector<16x128xf32>
    %115 = arith.subf %114, %107 : vector<16x128xf32>
    %116 = arith.mulf %115, %113 : vector<16x128xf32>
    %117 = arith.mulf %107, %79 : vector<16x128xf32>
    %118 = arith.addf %116, %117 : vector<16x128xf32>
    %119 = arith.truncf %118 : vector<16x128xf32> to vector<16x128xbf16>
    %120 = arith.index_cast %c2_i32 : i32 to index
    %c0_32 = arith.constant 0 : index
    %c0_33 = arith.constant 0 : index
    %121 = vector.load %arg5[%120, %c0_32, %c0_33] : memref<8x16x128xbf16, #tpu.memory_space<vmem>>, vector<1x16x128xbf16>
    %122 = vector.shape_cast %121 : vector<1x16x128xbf16> to vector<16x128xbf16>
    %123 = vector.shape_cast %119 : vector<16x128xbf16> to vector<1x16x128xbf16>
    tpu.vector_store %arg5[%120, %c0_32, %c0_33], %123 {strides = array<i32>} : memref<8x16x128xbf16, #tpu.memory_space<vmem>>, vector<1x16x128xbf16>,
    %c3_i32 = arith.constant 3 : i32
    %124 = arith.index_cast %c3_i32 : i32 to index
    %c0_34 = arith.constant 0 : index
    %c0_35 = arith.constant 0 : index
    %125 = vector.load %arg2[%124, %c0_34, %c0_35] : memref<8x16x384xbf16, #tpu.memory_space<vmem>>, vector<1x16x384xbf16>
    %126 = vector.shape_cast %125 : vector<1x16x384xbf16> to vector<16x384xbf16>
    %127 = arith.extf %126 : vector<16x384xbf16> to vector<16x384xf32>
    %128 = arith.truncf %118 : vector<16x128xf32> to vector<16x128xbf16>
    %c0_36 = arith.constant 0 : index
    %c0_37 = arith.constant 0 : index
    %129 = vector.load %arg3[%c0_36, %c0_37] : memref<128x384xbf16, #tpu.memory_space<vmem>>, vector<128x384xbf16>
    %cst_38 = arith.constant dense<0.000000e+00> : vector<16x384xf32>
    %130 = tpu.matmul %128, %129, %cst_38 {dimension_numbers = #tpu.dot_dimension_numbers<[1], [0], [0], [1], [0, 0, 1, 1], [], []>} : vector<16x128xbf16>, vector<128x384xbf16>, vector<16x384xf32> -> vector<16x384xf32>
    %131 = vector.extract_strided_slice %127 {offsets = [0, 0], sizes = [16, 128], strides = [1, 1]} : vector<16x384xf32> to vector<16x128xf32>
    %132 = vector.extract_strided_slice %130 {offsets = [0, 0], sizes = [16, 128], strides = [1, 1]} : vector<16x384xf32> to vector<16x128xf32>
    %133 = arith.addf %131, %132 : vector<16x128xf32>
    %134 = arith.negf %133 : vector<16x128xf32>
    %135 = math.exp %134 : vector<16x128xf32>
    %cst_39 = arith.constant 1.000000e+00 : f32
    %136 = vector.broadcast %cst_39 : f32 to vector<16x128xf32>
    %137 = arith.addf %136, %135 : vector<16x128xf32>
    %138 = arith.divf %136, %137 : vector<16x128xf32>
    %139 = vector.extract_strided_slice %127 {offsets = [0, 128], sizes = [16, 128], strides = [1, 1]} : vector<16x384xf32> to vector<16x128xf32>
    %140 = vector.extract_strided_slice %130 {offsets = [0, 128], sizes = [16, 128], strides = [1, 1]} : vector<16x384xf32> to vector<16x128xf32>
    %141 = arith.addf %139, %140 : vector<16x128xf32>
    %142 = arith.negf %141 : vector<16x128xf32>
    %143 = math.exp %142 : vector<16x128xf32>
    %cst_40 = arith.constant 1.000000e+00 : f32
    %144 = vector.broadcast %cst_40 : f32 to vector<16x128xf32>
    %145 = arith.addf %144, %143 : vector<16x128xf32>
    %146 = arith.divf %144, %145 : vector<16x128xf32>
    %147 = vector.extract_strided_slice %127 {offsets = [0, 256], sizes = [16, 128], strides = [1, 1]} : vector<16x384xf32> to vector<16x128xf32>
    %148 = vector.extract_strided_slice %130 {offsets = [0, 256], sizes = [16, 128], strides = [1, 1]} : vector<16x384xf32> to vector<16x128xf32>
    %149 = arith.addf %148, %5 : vector<16x128xf32>
    %150 = arith.mulf %138, %149 : vector<16x128xf32>
    %151 = arith.addf %147, %150 : vector<16x128xf32>
    %152 = math.tanh %151 : vector<16x128xf32>
    %cst_41 = arith.constant 1.000000e+00 : f32
    %153 = vector.broadcast %cst_41 : f32 to vector<16x128xf32>
    %154 = arith.subf %153, %146 : vector<16x128xf32>
    %155 = arith.mulf %154, %152 : vector<16x128xf32>
    %156 = arith.mulf %146, %118 : vector<16x128xf32>
    %157 = arith.addf %155, %156 : vector<16x128xf32>
    %158 = arith.truncf %157 : vector<16x128xf32> to vector<16x128xbf16>
    %159 = arith.index_cast %c3_i32 : i32 to index
    %c0_42 = arith.constant 0 : index
    %c0_43 = arith.constant 0 : index
    %160 = vector.load %arg5[%159, %c0_42, %c0_43] : memref<8x16x128xbf16, #tpu.memory_space<vmem>>, vector<1x16x128xbf16>
    %161 = vector.shape_cast %160 : vector<1x16x128xbf16> to vector<16x128xbf16>
    %162 = vector.shape_cast %158 : vector<16x128xbf16> to vector<1x16x128xbf16>
    tpu.vector_store %arg5[%159, %c0_42, %c0_43], %162 {strides = array<i32>} : memref<8x16x128xbf16, #tpu.memory_space<vmem>>, vector<1x16x128xbf16>,
    %c4_i32 = arith.constant 4 : i32
    %163 = arith.index_cast %c4_i32 : i32 to index
    %c0_44 = arith.constant 0 : index
    %c0_45 = arith.constant 0 : index
    %164 = vector.load %arg2[%163, %c0_44, %c0_45] : memref<8x16x384xbf16, #tpu.memory_space<vmem>>, vector<1x16x384xbf16>
    %165 = vector.shape_cast %164 : vector<1x16x384xbf16> to vector<16x384xbf16>
    %166 = arith.extf %165 : vector<16x384xbf16> to vector<16x384xf32>
    %167 = arith.truncf %157 : vector<16x128xf32> to vector<16x128xbf16>
    %c0_46 = arith.constant 0 : index
    %c0_47 = arith.constant 0 : index
    %168 = vector.load %arg3[%c0_46, %c0_47] : memref<128x384xbf16, #tpu.memory_space<vmem>>, vector<128x384xbf16>
    %cst_48 = arith.constant dense<0.000000e+00> : vector<16x384xf32>
    %169 = tpu.matmul %167, %168, %cst_48 {dimension_numbers = #tpu.dot_dimension_numbers<[1], [0], [0], [1], [0, 0, 1, 1], [], []>} : vector<16x128xbf16>, vector<128x384xbf16>, vector<16x384xf32> -> vector<16x384xf32>
    %170 = vector.extract_strided_slice %166 {offsets = [0, 0], sizes = [16, 128], strides = [1, 1]} : vector<16x384xf32> to vector<16x128xf32>
    %171 = vector.extract_strided_slice %169 {offsets = [0, 0], sizes = [16, 128], strides = [1, 1]} : vector<16x384xf32> to vector<16x128xf32>
    %172 = arith.addf %170, %171 : vector<16x128xf32>
    %173 = arith.negf %172 : vector<16x128xf32>
    %174 = math.exp %173 : vector<16x128xf32>
    %cst_49 = arith.constant 1.000000e+00 : f32
    %175 = vector.broadcast %cst_49 : f32 to vector<16x128xf32>
    %176 = arith.addf %175, %174 : vector<16x128xf32>
    %177 = arith.divf %175, %176 : vector<16x128xf32>
    %178 = vector.extract_strided_slice %166 {offsets = [0, 128], sizes = [16, 128], strides = [1, 1]} : vector<16x384xf32> to vector<16x128xf32>
    %179 = vector.extract_strided_slice %169 {offsets = [0, 128], sizes = [16, 128], strides = [1, 1]} : vector<16x384xf32> to vector<16x128xf32>
    %180 = arith.addf %178, %179 : vector<16x128xf32>
    %181 = arith.negf %180 : vector<16x128xf32>
    %182 = math.exp %181 : vector<16x128xf32>
    %cst_50 = arith.constant 1.000000e+00 : f32
    %183 = vector.broadcast %cst_50 : f32 to vector<16x128xf32>
    %184 = arith.addf %183, %182 : vector<16x128xf32>
    %185 = arith.divf %183, %184 : vector<16x128xf32>
    %186 = vector.extract_strided_slice %166 {offsets = [0, 256], sizes = [16, 128], strides = [1, 1]} : vector<16x384xf32> to vector<16x128xf32>
    %187 = vector.extract_strided_slice %169 {offsets = [0, 256], sizes = [16, 128], strides = [1, 1]} : vector<16x384xf32> to vector<16x128xf32>
    %188 = arith.addf %187, %5 : vector<16x128xf32>
    %189 = arith.mulf %177, %188 : vector<16x128xf32>
    %190 = arith.addf %186, %189 : vector<16x128xf32>
    %191 = math.tanh %190 : vector<16x128xf32>
    %cst_51 = arith.constant 1.000000e+00 : f32
    %192 = vector.broadcast %cst_51 : f32 to vector<16x128xf32>
    %193 = arith.subf %192, %185 : vector<16x128xf32>
    %194 = arith.mulf %193, %191 : vector<16x128xf32>
    %195 = arith.mulf %185, %157 : vector<16x128xf32>
    %196 = arith.addf %194, %195 : vector<16x128xf32>
    %197 = arith.truncf %196 : vector<16x128xf32> to vector<16x128xbf16>
    %198 = arith.index_cast %c4_i32 : i32 to index
    %c0_52 = arith.constant 0 : index
    %c0_53 = arith.constant 0 : index
    %199 = vector.load %arg5[%198, %c0_52, %c0_53] : memref<8x16x128xbf16, #tpu.memory_space<vmem>>, vector<1x16x128xbf16>
    %200 = vector.shape_cast %199 : vector<1x16x128xbf16> to vector<16x128xbf16>
    %201 = vector.shape_cast %197 : vector<16x128xbf16> to vector<1x16x128xbf16>
    tpu.vector_store %arg5[%198, %c0_52, %c0_53], %201 {strides = array<i32>} : memref<8x16x128xbf16, #tpu.memory_space<vmem>>, vector<1x16x128xbf16>,
    %c5_i32 = arith.constant 5 : i32
    %202 = arith.index_cast %c5_i32 : i32 to index
    %c0_54 = arith.constant 0 : index
    %c0_55 = arith.constant 0 : index
    %203 = vector.load %arg2[%202, %c0_54, %c0_55] : memref<8x16x384xbf16, #tpu.memory_space<vmem>>, vector<1x16x384xbf16>
    %204 = vector.shape_cast %203 : vector<1x16x384xbf16> to vector<16x384xbf16>
    %205 = arith.extf %204 : vector<16x384xbf16> to vector<16x384xf32>
    %206 = arith.truncf %196 : vector<16x128xf32> to vector<16x128xbf16>
    %c0_56 = arith.constant 0 : index
    %c0_57 = arith.constant 0 : index
    %207 = vector.load %arg3[%c0_56, %c0_57] : memref<128x384xbf16, #tpu.memory_space<vmem>>, vector<128x384xbf16>
    %cst_58 = arith.constant dense<0.000000e+00> : vector<16x384xf32>
    %208 = tpu.matmul %206, %207, %cst_58 {dimension_numbers = #tpu.dot_dimension_numbers<[1], [0], [0], [1], [0, 0, 1, 1], [], []>} : vector<16x128xbf16>, vector<128x384xbf16>, vector<16x384xf32> -> vector<16x384xf32>
    %209 = vector.extract_strided_slice %205 {offsets = [0, 0], sizes = [16, 128], strides = [1, 1]} : vector<16x384xf32> to vector<16x128xf32>
    %210 = vector.extract_strided_slice %208 {offsets = [0, 0], sizes = [16, 128], strides = [1, 1]} : vector<16x384xf32> to vector<16x128xf32>
    %211 = arith.addf %209, %210 : vector<16x128xf32>
    %212 = arith.negf %211 : vector<16x128xf32>
    %213 = math.exp %212 : vector<16x128xf32>
    %cst_59 = arith.constant 1.000000e+00 : f32
    %214 = vector.broadcast %cst_59 : f32 to vector<16x128xf32>
    %215 = arith.addf %214, %213 : vector<16x128xf32>
    %216 = arith.divf %214, %215 : vector<16x128xf32>
    %217 = vector.extract_strided_slice %205 {offsets = [0, 128], sizes = [16, 128], strides = [1, 1]} : vector<16x384xf32> to vector<16x128xf32>
    %218 = vector.extract_strided_slice %208 {offsets = [0, 128], sizes = [16, 128], strides = [1, 1]} : vector<16x384xf32> to vector<16x128xf32>
    %219 = arith.addf %217, %218 : vector<16x128xf32>
    %220 = arith.negf %219 : vector<16x128xf32>
    %221 = math.exp %220 : vector<16x128xf32>
    %cst_60 = arith.constant 1.000000e+00 : f32
    %222 = vector.broadcast %cst_60 : f32 to vector<16x128xf32>
    %223 = arith.addf %222, %221 : vector<16x128xf32>
    %224 = arith.divf %222, %223 : vector<16x128xf32>
    %225 = vector.extract_strided_slice %205 {offsets = [0, 256], sizes = [16, 128], strides = [1, 1]} : vector<16x384xf32> to vector<16x128xf32>
    %226 = vector.extract_strided_slice %208 {offsets = [0, 256], sizes = [16, 128], strides = [1, 1]} : vector<16x384xf32> to vector<16x128xf32>
    %227 = arith.addf %226, %5 : vector<16x128xf32>
    %228 = arith.mulf %216, %227 : vector<16x128xf32>
    %229 = arith.addf %225, %228 : vector<16x128xf32>
    %230 = math.tanh %229 : vector<16x128xf32>
    %cst_61 = arith.constant 1.000000e+00 : f32
    %231 = vector.broadcast %cst_61 : f32 to vector<16x128xf32>
    %232 = arith.subf %231, %224 : vector<16x128xf32>
    %233 = arith.mulf %232, %230 : vector<16x128xf32>
    %234 = arith.mulf %224, %196 : vector<16x128xf32>
    %235 = arith.addf %233, %234 : vector<16x128xf32>
    %236 = arith.truncf %235 : vector<16x128xf32> to vector<16x128xbf16>
    %237 = arith.index_cast %c5_i32 : i32 to index
    %c0_62 = arith.constant 0 : index
    %c0_63 = arith.constant 0 : index
    %238 = vector.load %arg5[%237, %c0_62, %c0_63] : memref<8x16x128xbf16, #tpu.memory_space<vmem>>, vector<1x16x128xbf16>
    %239 = vector.shape_cast %238 : vector<1x16x128xbf16> to vector<16x128xbf16>
    %240 = vector.shape_cast %236 : vector<16x128xbf16> to vector<1x16x128xbf16>
    tpu.vector_store %arg5[%237, %c0_62, %c0_63], %240 {strides = array<i32>} : memref<8x16x128xbf16, #tpu.memory_space<vmem>>, vector<1x16x128xbf16>,
    %c6_i32 = arith.constant 6 : i32
    %241 = arith.index_cast %c6_i32 : i32 to index
    %c0_64 = arith.constant 0 : index
    %c0_65 = arith.constant 0 : index
    %242 = vector.load %arg2[%241, %c0_64, %c0_65] : memref<8x16x384xbf16, #tpu.memory_space<vmem>>, vector<1x16x384xbf16>
    %243 = vector.shape_cast %242 : vector<1x16x384xbf16> to vector<16x384xbf16>
    %244 = arith.extf %243 : vector<16x384xbf16> to vector<16x384xf32>
    %245 = arith.truncf %235 : vector<16x128xf32> to vector<16x128xbf16>
    %c0_66 = arith.constant 0 : index
    %c0_67 = arith.constant 0 : index
    %246 = vector.load %arg3[%c0_66, %c0_67] : memref<128x384xbf16, #tpu.memory_space<vmem>>, vector<128x384xbf16>
    %cst_68 = arith.constant dense<0.000000e+00> : vector<16x384xf32>
    %247 = tpu.matmul %245, %246, %cst_68 {dimension_numbers = #tpu.dot_dimension_numbers<[1], [0], [0], [1], [0, 0, 1, 1], [], []>} : vector<16x128xbf16>, vector<128x384xbf16>, vector<16x384xf32> -> vector<16x384xf32>
    %248 = vector.extract_strided_slice %244 {offsets = [0, 0], sizes = [16, 128], strides = [1, 1]} : vector<16x384xf32> to vector<16x128xf32>
    %249 = vector.extract_strided_slice %247 {offsets = [0, 0], sizes = [16, 128], strides = [1, 1]} : vector<16x384xf32> to vector<16x128xf32>
    %250 = arith.addf %248, %249 : vector<16x128xf32>
    %251 = arith.negf %250 : vector<16x128xf32>
    %252 = math.exp %251 : vector<16x128xf32>
    %cst_69 = arith.constant 1.000000e+00 : f32
    %253 = vector.broadcast %cst_69 : f32 to vector<16x128xf32>
    %254 = arith.addf %253, %252 : vector<16x128xf32>
    %255 = arith.divf %253, %254 : vector<16x128xf32>
    %256 = vector.extract_strided_slice %244 {offsets = [0, 128], sizes = [16, 128], strides = [1, 1]} : vector<16x384xf32> to vector<16x128xf32>
    %257 = vector.extract_strided_slice %247 {offsets = [0, 128], sizes = [16, 128], strides = [1, 1]} : vector<16x384xf32> to vector<16x128xf32>
    %258 = arith.addf %256, %257 : vector<16x128xf32>
    %259 = arith.negf %258 : vector<16x128xf32>
    %260 = math.exp %259 : vector<16x128xf32>
    %cst_70 = arith.constant 1.000000e+00 : f32
    %261 = vector.broadcast %cst_70 : f32 to vector<16x128xf32>
    %262 = arith.addf %261, %260 : vector<16x128xf32>
    %263 = arith.divf %261, %262 : vector<16x128xf32>
    %264 = vector.extract_strided_slice %244 {offsets = [0, 256], sizes = [16, 128], strides = [1, 1]} : vector<16x384xf32> to vector<16x128xf32>
    %265 = vector.extract_strided_slice %247 {offsets = [0, 256], sizes = [16, 128], strides = [1, 1]} : vector<16x384xf32> to vector<16x128xf32>
    %266 = arith.addf %265, %5 : vector<16x128xf32>
    %267 = arith.mulf %255, %266 : vector<16x128xf32>
    %268 = arith.addf %264, %267 : vector<16x128xf32>
    %269 = math.tanh %268 : vector<16x128xf32>
    %cst_71 = arith.constant 1.000000e+00 : f32
    %270 = vector.broadcast %cst_71 : f32 to vector<16x128xf32>
    %271 = arith.subf %270, %263 : vector<16x128xf32>
    %272 = arith.mulf %271, %269 : vector<16x128xf32>
    %273 = arith.mulf %263, %235 : vector<16x128xf32>
    %274 = arith.addf %272, %273 : vector<16x128xf32>
    %275 = arith.truncf %274 : vector<16x128xf32> to vector<16x128xbf16>
    %276 = arith.index_cast %c6_i32 : i32 to index
    %c0_72 = arith.constant 0 : index
    %c0_73 = arith.constant 0 : index
    %277 = vector.load %arg5[%276, %c0_72, %c0_73] : memref<8x16x128xbf16, #tpu.memory_space<vmem>>, vector<1x16x128xbf16>
    %278 = vector.shape_cast %277 : vector<1x16x128xbf16> to vector<16x128xbf16>
    %279 = vector.shape_cast %275 : vector<16x128xbf16> to vector<1x16x128xbf16>
    tpu.vector_store %arg5[%276, %c0_72, %c0_73], %279 {strides = array<i32>} : memref<8x16x128xbf16, #tpu.memory_space<vmem>>, vector<1x16x128xbf16>,
    %c7_i32 = arith.constant 7 : i32
    %280 = arith.index_cast %c7_i32 : i32 to index
    %c0_74 = arith.constant 0 : index
    %c0_75 = arith.constant 0 : index
    %281 = vector.load %arg2[%280, %c0_74, %c0_75] : memref<8x16x384xbf16, #tpu.memory_space<vmem>>, vector<1x16x384xbf16>
    %282 = vector.shape_cast %281 : vector<1x16x384xbf16> to vector<16x384xbf16>
    %283 = arith.extf %282 : vector<16x384xbf16> to vector<16x384xf32>
    %284 = arith.truncf %274 : vector<16x128xf32> to vector<16x128xbf16>
    %c0_76 = arith.constant 0 : index
    %c0_77 = arith.constant 0 : index
    %285 = vector.load %arg3[%c0_76, %c0_77] : memref<128x384xbf16, #tpu.memory_space<vmem>>, vector<128x384xbf16>
    %cst_78 = arith.constant dense<0.000000e+00> : vector<16x384xf32>
    %286 = tpu.matmul %284, %285, %cst_78 {dimension_numbers = #tpu.dot_dimension_numbers<[1], [0], [0], [1], [0, 0, 1, 1], [], []>} : vector<16x128xbf16>, vector<128x384xbf16>, vector<16x384xf32> -> vector<16x384xf32>
    %287 = vector.extract_strided_slice %283 {offsets = [0, 0], sizes = [16, 128], strides = [1, 1]} : vector<16x384xf32> to vector<16x128xf32>
    %288 = vector.extract_strided_slice %286 {offsets = [0, 0], sizes = [16, 128], strides = [1, 1]} : vector<16x384xf32> to vector<16x128xf32>
    %289 = arith.addf %287, %288 : vector<16x128xf32>
    %290 = arith.negf %289 : vector<16x128xf32>
    %291 = math.exp %290 : vector<16x128xf32>
    %cst_79 = arith.constant 1.000000e+00 : f32
    %292 = vector.broadcast %cst_79 : f32 to vector<16x128xf32>
    %293 = arith.addf %292, %291 : vector<16x128xf32>
    %294 = arith.divf %292, %293 : vector<16x128xf32>
    %295 = vector.extract_strided_slice %283 {offsets = [0, 128], sizes = [16, 128], strides = [1, 1]} : vector<16x384xf32> to vector<16x128xf32>
    %296 = vector.extract_strided_slice %286 {offsets = [0, 128], sizes = [16, 128], strides = [1, 1]} : vector<16x384xf32> to vector<16x128xf32>
    %297 = arith.addf %295, %296 : vector<16x128xf32>
    %298 = arith.negf %297 : vector<16x128xf32>
    %299 = math.exp %298 : vector<16x128xf32>
    %cst_80 = arith.constant 1.000000e+00 : f32
    %300 = vector.broadcast %cst_80 : f32 to vector<16x128xf32>
    %301 = arith.addf %300, %299 : vector<16x128xf32>
    %302 = arith.divf %300, %301 : vector<16x128xf32>
    %303 = vector.extract_strided_slice %283 {offsets = [0, 256], sizes = [16, 128], strides = [1, 1]} : vector<16x384xf32> to vector<16x128xf32>
    %304 = vector.extract_strided_slice %286 {offsets = [0, 256], sizes = [16, 128], strides = [1, 1]} : vector<16x384xf32> to vector<16x128xf32>
    %305 = arith.addf %304, %5 : vector<16x128xf32>
    %306 = arith.mulf %294, %305 : vector<16x128xf32>
    %307 = arith.addf %303, %306 : vector<16x128xf32>
    %308 = math.tanh %307 : vector<16x128xf32>
    %cst_81 = arith.constant 1.000000e+00 : f32
    %309 = vector.broadcast %cst_81 : f32 to vector<16x128xf32>
    %310 = arith.subf %309, %302 : vector<16x128xf32>
    %311 = arith.mulf %310, %308 : vector<16x128xf32>
    %312 = arith.mulf %302, %274 : vector<16x128xf32>
    %313 = arith.addf %311, %312 : vector<16x128xf32>
    %314 = arith.truncf %313 : vector<16x128xf32> to vector<16x128xbf16>
    %315 = arith.index_cast %c7_i32 : i32 to index
    %c0_82 = arith.constant 0 : index
    %c0_83 = arith.constant 0 : index
    %316 = vector.load %arg5[%315, %c0_82, %c0_83] : memref<8x16x128xbf16, #tpu.memory_space<vmem>>, vector<1x16x128xbf16>
    %317 = vector.shape_cast %316 : vector<1x16x128xbf16> to vector<16x128xbf16>
    %318 = vector.shape_cast %314 : vector<16x128xbf16> to vector<1x16x128xbf16>
    tpu.vector_store %arg5[%315, %c0_82, %c0_83], %318 {strides = array<i32>} : memref<8x16x128xbf16, #tpu.memory_space<vmem>>, vector<1x16x128xbf16>,
    %c8_i32 = arith.constant 8 : i32
    %c0_84 = arith.constant 0 : index
    %c0_85 = arith.constant 0 : index
    %319 = vector.load %arg7[%c0_84, %c0_85] : memref<16x128xf32, #tpu.memory_space<vmem>>, vector<16x128xf32>
    tpu.vector_store %arg7[%c0_84, %c0_85], %313 {strides = array<i32>} : memref<16x128xf32, #tpu.memory_space<vmem>>, vector<16x128xf32>,
    %c0_86 = arith.constant 0 : index
    %c0_87 = arith.constant 0 : index
    %320 = vector.load %arg6[%c0_86, %c0_87] : memref<16x128xf32, #tpu.memory_space<vmem>>, vector<16x128xf32>
    tpu.vector_store %arg6[%c0_86, %c0_87], %313 {strides = array<i32>} : memref<16x128xf32, #tpu.memory_space<vmem>>, vector<16x128xf32>,
    return
  }
  func.func @transform_0(%arg0: i32, %arg1: i32) -> (i32, i32, i32) {
    %c0_i32 = arith.constant 0 : i32
    %c0_i32_0 = arith.constant 0 : i32
    return %arg1, %arg0, %c0_i32 : i32, i32, i32
  }
  func.func @transform_1(%arg0: i32, %arg1: i32) -> (i32, i32) {
    %c0_i32 = arith.constant 0 : i32
    %c0_i32_0 = arith.constant 0 : i32
    %c0_i32_1 = arith.constant 0 : i32
    return %c0_i32, %c0_i32_0 : i32, i32
  }
  func.func @transform_2(%arg0: i32, %arg1: i32) -> (i32, i32) {
    %c0_i32 = arith.constant 0 : i32
    %c0_i32_0 = arith.constant 0 : i32
    %c0_i32_1 = arith.constant 0 : i32
    return %c0_i32, %c0_i32_0 : i32, i32
  }
  func.func @transform_3(%arg0: i32, %arg1: i32) -> (i32, i32, i32) {
    %c0_i32 = arith.constant 0 : i32
    %c0_i32_0 = arith.constant 0 : i32
    return %arg1, %arg0, %c0_i32 : i32, i32, i32
  }
  func.func @transform_4(%arg0: i32, %arg1: i32) -> (i32, i32) {
    %c0_i32 = arith.constant 0 : i32
    %c0_i32_0 = arith.constant 0 : i32
    return %arg0, %c0_i32 : i32, i32
  }
}

module attributes {stable_mosaic.version = 11 : i64} {
  func.func @_gru_recurrence_kernel(%arg0: i32, %arg1: i32, %arg2: memref<8x16x384xbf16, #tpu.memory_space<vmem>>, %arg3: memref<128x384xbf16, #tpu.memory_space<vmem>>, %arg4: memref<1x128xf32, #tpu.memory_space<vmem>>, %arg5: memref<8x16x128xf32, #tpu.memory_space<vmem>>, %arg6: memref<16x128xf32, #tpu.memory_space<vmem>>, %arg7: memref<16x128xf32, #tpu.memory_space<vmem>>) attributes {dimension_semantics = [#tpu.dimension_semantics<parallel>, #tpu.dimension_semantics<arbitrary>], iteration_bounds = array<i64: 1, 1>, scalar_prefetch = 0 : i64, scratch_operands = 1 : i64, tpu.core_type = #tpu.core_type<tc>, window_params = [{transform_indices = @transform_0, window_bounds = array<i64: 8, 16, 384>}, {pipeline_mode = #tpu.pipeline_mode<synchronous>, transform_indices = @transform_1, window_bounds = array<i64: 128, 384>}, {pipeline_mode = #tpu.pipeline_mode<synchronous>, transform_indices = @transform_2, window_bounds = array<i64: 1, 128>}, {transform_indices = @transform_3, window_bounds = array<i64: 8, 16, 128>}, {transform_indices = @transform_4, window_bounds = array<i64: 16, 128>}]} {
    %c0_i32 = arith.constant 0 : i32
    %0 = arith.cmpi eq, %arg1, %c0_i32 : i32
    %1 = arith.extui %0 : i1 to i32
    %c0_i32_0 = arith.constant 0 : i32
    %2 = arith.cmpi ne, %1, %c0_i32_0 : i32
    scf.if %2 {
      %cst_88 = arith.constant 0.000000e+00 : f32
      %313 = vector.broadcast %cst_88 : f32 to vector<16x128xf32>
      %c0_89 = arith.constant 0 : index
      %c0_90 = arith.constant 0 : index
      %314 = vector.load %arg7[%c0_89, %c0_90] : memref<16x128xf32, #tpu.memory_space<vmem>>, vector<16x128xf32>
      tpu.vector_store %arg7[%c0_89, %c0_90], %313 {strides = array<i32>} : memref<16x128xf32, #tpu.memory_space<vmem>>, vector<16x128xf32>,
    } else {
    }
    %c0 = arith.constant 0 : index
    %c0_1 = arith.constant 0 : index
    %3 = vector.load %arg4[%c0, %c0_1] : memref<1x128xf32, #tpu.memory_space<vmem>>, vector<1x128xf32>
    %4 = vector.shape_cast %3 : vector<1x128xf32> to vector<1x128xf32>
    %5 = vector.broadcast %4 : vector<1x128xf32> to vector<16x128xf32>
    %c0_2 = arith.constant 0 : index
    %c0_3 = arith.constant 0 : index
    %6 = vector.load %arg7[%c0_2, %c0_3] : memref<16x128xf32, #tpu.memory_space<vmem>>, vector<16x128xf32>
    %c0_i32_4 = arith.constant 0 : i32
    %7 = arith.index_cast %c0_i32_4 : i32 to index
    %c0_5 = arith.constant 0 : index
    %c0_6 = arith.constant 0 : index
    %8 = vector.load %arg2[%7, %c0_5, %c0_6] : memref<8x16x384xbf16, #tpu.memory_space<vmem>>, vector<1x16x384xbf16>
    %9 = vector.shape_cast %8 : vector<1x16x384xbf16> to vector<16x384xbf16>
    %10 = arith.extf %9 : vector<16x384xbf16> to vector<16x384xf32>
    %11 = arith.truncf %6 : vector<16x128xf32> to vector<16x128xbf16>
    %c0_7 = arith.constant 0 : index
    %c0_8 = arith.constant 0 : index
    %12 = vector.load %arg3[%c0_7, %c0_8] : memref<128x384xbf16, #tpu.memory_space<vmem>>, vector<128x384xbf16>
    %cst = arith.constant dense<0.000000e+00> : vector<16x384xf32>
    %13 = tpu.matmul %11, %12, %cst {dimension_numbers = #tpu.dot_dimension_numbers<[1], [0], [0], [1], [0, 0, 1, 1], [], []>} : vector<16x128xbf16>, vector<128x384xbf16>, vector<16x384xf32> -> vector<16x384xf32>
    %14 = vector.extract_strided_slice %10 {offsets = [0, 0], sizes = [16, 128], strides = [1, 1]} : vector<16x384xf32> to vector<16x128xf32>
    %15 = vector.extract_strided_slice %13 {offsets = [0, 0], sizes = [16, 128], strides = [1, 1]} : vector<16x384xf32> to vector<16x128xf32>
    %16 = arith.addf %14, %15 : vector<16x128xf32>
    %17 = arith.negf %16 : vector<16x128xf32>
    %18 = math.exp %17 : vector<16x128xf32>
    %cst_9 = arith.constant 1.000000e+00 : f32
    %19 = vector.broadcast %cst_9 : f32 to vector<16x128xf32>
    %20 = arith.addf %19, %18 : vector<16x128xf32>
    %21 = arith.divf %19, %20 : vector<16x128xf32>
    %22 = vector.extract_strided_slice %10 {offsets = [0, 128], sizes = [16, 128], strides = [1, 1]} : vector<16x384xf32> to vector<16x128xf32>
    %23 = vector.extract_strided_slice %13 {offsets = [0, 128], sizes = [16, 128], strides = [1, 1]} : vector<16x384xf32> to vector<16x128xf32>
    %24 = arith.addf %22, %23 : vector<16x128xf32>
    %25 = arith.negf %24 : vector<16x128xf32>
    %26 = math.exp %25 : vector<16x128xf32>
    %cst_10 = arith.constant 1.000000e+00 : f32
    %27 = vector.broadcast %cst_10 : f32 to vector<16x128xf32>
    %28 = arith.addf %27, %26 : vector<16x128xf32>
    %29 = arith.divf %27, %28 : vector<16x128xf32>
    %30 = vector.extract_strided_slice %10 {offsets = [0, 256], sizes = [16, 128], strides = [1, 1]} : vector<16x384xf32> to vector<16x128xf32>
    %31 = vector.extract_strided_slice %13 {offsets = [0, 256], sizes = [16, 128], strides = [1, 1]} : vector<16x384xf32> to vector<16x128xf32>
    %32 = arith.addf %31, %5 : vector<16x128xf32>
    %33 = arith.mulf %21, %32 : vector<16x128xf32>
    %34 = arith.addf %30, %33 : vector<16x128xf32>
    %35 = math.tanh %34 : vector<16x128xf32>
    %cst_11 = arith.constant 1.000000e+00 : f32
    %36 = vector.broadcast %cst_11 : f32 to vector<16x128xf32>
    %37 = arith.subf %36, %29 : vector<16x128xf32>
    %38 = arith.mulf %37, %35 : vector<16x128xf32>
    %39 = arith.mulf %29, %6 : vector<16x128xf32>
    %40 = arith.addf %38, %39 : vector<16x128xf32>
    %41 = arith.index_cast %c0_i32_4 : i32 to index
    %c0_12 = arith.constant 0 : index
    %c0_13 = arith.constant 0 : index
    %42 = vector.load %arg5[%41, %c0_12, %c0_13] : memref<8x16x128xf32, #tpu.memory_space<vmem>>, vector<1x16x128xf32>
    %43 = vector.shape_cast %42 : vector<1x16x128xf32> to vector<16x128xf32>
    %44 = vector.shape_cast %40 : vector<16x128xf32> to vector<1x16x128xf32>
    tpu.vector_store %arg5[%41, %c0_12, %c0_13], %44 {strides = array<i32>} : memref<8x16x128xf32, #tpu.memory_space<vmem>>, vector<1x16x128xf32>,
    %c1_i32 = arith.constant 1 : i32
    %45 = arith.index_cast %c1_i32 : i32 to index
    %c0_14 = arith.constant 0 : index
    %c0_15 = arith.constant 0 : index
    %46 = vector.load %arg2[%45, %c0_14, %c0_15] : memref<8x16x384xbf16, #tpu.memory_space<vmem>>, vector<1x16x384xbf16>
    %47 = vector.shape_cast %46 : vector<1x16x384xbf16> to vector<16x384xbf16>
    %48 = arith.extf %47 : vector<16x384xbf16> to vector<16x384xf32>
    %49 = arith.truncf %40 : vector<16x128xf32> to vector<16x128xbf16>
    %c0_16 = arith.constant 0 : index
    %c0_17 = arith.constant 0 : index
    %50 = vector.load %arg3[%c0_16, %c0_17] : memref<128x384xbf16, #tpu.memory_space<vmem>>, vector<128x384xbf16>
    %cst_18 = arith.constant dense<0.000000e+00> : vector<16x384xf32>
    %51 = tpu.matmul %49, %50, %cst_18 {dimension_numbers = #tpu.dot_dimension_numbers<[1], [0], [0], [1], [0, 0, 1, 1], [], []>} : vector<16x128xbf16>, vector<128x384xbf16>, vector<16x384xf32> -> vector<16x384xf32>
    %52 = vector.extract_strided_slice %48 {offsets = [0, 0], sizes = [16, 128], strides = [1, 1]} : vector<16x384xf32> to vector<16x128xf32>
    %53 = vector.extract_strided_slice %51 {offsets = [0, 0], sizes = [16, 128], strides = [1, 1]} : vector<16x384xf32> to vector<16x128xf32>
    %54 = arith.addf %52, %53 : vector<16x128xf32>
    %55 = arith.negf %54 : vector<16x128xf32>
    %56 = math.exp %55 : vector<16x128xf32>
    %cst_19 = arith.constant 1.000000e+00 : f32
    %57 = vector.broadcast %cst_19 : f32 to vector<16x128xf32>
    %58 = arith.addf %57, %56 : vector<16x128xf32>
    %59 = arith.divf %57, %58 : vector<16x128xf32>
    %60 = vector.extract_strided_slice %48 {offsets = [0, 128], sizes = [16, 128], strides = [1, 1]} : vector<16x384xf32> to vector<16x128xf32>
    %61 = vector.extract_strided_slice %51 {offsets = [0, 128], sizes = [16, 128], strides = [1, 1]} : vector<16x384xf32> to vector<16x128xf32>
    %62 = arith.addf %60, %61 : vector<16x128xf32>
    %63 = arith.negf %62 : vector<16x128xf32>
    %64 = math.exp %63 : vector<16x128xf32>
    %cst_20 = arith.constant 1.000000e+00 : f32
    %65 = vector.broadcast %cst_20 : f32 to vector<16x128xf32>
    %66 = arith.addf %65, %64 : vector<16x128xf32>
    %67 = arith.divf %65, %66 : vector<16x128xf32>
    %68 = vector.extract_strided_slice %48 {offsets = [0, 256], sizes = [16, 128], strides = [1, 1]} : vector<16x384xf32> to vector<16x128xf32>
    %69 = vector.extract_strided_slice %51 {offsets = [0, 256], sizes = [16, 128], strides = [1, 1]} : vector<16x384xf32> to vector<16x128xf32>
    %70 = arith.addf %69, %5 : vector<16x128xf32>
    %71 = arith.mulf %59, %70 : vector<16x128xf32>
    %72 = arith.addf %68, %71 : vector<16x128xf32>
    %73 = math.tanh %72 : vector<16x128xf32>
    %cst_21 = arith.constant 1.000000e+00 : f32
    %74 = vector.broadcast %cst_21 : f32 to vector<16x128xf32>
    %75 = arith.subf %74, %67 : vector<16x128xf32>
    %76 = arith.mulf %75, %73 : vector<16x128xf32>
    %77 = arith.mulf %67, %40 : vector<16x128xf32>
    %78 = arith.addf %76, %77 : vector<16x128xf32>
    %79 = arith.index_cast %c1_i32 : i32 to index
    %c0_22 = arith.constant 0 : index
    %c0_23 = arith.constant 0 : index
    %80 = vector.load %arg5[%79, %c0_22, %c0_23] : memref<8x16x128xf32, #tpu.memory_space<vmem>>, vector<1x16x128xf32>
    %81 = vector.shape_cast %80 : vector<1x16x128xf32> to vector<16x128xf32>
    %82 = vector.shape_cast %78 : vector<16x128xf32> to vector<1x16x128xf32>
    tpu.vector_store %arg5[%79, %c0_22, %c0_23], %82 {strides = array<i32>} : memref<8x16x128xf32, #tpu.memory_space<vmem>>, vector<1x16x128xf32>,
    %c2_i32 = arith.constant 2 : i32
    %83 = arith.index_cast %c2_i32 : i32 to index
    %c0_24 = arith.constant 0 : index
    %c0_25 = arith.constant 0 : index
    %84 = vector.load %arg2[%83, %c0_24, %c0_25] : memref<8x16x384xbf16, #tpu.memory_space<vmem>>, vector<1x16x384xbf16>
    %85 = vector.shape_cast %84 : vector<1x16x384xbf16> to vector<16x384xbf16>
    %86 = arith.extf %85 : vector<16x384xbf16> to vector<16x384xf32>
    %87 = arith.truncf %78 : vector<16x128xf32> to vector<16x128xbf16>
    %c0_26 = arith.constant 0 : index
    %c0_27 = arith.constant 0 : index
    %88 = vector.load %arg3[%c0_26, %c0_27] : memref<128x384xbf16, #tpu.memory_space<vmem>>, vector<128x384xbf16>
    %cst_28 = arith.constant dense<0.000000e+00> : vector<16x384xf32>
    %89 = tpu.matmul %87, %88, %cst_28 {dimension_numbers = #tpu.dot_dimension_numbers<[1], [0], [0], [1], [0, 0, 1, 1], [], []>} : vector<16x128xbf16>, vector<128x384xbf16>, vector<16x384xf32> -> vector<16x384xf32>
    %90 = vector.extract_strided_slice %86 {offsets = [0, 0], sizes = [16, 128], strides = [1, 1]} : vector<16x384xf32> to vector<16x128xf32>
    %91 = vector.extract_strided_slice %89 {offsets = [0, 0], sizes = [16, 128], strides = [1, 1]} : vector<16x384xf32> to vector<16x128xf32>
    %92 = arith.addf %90, %91 : vector<16x128xf32>
    %93 = arith.negf %92 : vector<16x128xf32>
    %94 = math.exp %93 : vector<16x128xf32>
    %cst_29 = arith.constant 1.000000e+00 : f32
    %95 = vector.broadcast %cst_29 : f32 to vector<16x128xf32>
    %96 = arith.addf %95, %94 : vector<16x128xf32>
    %97 = arith.divf %95, %96 : vector<16x128xf32>
    %98 = vector.extract_strided_slice %86 {offsets = [0, 128], sizes = [16, 128], strides = [1, 1]} : vector<16x384xf32> to vector<16x128xf32>
    %99 = vector.extract_strided_slice %89 {offsets = [0, 128], sizes = [16, 128], strides = [1, 1]} : vector<16x384xf32> to vector<16x128xf32>
    %100 = arith.addf %98, %99 : vector<16x128xf32>
    %101 = arith.negf %100 : vector<16x128xf32>
    %102 = math.exp %101 : vector<16x128xf32>
    %cst_30 = arith.constant 1.000000e+00 : f32
    %103 = vector.broadcast %cst_30 : f32 to vector<16x128xf32>
    %104 = arith.addf %103, %102 : vector<16x128xf32>
    %105 = arith.divf %103, %104 : vector<16x128xf32>
    %106 = vector.extract_strided_slice %86 {offsets = [0, 256], sizes = [16, 128], strides = [1, 1]} : vector<16x384xf32> to vector<16x128xf32>
    %107 = vector.extract_strided_slice %89 {offsets = [0, 256], sizes = [16, 128], strides = [1, 1]} : vector<16x384xf32> to vector<16x128xf32>
    %108 = arith.addf %107, %5 : vector<16x128xf32>
    %109 = arith.mulf %97, %108 : vector<16x128xf32>
    %110 = arith.addf %106, %109 : vector<16x128xf32>
    %111 = math.tanh %110 : vector<16x128xf32>
    %cst_31 = arith.constant 1.000000e+00 : f32
    %112 = vector.broadcast %cst_31 : f32 to vector<16x128xf32>
    %113 = arith.subf %112, %105 : vector<16x128xf32>
    %114 = arith.mulf %113, %111 : vector<16x128xf32>
    %115 = arith.mulf %105, %78 : vector<16x128xf32>
    %116 = arith.addf %114, %115 : vector<16x128xf32>
    %117 = arith.index_cast %c2_i32 : i32 to index
    %c0_32 = arith.constant 0 : index
    %c0_33 = arith.constant 0 : index
    %118 = vector.load %arg5[%117, %c0_32, %c0_33] : memref<8x16x128xf32, #tpu.memory_space<vmem>>, vector<1x16x128xf32>
    %119 = vector.shape_cast %118 : vector<1x16x128xf32> to vector<16x128xf32>
    %120 = vector.shape_cast %116 : vector<16x128xf32> to vector<1x16x128xf32>
    tpu.vector_store %arg5[%117, %c0_32, %c0_33], %120 {strides = array<i32>} : memref<8x16x128xf32, #tpu.memory_space<vmem>>, vector<1x16x128xf32>,
    %c3_i32 = arith.constant 3 : i32
    %121 = arith.index_cast %c3_i32 : i32 to index
    %c0_34 = arith.constant 0 : index
    %c0_35 = arith.constant 0 : index
    %122 = vector.load %arg2[%121, %c0_34, %c0_35] : memref<8x16x384xbf16, #tpu.memory_space<vmem>>, vector<1x16x384xbf16>
    %123 = vector.shape_cast %122 : vector<1x16x384xbf16> to vector<16x384xbf16>
    %124 = arith.extf %123 : vector<16x384xbf16> to vector<16x384xf32>
    %125 = arith.truncf %116 : vector<16x128xf32> to vector<16x128xbf16>
    %c0_36 = arith.constant 0 : index
    %c0_37 = arith.constant 0 : index
    %126 = vector.load %arg3[%c0_36, %c0_37] : memref<128x384xbf16, #tpu.memory_space<vmem>>, vector<128x384xbf16>
    %cst_38 = arith.constant dense<0.000000e+00> : vector<16x384xf32>
    %127 = tpu.matmul %125, %126, %cst_38 {dimension_numbers = #tpu.dot_dimension_numbers<[1], [0], [0], [1], [0, 0, 1, 1], [], []>} : vector<16x128xbf16>, vector<128x384xbf16>, vector<16x384xf32> -> vector<16x384xf32>
    %128 = vector.extract_strided_slice %124 {offsets = [0, 0], sizes = [16, 128], strides = [1, 1]} : vector<16x384xf32> to vector<16x128xf32>
    %129 = vector.extract_strided_slice %127 {offsets = [0, 0], sizes = [16, 128], strides = [1, 1]} : vector<16x384xf32> to vector<16x128xf32>
    %130 = arith.addf %128, %129 : vector<16x128xf32>
    %131 = arith.negf %130 : vector<16x128xf32>
    %132 = math.exp %131 : vector<16x128xf32>
    %cst_39 = arith.constant 1.000000e+00 : f32
    %133 = vector.broadcast %cst_39 : f32 to vector<16x128xf32>
    %134 = arith.addf %133, %132 : vector<16x128xf32>
    %135 = arith.divf %133, %134 : vector<16x128xf32>
    %136 = vector.extract_strided_slice %124 {offsets = [0, 128], sizes = [16, 128], strides = [1, 1]} : vector<16x384xf32> to vector<16x128xf32>
    %137 = vector.extract_strided_slice %127 {offsets = [0, 128], sizes = [16, 128], strides = [1, 1]} : vector<16x384xf32> to vector<16x128xf32>
    %138 = arith.addf %136, %137 : vector<16x128xf32>
    %139 = arith.negf %138 : vector<16x128xf32>
    %140 = math.exp %139 : vector<16x128xf32>
    %cst_40 = arith.constant 1.000000e+00 : f32
    %141 = vector.broadcast %cst_40 : f32 to vector<16x128xf32>
    %142 = arith.addf %141, %140 : vector<16x128xf32>
    %143 = arith.divf %141, %142 : vector<16x128xf32>
    %144 = vector.extract_strided_slice %124 {offsets = [0, 256], sizes = [16, 128], strides = [1, 1]} : vector<16x384xf32> to vector<16x128xf32>
    %145 = vector.extract_strided_slice %127 {offsets = [0, 256], sizes = [16, 128], strides = [1, 1]} : vector<16x384xf32> to vector<16x128xf32>
    %146 = arith.addf %145, %5 : vector<16x128xf32>
    %147 = arith.mulf %135, %146 : vector<16x128xf32>
    %148 = arith.addf %144, %147 : vector<16x128xf32>
    %149 = math.tanh %148 : vector<16x128xf32>
    %cst_41 = arith.constant 1.000000e+00 : f32
    %150 = vector.broadcast %cst_41 : f32 to vector<16x128xf32>
    %151 = arith.subf %150, %143 : vector<16x128xf32>
    %152 = arith.mulf %151, %149 : vector<16x128xf32>
    %153 = arith.mulf %143, %116 : vector<16x128xf32>
    %154 = arith.addf %152, %153 : vector<16x128xf32>
    %155 = arith.index_cast %c3_i32 : i32 to index
    %c0_42 = arith.constant 0 : index
    %c0_43 = arith.constant 0 : index
    %156 = vector.load %arg5[%155, %c0_42, %c0_43] : memref<8x16x128xf32, #tpu.memory_space<vmem>>, vector<1x16x128xf32>
    %157 = vector.shape_cast %156 : vector<1x16x128xf32> to vector<16x128xf32>
    %158 = vector.shape_cast %154 : vector<16x128xf32> to vector<1x16x128xf32>
    tpu.vector_store %arg5[%155, %c0_42, %c0_43], %158 {strides = array<i32>} : memref<8x16x128xf32, #tpu.memory_space<vmem>>, vector<1x16x128xf32>,
    %c4_i32 = arith.constant 4 : i32
    %159 = arith.index_cast %c4_i32 : i32 to index
    %c0_44 = arith.constant 0 : index
    %c0_45 = arith.constant 0 : index
    %160 = vector.load %arg2[%159, %c0_44, %c0_45] : memref<8x16x384xbf16, #tpu.memory_space<vmem>>, vector<1x16x384xbf16>
    %161 = vector.shape_cast %160 : vector<1x16x384xbf16> to vector<16x384xbf16>
    %162 = arith.extf %161 : vector<16x384xbf16> to vector<16x384xf32>
    %163 = arith.truncf %154 : vector<16x128xf32> to vector<16x128xbf16>
    %c0_46 = arith.constant 0 : index
    %c0_47 = arith.constant 0 : index
    %164 = vector.load %arg3[%c0_46, %c0_47] : memref<128x384xbf16, #tpu.memory_space<vmem>>, vector<128x384xbf16>
    %cst_48 = arith.constant dense<0.000000e+00> : vector<16x384xf32>
    %165 = tpu.matmul %163, %164, %cst_48 {dimension_numbers = #tpu.dot_dimension_numbers<[1], [0], [0], [1], [0, 0, 1, 1], [], []>} : vector<16x128xbf16>, vector<128x384xbf16>, vector<16x384xf32> -> vector<16x384xf32>
    %166 = vector.extract_strided_slice %162 {offsets = [0, 0], sizes = [16, 128], strides = [1, 1]} : vector<16x384xf32> to vector<16x128xf32>
    %167 = vector.extract_strided_slice %165 {offsets = [0, 0], sizes = [16, 128], strides = [1, 1]} : vector<16x384xf32> to vector<16x128xf32>
    %168 = arith.addf %166, %167 : vector<16x128xf32>
    %169 = arith.negf %168 : vector<16x128xf32>
    %170 = math.exp %169 : vector<16x128xf32>
    %cst_49 = arith.constant 1.000000e+00 : f32
    %171 = vector.broadcast %cst_49 : f32 to vector<16x128xf32>
    %172 = arith.addf %171, %170 : vector<16x128xf32>
    %173 = arith.divf %171, %172 : vector<16x128xf32>
    %174 = vector.extract_strided_slice %162 {offsets = [0, 128], sizes = [16, 128], strides = [1, 1]} : vector<16x384xf32> to vector<16x128xf32>
    %175 = vector.extract_strided_slice %165 {offsets = [0, 128], sizes = [16, 128], strides = [1, 1]} : vector<16x384xf32> to vector<16x128xf32>
    %176 = arith.addf %174, %175 : vector<16x128xf32>
    %177 = arith.negf %176 : vector<16x128xf32>
    %178 = math.exp %177 : vector<16x128xf32>
    %cst_50 = arith.constant 1.000000e+00 : f32
    %179 = vector.broadcast %cst_50 : f32 to vector<16x128xf32>
    %180 = arith.addf %179, %178 : vector<16x128xf32>
    %181 = arith.divf %179, %180 : vector<16x128xf32>
    %182 = vector.extract_strided_slice %162 {offsets = [0, 256], sizes = [16, 128], strides = [1, 1]} : vector<16x384xf32> to vector<16x128xf32>
    %183 = vector.extract_strided_slice %165 {offsets = [0, 256], sizes = [16, 128], strides = [1, 1]} : vector<16x384xf32> to vector<16x128xf32>
    %184 = arith.addf %183, %5 : vector<16x128xf32>
    %185 = arith.mulf %173, %184 : vector<16x128xf32>
    %186 = arith.addf %182, %185 : vector<16x128xf32>
    %187 = math.tanh %186 : vector<16x128xf32>
    %cst_51 = arith.constant 1.000000e+00 : f32
    %188 = vector.broadcast %cst_51 : f32 to vector<16x128xf32>
    %189 = arith.subf %188, %181 : vector<16x128xf32>
    %190 = arith.mulf %189, %187 : vector<16x128xf32>
    %191 = arith.mulf %181, %154 : vector<16x128xf32>
    %192 = arith.addf %190, %191 : vector<16x128xf32>
    %193 = arith.index_cast %c4_i32 : i32 to index
    %c0_52 = arith.constant 0 : index
    %c0_53 = arith.constant 0 : index
    %194 = vector.load %arg5[%193, %c0_52, %c0_53] : memref<8x16x128xf32, #tpu.memory_space<vmem>>, vector<1x16x128xf32>
    %195 = vector.shape_cast %194 : vector<1x16x128xf32> to vector<16x128xf32>
    %196 = vector.shape_cast %192 : vector<16x128xf32> to vector<1x16x128xf32>
    tpu.vector_store %arg5[%193, %c0_52, %c0_53], %196 {strides = array<i32>} : memref<8x16x128xf32, #tpu.memory_space<vmem>>, vector<1x16x128xf32>,
    %c5_i32 = arith.constant 5 : i32
    %197 = arith.index_cast %c5_i32 : i32 to index
    %c0_54 = arith.constant 0 : index
    %c0_55 = arith.constant 0 : index
    %198 = vector.load %arg2[%197, %c0_54, %c0_55] : memref<8x16x384xbf16, #tpu.memory_space<vmem>>, vector<1x16x384xbf16>
    %199 = vector.shape_cast %198 : vector<1x16x384xbf16> to vector<16x384xbf16>
    %200 = arith.extf %199 : vector<16x384xbf16> to vector<16x384xf32>
    %201 = arith.truncf %192 : vector<16x128xf32> to vector<16x128xbf16>
    %c0_56 = arith.constant 0 : index
    %c0_57 = arith.constant 0 : index
    %202 = vector.load %arg3[%c0_56, %c0_57] : memref<128x384xbf16, #tpu.memory_space<vmem>>, vector<128x384xbf16>
    %cst_58 = arith.constant dense<0.000000e+00> : vector<16x384xf32>
    %203 = tpu.matmul %201, %202, %cst_58 {dimension_numbers = #tpu.dot_dimension_numbers<[1], [0], [0], [1], [0, 0, 1, 1], [], []>} : vector<16x128xbf16>, vector<128x384xbf16>, vector<16x384xf32> -> vector<16x384xf32>
    %204 = vector.extract_strided_slice %200 {offsets = [0, 0], sizes = [16, 128], strides = [1, 1]} : vector<16x384xf32> to vector<16x128xf32>
    %205 = vector.extract_strided_slice %203 {offsets = [0, 0], sizes = [16, 128], strides = [1, 1]} : vector<16x384xf32> to vector<16x128xf32>
    %206 = arith.addf %204, %205 : vector<16x128xf32>
    %207 = arith.negf %206 : vector<16x128xf32>
    %208 = math.exp %207 : vector<16x128xf32>
    %cst_59 = arith.constant 1.000000e+00 : f32
    %209 = vector.broadcast %cst_59 : f32 to vector<16x128xf32>
    %210 = arith.addf %209, %208 : vector<16x128xf32>
    %211 = arith.divf %209, %210 : vector<16x128xf32>
    %212 = vector.extract_strided_slice %200 {offsets = [0, 128], sizes = [16, 128], strides = [1, 1]} : vector<16x384xf32> to vector<16x128xf32>
    %213 = vector.extract_strided_slice %203 {offsets = [0, 128], sizes = [16, 128], strides = [1, 1]} : vector<16x384xf32> to vector<16x128xf32>
    %214 = arith.addf %212, %213 : vector<16x128xf32>
    %215 = arith.negf %214 : vector<16x128xf32>
    %216 = math.exp %215 : vector<16x128xf32>
    %cst_60 = arith.constant 1.000000e+00 : f32
    %217 = vector.broadcast %cst_60 : f32 to vector<16x128xf32>
    %218 = arith.addf %217, %216 : vector<16x128xf32>
    %219 = arith.divf %217, %218 : vector<16x128xf32>
    %220 = vector.extract_strided_slice %200 {offsets = [0, 256], sizes = [16, 128], strides = [1, 1]} : vector<16x384xf32> to vector<16x128xf32>
    %221 = vector.extract_strided_slice %203 {offsets = [0, 256], sizes = [16, 128], strides = [1, 1]} : vector<16x384xf32> to vector<16x128xf32>
    %222 = arith.addf %221, %5 : vector<16x128xf32>
    %223 = arith.mulf %211, %222 : vector<16x128xf32>
    %224 = arith.addf %220, %223 : vector<16x128xf32>
    %225 = math.tanh %224 : vector<16x128xf32>
    %cst_61 = arith.constant 1.000000e+00 : f32
    %226 = vector.broadcast %cst_61 : f32 to vector<16x128xf32>
    %227 = arith.subf %226, %219 : vector<16x128xf32>
    %228 = arith.mulf %227, %225 : vector<16x128xf32>
    %229 = arith.mulf %219, %192 : vector<16x128xf32>
    %230 = arith.addf %228, %229 : vector<16x128xf32>
    %231 = arith.index_cast %c5_i32 : i32 to index
    %c0_62 = arith.constant 0 : index
    %c0_63 = arith.constant 0 : index
    %232 = vector.load %arg5[%231, %c0_62, %c0_63] : memref<8x16x128xf32, #tpu.memory_space<vmem>>, vector<1x16x128xf32>
    %233 = vector.shape_cast %232 : vector<1x16x128xf32> to vector<16x128xf32>
    %234 = vector.shape_cast %230 : vector<16x128xf32> to vector<1x16x128xf32>
    tpu.vector_store %arg5[%231, %c0_62, %c0_63], %234 {strides = array<i32>} : memref<8x16x128xf32, #tpu.memory_space<vmem>>, vector<1x16x128xf32>,
    %c6_i32 = arith.constant 6 : i32
    %235 = arith.index_cast %c6_i32 : i32 to index
    %c0_64 = arith.constant 0 : index
    %c0_65 = arith.constant 0 : index
    %236 = vector.load %arg2[%235, %c0_64, %c0_65] : memref<8x16x384xbf16, #tpu.memory_space<vmem>>, vector<1x16x384xbf16>
    %237 = vector.shape_cast %236 : vector<1x16x384xbf16> to vector<16x384xbf16>
    %238 = arith.extf %237 : vector<16x384xbf16> to vector<16x384xf32>
    %239 = arith.truncf %230 : vector<16x128xf32> to vector<16x128xbf16>
    %c0_66 = arith.constant 0 : index
    %c0_67 = arith.constant 0 : index
    %240 = vector.load %arg3[%c0_66, %c0_67] : memref<128x384xbf16, #tpu.memory_space<vmem>>, vector<128x384xbf16>
    %cst_68 = arith.constant dense<0.000000e+00> : vector<16x384xf32>
    %241 = tpu.matmul %239, %240, %cst_68 {dimension_numbers = #tpu.dot_dimension_numbers<[1], [0], [0], [1], [0, 0, 1, 1], [], []>} : vector<16x128xbf16>, vector<128x384xbf16>, vector<16x384xf32> -> vector<16x384xf32>
    %242 = vector.extract_strided_slice %238 {offsets = [0, 0], sizes = [16, 128], strides = [1, 1]} : vector<16x384xf32> to vector<16x128xf32>
    %243 = vector.extract_strided_slice %241 {offsets = [0, 0], sizes = [16, 128], strides = [1, 1]} : vector<16x384xf32> to vector<16x128xf32>
    %244 = arith.addf %242, %243 : vector<16x128xf32>
    %245 = arith.negf %244 : vector<16x128xf32>
    %246 = math.exp %245 : vector<16x128xf32>
    %cst_69 = arith.constant 1.000000e+00 : f32
    %247 = vector.broadcast %cst_69 : f32 to vector<16x128xf32>
    %248 = arith.addf %247, %246 : vector<16x128xf32>
    %249 = arith.divf %247, %248 : vector<16x128xf32>
    %250 = vector.extract_strided_slice %238 {offsets = [0, 128], sizes = [16, 128], strides = [1, 1]} : vector<16x384xf32> to vector<16x128xf32>
    %251 = vector.extract_strided_slice %241 {offsets = [0, 128], sizes = [16, 128], strides = [1, 1]} : vector<16x384xf32> to vector<16x128xf32>
    %252 = arith.addf %250, %251 : vector<16x128xf32>
    %253 = arith.negf %252 : vector<16x128xf32>
    %254 = math.exp %253 : vector<16x128xf32>
    %cst_70 = arith.constant 1.000000e+00 : f32
    %255 = vector.broadcast %cst_70 : f32 to vector<16x128xf32>
    %256 = arith.addf %255, %254 : vector<16x128xf32>
    %257 = arith.divf %255, %256 : vector<16x128xf32>
    %258 = vector.extract_strided_slice %238 {offsets = [0, 256], sizes = [16, 128], strides = [1, 1]} : vector<16x384xf32> to vector<16x128xf32>
    %259 = vector.extract_strided_slice %241 {offsets = [0, 256], sizes = [16, 128], strides = [1, 1]} : vector<16x384xf32> to vector<16x128xf32>
    %260 = arith.addf %259, %5 : vector<16x128xf32>
    %261 = arith.mulf %249, %260 : vector<16x128xf32>
    %262 = arith.addf %258, %261 : vector<16x128xf32>
    %263 = math.tanh %262 : vector<16x128xf32>
    %cst_71 = arith.constant 1.000000e+00 : f32
    %264 = vector.broadcast %cst_71 : f32 to vector<16x128xf32>
    %265 = arith.subf %264, %257 : vector<16x128xf32>
    %266 = arith.mulf %265, %263 : vector<16x128xf32>
    %267 = arith.mulf %257, %230 : vector<16x128xf32>
    %268 = arith.addf %266, %267 : vector<16x128xf32>
    %269 = arith.index_cast %c6_i32 : i32 to index
    %c0_72 = arith.constant 0 : index
    %c0_73 = arith.constant 0 : index
    %270 = vector.load %arg5[%269, %c0_72, %c0_73] : memref<8x16x128xf32, #tpu.memory_space<vmem>>, vector<1x16x128xf32>
    %271 = vector.shape_cast %270 : vector<1x16x128xf32> to vector<16x128xf32>
    %272 = vector.shape_cast %268 : vector<16x128xf32> to vector<1x16x128xf32>
    tpu.vector_store %arg5[%269, %c0_72, %c0_73], %272 {strides = array<i32>} : memref<8x16x128xf32, #tpu.memory_space<vmem>>, vector<1x16x128xf32>,
    %c7_i32 = arith.constant 7 : i32
    %273 = arith.index_cast %c7_i32 : i32 to index
    %c0_74 = arith.constant 0 : index
    %c0_75 = arith.constant 0 : index
    %274 = vector.load %arg2[%273, %c0_74, %c0_75] : memref<8x16x384xbf16, #tpu.memory_space<vmem>>, vector<1x16x384xbf16>
    %275 = vector.shape_cast %274 : vector<1x16x384xbf16> to vector<16x384xbf16>
    %276 = arith.extf %275 : vector<16x384xbf16> to vector<16x384xf32>
    %277 = arith.truncf %268 : vector<16x128xf32> to vector<16x128xbf16>
    %c0_76 = arith.constant 0 : index
    %c0_77 = arith.constant 0 : index
    %278 = vector.load %arg3[%c0_76, %c0_77] : memref<128x384xbf16, #tpu.memory_space<vmem>>, vector<128x384xbf16>
    %cst_78 = arith.constant dense<0.000000e+00> : vector<16x384xf32>
    %279 = tpu.matmul %277, %278, %cst_78 {dimension_numbers = #tpu.dot_dimension_numbers<[1], [0], [0], [1], [0, 0, 1, 1], [], []>} : vector<16x128xbf16>, vector<128x384xbf16>, vector<16x384xf32> -> vector<16x384xf32>
    %280 = vector.extract_strided_slice %276 {offsets = [0, 0], sizes = [16, 128], strides = [1, 1]} : vector<16x384xf32> to vector<16x128xf32>
    %281 = vector.extract_strided_slice %279 {offsets = [0, 0], sizes = [16, 128], strides = [1, 1]} : vector<16x384xf32> to vector<16x128xf32>
    %282 = arith.addf %280, %281 : vector<16x128xf32>
    %283 = arith.negf %282 : vector<16x128xf32>
    %284 = math.exp %283 : vector<16x128xf32>
    %cst_79 = arith.constant 1.000000e+00 : f32
    %285 = vector.broadcast %cst_79 : f32 to vector<16x128xf32>
    %286 = arith.addf %285, %284 : vector<16x128xf32>
    %287 = arith.divf %285, %286 : vector<16x128xf32>
    %288 = vector.extract_strided_slice %276 {offsets = [0, 128], sizes = [16, 128], strides = [1, 1]} : vector<16x384xf32> to vector<16x128xf32>
    %289 = vector.extract_strided_slice %279 {offsets = [0, 128], sizes = [16, 128], strides = [1, 1]} : vector<16x384xf32> to vector<16x128xf32>
    %290 = arith.addf %288, %289 : vector<16x128xf32>
    %291 = arith.negf %290 : vector<16x128xf32>
    %292 = math.exp %291 : vector<16x128xf32>
    %cst_80 = arith.constant 1.000000e+00 : f32
    %293 = vector.broadcast %cst_80 : f32 to vector<16x128xf32>
    %294 = arith.addf %293, %292 : vector<16x128xf32>
    %295 = arith.divf %293, %294 : vector<16x128xf32>
    %296 = vector.extract_strided_slice %276 {offsets = [0, 256], sizes = [16, 128], strides = [1, 1]} : vector<16x384xf32> to vector<16x128xf32>
    %297 = vector.extract_strided_slice %279 {offsets = [0, 256], sizes = [16, 128], strides = [1, 1]} : vector<16x384xf32> to vector<16x128xf32>
    %298 = arith.addf %297, %5 : vector<16x128xf32>
    %299 = arith.mulf %287, %298 : vector<16x128xf32>
    %300 = arith.addf %296, %299 : vector<16x128xf32>
    %301 = math.tanh %300 : vector<16x128xf32>
    %cst_81 = arith.constant 1.000000e+00 : f32
    %302 = vector.broadcast %cst_81 : f32 to vector<16x128xf32>
    %303 = arith.subf %302, %295 : vector<16x128xf32>
    %304 = arith.mulf %303, %301 : vector<16x128xf32>
    %305 = arith.mulf %295, %268 : vector<16x128xf32>
    %306 = arith.addf %304, %305 : vector<16x128xf32>
    %307 = arith.index_cast %c7_i32 : i32 to index
    %c0_82 = arith.constant 0 : index
    %c0_83 = arith.constant 0 : index
    %308 = vector.load %arg5[%307, %c0_82, %c0_83] : memref<8x16x128xf32, #tpu.memory_space<vmem>>, vector<1x16x128xf32>
    %309 = vector.shape_cast %308 : vector<1x16x128xf32> to vector<16x128xf32>
    %310 = vector.shape_cast %306 : vector<16x128xf32> to vector<1x16x128xf32>
    tpu.vector_store %arg5[%307, %c0_82, %c0_83], %310 {strides = array<i32>} : memref<8x16x128xf32, #tpu.memory_space<vmem>>, vector<1x16x128xf32>,
    %c8_i32 = arith.constant 8 : i32
    %c0_84 = arith.constant 0 : index
    %c0_85 = arith.constant 0 : index
    %311 = vector.load %arg7[%c0_84, %c0_85] : memref<16x128xf32, #tpu.memory_space<vmem>>, vector<16x128xf32>
    tpu.vector_store %arg7[%c0_84, %c0_85], %306 {strides = array<i32>} : memref<16x128xf32, #tpu.memory_space<vmem>>, vector<16x128xf32>,
    %c0_86 = arith.constant 0 : index
    %c0_87 = arith.constant 0 : index
    %312 = vector.load %arg6[%c0_86, %c0_87] : memref<16x128xf32, #tpu.memory_space<vmem>>, vector<16x128xf32>
    tpu.vector_store %arg6[%c0_86, %c0_87], %306 {strides = array<i32>} : memref<16x128xf32, #tpu.memory_space<vmem>>, vector<16x128xf32>,
    return
  }
  func.func @transform_0(%arg0: i32, %arg1: i32) -> (i32, i32, i32) {
    %c0_i32 = arith.constant 0 : i32
    %c0_i32_0 = arith.constant 0 : i32
    return %arg1, %arg0, %c0_i32 : i32, i32, i32
  }
  func.func @transform_1(%arg0: i32, %arg1: i32) -> (i32, i32) {
    %c0_i32 = arith.constant 0 : i32
    %c0_i32_0 = arith.constant 0 : i32
    %c0_i32_1 = arith.constant 0 : i32
    return %c0_i32, %c0_i32_0 : i32, i32
  }
  func.func @transform_2(%arg0: i32, %arg1: i32) -> (i32, i32) {
    %c0_i32 = arith.constant 0 : i32
    %c0_i32_0 = arith.constant 0 : i32
    %c0_i32_1 = arith.constant 0 : i32
    return %c0_i32, %c0_i32_0 : i32, i32
  }
  func.func @transform_3(%arg0: i32, %arg1: i32) -> (i32, i32, i32) {
    %c0_i32 = arith.constant 0 : i32
    %c0_i32_0 = arith.constant 0 : i32
    return %arg1, %arg0, %c0_i32 : i32, i32, i32
  }
  func.func @transform_4(%arg0: i32, %arg1: i32) -> (i32, i32) {
    %c0_i32 = arith.constant 0 : i32
    %c0_i32_0 = arith.constant 0 : i32
    return %arg0, %c0_i32 : i32, i32
  }
}

</mosaic_0001>

<bundles_post_ra>
// kernel: encoder_forward.2
= control target key start
LH: loop header
LB: loop body
LE: loop exit
PB: predicated region body
PF: predicated region fallthrough
CT: control target
= control target key end

     0   :  { %v3228_v1 = vmov 0.0   ;;  %v3229_v2 = vmov 0   ;;  %vm3230_vm0 = vmmov 0   ;;  %v3231_v26 = vmov 0.0|0.0   ;;  %s4012_s1 = inlined_call_operand.vmem [shape: bf16[128,384], index: 1, kind: input, shape index: {}]   ;;  %s4013_s0 = inlined_call_operand.vmem [shape: bf16[8,16,384], index: 0, kind: input, shape index: {}]   ;;  %s4014_s2 = inlined_call_operand.vmem [shape: f32[1,128], index: 2, kind: input, shape index: {}]   ;;  %s4015_s3 = inlined_call_operand.vmem [shape: bf16[8,16,128], index: 3, kind: output, shape index: {0}]   ;;  %s4016_s4 = inlined_call_operand.vmem [shape: f32[16,128], index: 4, kind: output, shape index: {1}]  }
   0x1   :  { %v3260_v0 = vld [vmem:[%s4012_s1 + $0x4] ss:$12 sps:$4 sm:$0xff]   ;;  %2791 = vmatprep.subr.bf16.mxu1 %v3228_v1  ;;  %235 = vmatprep.mubr.bf16.mxu0 %v3229_v2  ;;  %v3267_v3 = vld [vmem:[%s4012_s1] ss:$12 sps:$4 sm:$0xff]   ;;  %v3275_v4 = vld [vmem:[%s4012_s1 + $0x1c] ss:$12 sps:$4 sm:$0xff]  }
   0x2   :  { %2807 = vmatprep.mubr.msk.bf16.mxu1 %vm3230_vm0, %v3228_v1  ;;  %203 = vmatprep.subr.bf16.mxu0 %v3260_v0  ;;  %v3281_v5 = vld [vmem:[%s4012_s1 + $0x18] ss:$12 sps:$4 sm:$0xff]   ;;  %v3287_v6 = vld [vmem:[%s4012_s1 + $0x34] ss:$12 sps:$4 sm:$0xff]   ;;  %v3293_v7 = vld [vmem:[%s4012_s1 + $0x30] ss:$12 sps:$4 sm:$0xff]  }
   0x3   :  { %204 = vmatpush1.bf16.msra.mxu0 %v3267_v3  ;;  %v3299_v8 = vld [vmem:[%s4012_s1 + $0x4c] ss:$12 sps:$4 sm:$0xff]   ;;  %v2975_v9 = vld [vmem:[%s4012_s1 + $0x8] ss:$12 sps:$4 sm:$0xff]   ;;  %v3314_v11 = vld [vmem:[%s4012_s1 + $0x64] ss:$12 sps:$4 sm:$0xff]  }
   0x4   :  { %205 = vmatprep.subr.bf16.mxu0 %v3275_v4  ;;  %v3308_v10 = vld [vmem:[%s4012_s1 + $0x48] ss:$12 sps:$4 sm:$0xff]   ;;  %2792 = vmatpush3.bf16.msra.mxu1 %v2975_v9  ;;  %v2979_v12 = vld [vmem:[%s4012_s1 + $0x20] ss:$12 sps:$4 sm:$0xff]   ;;  %v2981_v14 = vld [vmem:[%s4012_s1 + $0x38] ss:$12 sps:$4 sm:$0xff]  }
   0x5   :  { %2793 = vmatprep.subr.bf16.mxu1 %v3228_v1  ;;  %v3323_v13 = vld [vmem:[%s4012_s1 + $0x60] ss:$12 sps:$4 sm:$0xff]   ;;  %v3333_v15 = vld [vmem:[%s4012_s1 + $0x7c] ss:$12 sps:$4 sm:$0xff]   ;;  %v3339_v16 = vld [vmem:[%s4012_s1 + $0x78] ss:$12 sps:$4 sm:$0xff]  }
   0x6   :  { %v3344_v17 = vld [vmem:[%s4012_s1 + $0x94] ss:$12 sps:$4 sm:$0xff]   ;;  %v2982_v18 = vld [vmem:[%s4012_s1 + $0x50] ss:$12 sps:$4 sm:$0xff]   ;;  %v3363_v21 = vld [vmem:[%s4012_s1 + $0xac] ss:$12 sps:$4 sm:$0xff]  }
   0x7   :  { %206 = vmatpush1.bf16.msra.mxu0 %v3281_v5  ;;  %v3355_v19 = vld [vmem:[%s4012_s1 + $0x90] ss:$12 sps:$4 sm:$0xff]   ;;  %v2983_v20 = vld [vmem:[%s4012_s1 + $0x68] ss:$12 sps:$4 sm:$0xff]   ;;  %v2984_v23 = vld [vmem:[%s4012_s1 + $0x80] ss:$12 sps:$4 sm:$0xff]  }
   0x8   :  { %207 = vmatprep.subr.bf16.mxu0 %v3287_v6  ;;  %2794 = vmatpush3.bf16.msra.mxu1 %v2979_v12  ;;  %v3371_v22 = vld [vmem:[%s4012_s1 + $0xa8] ss:$12 sps:$4 sm:$0xff]   ;;  %v2985_v24 = vld [vmem:[%s4012_s1 + $0x98] ss:$12 sps:$4 sm:$0xff]   ;;  %v2986_v25 = vld [vmem:[%s4012_s1 + $0xb0] ss:$12 sps:$4 sm:$0xff]  }
   0x9   :  { %2795 = vmatprep.subr.bf16.mxu1 %v3228_v1  ;;  %v2987_v27 = vld [vmem:[%s4012_s1 + $0x8] ss:$12 sps:$4 sm:$0xff]   ;;  %v2988_v28 = vld [vmem:[%s4012_s1 + $0x20] ss:$12 sps:$4 sm:$0xff]   ;;  %v2989_v29 = vld [vmem:[%s4012_s1 + $0x38] ss:$12 sps:$4 sm:$0xff]  }
   0xa   :  { %v2990_v30 = vld [vmem:[%s4012_s1 + $0x50] ss:$12 sps:$4 sm:$0xff]   ;;  %v2991_v31 = vld [vmem:[%s4012_s1 + $0x68] ss:$12 sps:$4 sm:$0xff]   ;;  %v2992_v32 = vld [vmem:[%s4012_s1 + $0x80] ss:$12 sps:$4 sm:$0xff]  }
   0xb   :  { %208 = vmatpush1.bf16.msra.mxu0 %v3293_v7  ;;  %v2993_v33 = vld [vmem:[%s4012_s1 + $0x98] ss:$12 sps:$4 sm:$0xff]   ;;  %v2994_v34 = vld [vmem:[%s4012_s1 + $0xb0] ss:$12 sps:$4 sm:$0xff]   ;;  %v3450_v62 = vld [vmem:[%s4014_s2] ss:$0 sm:$0xff] }
   0xc   :  { %209 = vmatprep.subr.bf16.mxu0 %v3299_v8  ;;  %2796 = vmatpush3.bf16.msra.mxu1 %v2981_v14  ;;  %v32_v35 = vld [vmem:[%s4013_s0] sm:$0xff]  ;;  %v34_v36 = vld [vmem:[%s4013_s0 + $0xc] sm:$0xff]  ;;  %v33_v9 = vld [vmem:[%s4013_s0 + $0x8] ss:$12 sps:$4 sm:$0xff]  }
   0xd   :  { %2797 = vmatprep.subr.bf16.mxu1 %v3228_v1  ;;  %v36_v37 = vunpack.c.l.bf16 %v32_v35  ;;  %v39_v38 = vunpack.c.l.bf16 %v34_v36  ;;  %v37_v40 = vunpack.c.h.bf16 %v32_v35  ;;  %v40_v44 = vunpack.c.h.bf16 %v34_v36 }
   0xf   :  { %210 = vmatpush1.bf16.msra.mxu0 %v3308_v10 }
  0x10   :  { %211 = vmatprep.subr.bf16.mxu0 %v3314_v11  ;;  %2798 = vmatpush3.bf16.msra.mxu1 %v2982_v18 }
  0x11   :  { %2799 = vmatprep.subr.bf16.mxu1 %v3228_v1 }
  0x13   :  { %212 = vmatpush1.bf16.msra.mxu0 %v3323_v13 }
  0x14   :  { %213 = vmatprep.subr.bf16.mxu0 %v3333_v15  ;;  %2800 = vmatpush3.bf16.msra.mxu1 %v2983_v20  ;;  %v38_v20 = vunpack.c.l.bf16 %v33_v9 }
  0x15   :  { %2801 = vmatprep.subr.bf16.mxu1 %v3228_v1 }
  0x17   :  { %214 = vmatpush1.bf16.msra.mxu0 %v3339_v16 }
  0x18   :  { %215 = vmatprep.subr.bf16.mxu0 %v3344_v17  ;;  %2802 = vmatpush3.bf16.msra.mxu1 %v2984_v23 }
  0x19   :  { %2803 = vmatprep.subr.bf16.mxu1 %v3228_v1 }
  0x1b   :  { %216 = vmatpush1.bf16.msra.mxu0 %v3355_v19 }
  0x1c   :  { %217 = vmatprep.subr.bf16.mxu0 %v3363_v21  ;;  %2804 = vmatpush3.bf16.msra.mxu1 %v2985_v24 }
  0x1d   :  { %2805 = vmatprep.subr.bf16.mxu1 %v3228_v1 }
  0x1f   :  { %218 = vmatpush1.bf16.msra.mxu0 %v3371_v22 }
  0x20   :  { %504 = vmatprep.subr.bf16.mxu0 %v3260_v0  ;;  %2806 = vmatpush3.bf16.msra.mxu1 %v2986_v25  ;;  %v41_v25 = vunpack.c.h.bf16 %v33_v9 }
  0x21   :  { %2811 = vmatprep.subr.bf16.mxu1 %v3228_v1 }
  0x22   :  { %236 = vmatmul.mubr.bf16.vlgmr.msra.gmra.mrb[0].mxu0 %v3231_v26 }
  0x23   :  { %505 = vmatpush1.bf16.msra.mxu0 %v3267_v3  ;;  %536 = vmatprep.mubr.bf16.mxu0 %v3229_v2 }
  0x24   :  { %506 = vmatprep.subr.bf16.mxu0 %v3275_v4  ;;  %2808 = vmatmul.mubr.bf16.vlgmr.msra.gmra.mrb[0].mxu1 %v3231_v26 }
  0x25   :  { %2827 = vmatprep.mubr.msk.bf16.mxu1 %vm3230_vm0, %v3228_v1  ;;  %2812 = vmatpush3.bf16.msra.mxu1 %v2987_v27 }
  0x26   :  { %2813 = vmatprep.subr.bf16.mxu1 %v3228_v1 }
  0x27   :  { %507 = vmatpush1.bf16.msra.mxu0 %v3281_v5 }
  0x28   :  { %508 = vmatprep.subr.bf16.mxu0 %v3287_v6 }
  0x29   :  { %2814 = vmatpush3.bf16.msra.mxu1 %v2988_v28 }
  0x2a   :  { %2815 = vmatprep.subr.bf16.mxu1 %v3228_v1 }
  0x2b   :  { %509 = vmatpush1.bf16.msra.mxu0 %v3293_v7 }
  0x2c   :  { %510 = vmatprep.subr.bf16.mxu0 %v3299_v8 }
  0x2d   :  { %2816 = vmatpush3.bf16.msra.mxu1 %v2989_v29 }
  0x2e   :  { %2817 = vmatprep.subr.bf16.mxu1 %v3228_v1 }
  0x2f   :  { %511 = vmatpush1.bf16.msra.mxu0 %v3308_v10 }
  0x30   :  { %512 = vmatprep.subr.bf16.mxu0 %v3314_v11 }
  0x31   :  { %2818 = vmatpush3.bf16.msra.mxu1 %v2990_v30 }
  0x32   :  { %2819 = vmatprep.subr.bf16.mxu1 %v3228_v1 }
  0x33   :  { %513 = vmatpush1.bf16.msra.mxu0 %v3323_v13 }
  0x34   :  { %514 = vmatprep.subr.bf16.mxu0 %v3333_v15 }
  0x35   :  { %2820 = vmatpush3.bf16.msra.mxu1 %v2991_v31 }
  0x36   :  { %2821 = vmatprep.subr.bf16.mxu1 %v3228_v1 }
  0x37   :  { %515 = vmatpush1.bf16.msra.mxu0 %v3339_v16 }
  0x38   :  { %516 = vmatprep.subr.bf16.mxu0 %v3344_v17 }
  0x39   :  { %2822 = vmatpush3.bf16.msra.mxu1 %v2992_v32 }
  0x3a   :  { %2823 = vmatprep.subr.bf16.mxu1 %v3228_v1 }
  0x3b   :  { %517 = vmatpush1.bf16.msra.mxu0 %v3355_v19 }
  0x3c   :  { %518 = vmatprep.subr.bf16.mxu0 %v3363_v21 }
  0x3d   :  { %2824 = vmatpush3.bf16.msra.mxu1 %v2993_v33 }
  0x3e   :  { %2825 = vmatprep.subr.bf16.mxu1 %v3228_v1 }
  0x3f   :  { %519 = vmatpush1.bf16.msra.mxu0 %v3371_v22 }
  0x40   :  { %806 = vmatprep.subr.bf16.mxu0 %v3260_v0 }
  0x41   :  { %2826 = vmatpush3.bf16.msra.mxu1 %v2994_v34 }
  0x42   :  { %2831 = vmatprep.subr.bf16.mxu1 %v3228_v1 }
  0xf5   :  { %v237_v39 = vpop.f32.mrb[0].mxu0 }
  0xf6   :  { %v287_v41 = vadd.f32 %v237_v39, %v36_v37  ;;  %v239_v42 = vpop.f32.mrb[1].mxu0 }
  0xf7   :  { %v241_v43 = vpop.f32.mrb[2].mxu0  ;;  %v301_v48 = vadd.f32 %v239_v42, %v37_v40  ;;  %v280_v52 = vpop.f32.mrb[0].mxu1 }
  0xf8   :  { %v2484_v45 = vmul.f32 -1.442695, %v287_v41  ;;  %v288_v46 = vadd.f32 %v241_v43, %v39_v38  ;;  %v243_v47 = vpop.f32.mrb[3].mxu0  ;;  %v2809_v53 = vpop.f32.mrb[1].mxu1  ;;  %v315_v14 = vadd.f32 %v3450_v62, %v280_v52  ;;  %v2490_v52 = vld [vmem:[%s4013_s0 + $0x24] sm:$0xff] }
  0xf9   :  { %v302_v50 = vadd.f32 %v243_v47, %v40_v44  ;;  %v2486_v51 = vmul.f32 -1.442695, %v301_v48  ;;  %v283_v55 = vpop.f32.mrb[2].mxu1  ;;  %v2995_v44 = vld [vmem:[%s4012_s1 + $0x8] ss:$12 sps:$4 sm:$0xff]   ;;  %v342_v9 = vunpack.c.h.bf16 %v2490_v52 }
  0xfa   :  { %3067 = vpow2.f32 %v2484_v45  ;;  %v2485_v49 = vmul.f32 -1.442695, %v288_v46  ;;  %v2810_v56 = vpop.f32.mrb[3].mxu1  ;;  %v316_v26 = vadd.f32 %v3450_v62, %v283_v55  ;;  %v2996_v45 = vld [vmem:[%s4012_s1 + $0x20] ss:$12 sps:$4 sm:$0xff]  }
  0xfb   :  { %v2487_v54 = vmul.f32 -1.442695, %v302_v50  ;;  %v2997_v46 = vld [vmem:[%s4012_s1 + $0x38] ss:$12 sps:$4 sm:$0xff]   ;;  %v2999_v47 = vld [vmem:[%s4012_s1 + $0x68] ss:$12 sps:$4 sm:$0xff]  }
  0xfc   :  { %3069 = vpow2.f32 %v2485_v49  ;;  %v3000_v48 = vld [vmem:[%s4012_s1 + $0x80] ss:$12 sps:$4 sm:$0xff]   ;;  %v3001_v49 = vld [vmem:[%s4012_s1 + $0x98] ss:$12 sps:$4 sm:$0xff]   ;;  %v3002_v50 = vld [vmem:[%s4012_s1 + $0xb0] ss:$12 sps:$4 sm:$0xff]  }
  0xfd   :  { %3071 = vpow2.f32 %v2486_v51  ;;  %v2488_v51 = vld [vmem:[%s4013_s0 + $0x18] sm:$0xff] }
  0xfe   :  { %3073 = vpow2.f32 %v2487_v54  ;;  %v338_v53 = vunpack.c.l.bf16 %v2488_v51  ;;  %v341_v54 = vunpack.c.l.bf16 %v2490_v52 }
 0x104   :  { %v3068_v57 = vpop.eup %3067 }
 0x105   :  { %v295_v58 = vadd.f32 1.0, %v3068_v57  ;;  %v339_v57 = vunpack.c.h.bf16 %v2488_v51 }
 0x106   :  { %v3070_v59 = vpop.eup %3069 }
 0x107   :  { %3075 = vrcp.f32 %v295_v58  ;;  %v296_v60 = vadd.f32 1.0, %v3070_v59  ;;  %v3072_v61 = vpop.eup %3071 }
 0x108   :  { %v3074_v63 = vpop.eup %3073  ;;  %v309_v12 = vadd.f32 1.0, %v3072_v61 }
 0x109   :  { %3077 = vrcp.f32 %v296_v60  ;;  %v310_v18 = vadd.f32 1.0, %v3074_v63 }
 0x10a   :  { %3079 = vrcp.f32 %v309_v12 }
 0x10b   :  { %3081 = vrcp.f32 %v310_v18 }
 0x111   :  { %v3076_v23 = vpop.eup %3075 }
 0x112   :  { %v317_v24 = vmul.f32 %v3076_v23, %v315_v14 }
 0x113   :  { %v3078_v27 = vpop.eup %3077 }
 0x114   :  { %v319_v28 = vadd.f32 %v317_v24, %v38_v20  ;;  %v318_v29 = vmul.f32 %v3078_v27, %v316_v26  ;;  %v3080_v31 = vpop.eup %3079 }
 0x115   :  { %v3082_v32 = vpop.eup %3081  ;;  %v323_v33 = vsub.f32 1.0, %v3080_v31  ;;  %v327_v37 = vmul.f32 0.0, %v3080_v31 }
 0x116   :  { %3083 = vtanh.f32 %v319_v28  ;;  %v320_v30 = vadd.f32 %v318_v29, %v41_v25  ;;  %v324_v35 = vsub.f32 1.0, %v3082_v32  ;;  %v328_v40 = vmul.f32 0.0, %v3082_v32 }
 0x118   :  { %3085 = vtanh.f32 %v320_v30 }
 0x120   :  { %v3084_v34 = vpop.eup %3083 }
 0x121   :  { %v325_v36 = vmul.f32 %v3084_v34, %v323_v33  ;;  %v2489_v34 = vld [vmem:[%s4013_s0 + $0x20] ss:$12 sps:$4 sm:$0xff]  }
 0x122   :  { %v3086_v38 = vpop.eup %3085 }
 0x123   :  { %v326_v39 = vmul.f32 %v3086_v38, %v324_v35  ;;  %v3457_v41 = vadd.f32 %v327_v37, %v325_v36  ;;  %v340_v36 = vunpack.c.l.bf16 %v2489_v34 }
 0x125   :  { %v3459_v42 = vadd.f32 %v328_v40, %v326_v39 }
 0x127   :  { %v331_v43 = vpack.c.bf16 %v3459_v42, %v3457_v41 }
 0x129   :  { %332 = vst [vmem:[%s4015_s3] sm:$0xff] %v331_v43  ;;  %537 = vmatmul.mubr.bf16.vlgmr.msra.gmra.mrb[4].mxu0 %v331_v43  ;;  %2828 = vmatmul.mubr.bf16.vlgmr.msra.gmra.mrb[4].mxu1 %v331_v43  ;;  %v343_v43 = vunpack.c.h.bf16 %v2489_v34 }
 0x12a   :  { %807 = vmatpush1.bf16.msra.mxu0 %v3267_v3  ;;  %838 = vmatprep.mubr.bf16.mxu0 %v3229_v2 }
 0x12b   :  { %808 = vmatprep.subr.bf16.mxu0 %v3275_v4  ;;  %2847 = vmatprep.mubr.msk.bf16.mxu1 %vm3230_vm0, %v3228_v1 }
 0x12c   :  { %2832 = vmatpush3.bf16.msra.mxu1 %v2995_v44 }
 0x12d   :  { %2833 = vmatprep.subr.bf16.mxu1 %v3228_v1 }
 0x12e   :  { %809 = vmatpush1.bf16.msra.mxu0 %v3281_v5 }
 0x12f   :  { %810 = vmatprep.subr.bf16.mxu0 %v3287_v6 }
 0x130   :  { %2834 = vmatpush3.bf16.msra.mxu1 %v2996_v45 }
 0x131   :  { %2835 = vmatprep.subr.bf16.mxu1 %v3228_v1 }
 0x132   :  { %811 = vmatpush1.bf16.msra.mxu0 %v3293_v7 }
 0x133   :  { %812 = vmatprep.subr.bf16.mxu0 %v3299_v8 }
 0x134   :  { %2836 = vmatpush3.bf16.msra.mxu1 %v2997_v46 }
 0x135   :  { %2837 = vmatprep.subr.bf16.mxu1 %v3228_v1 }
 0x136   :  { %813 = vmatpush1.bf16.msra.mxu0 %v3308_v10 }
 0x137   :  { %814 = vmatprep.subr.bf16.mxu0 %v3314_v11 }
 0x13a   :  { %815 = vmatpush1.bf16.msra.mxu0 %v3323_v13 }
 0x13b   :  { %816 = vmatprep.subr.bf16.mxu0 %v3333_v15 }
 0x13e   :  { %817 = vmatpush1.bf16.msra.mxu0 %v3339_v16 }
 0x13f   :  { %818 = vmatprep.subr.bf16.mxu0 %v3344_v17 }
 0x142   :  { %819 = vmatpush1.bf16.msra.mxu0 %v3355_v19 }
 0x143   :  { %820 = vmatprep.subr.bf16.mxu0 %v3363_v21 }
 0x146   :  { %821 = vmatpush1.bf16.msra.mxu0 %v3371_v22 }
 0x147   :  { %1108 = vmatprep.subr.bf16.mxu0 %v3260_v0  ;;  %v2998_v0 = vld [vmem:[%s4012_s1 + $0x50] ss:$12 sps:$4 sm:$0xff]  }
 0x148   :  { %2838 = vmatpush3.bf16.msra.mxu1 %v2998_v0 }
 0x149   :  { %2839 = vmatprep.subr.bf16.mxu1 %v3228_v1 }
 0x14c   :  { %2840 = vmatpush3.bf16.msra.mxu1 %v2999_v47 }
 0x14d   :  { %2841 = vmatprep.subr.bf16.mxu1 %v3228_v1 }
 0x150   :  { %2842 = vmatpush3.bf16.msra.mxu1 %v3000_v48 }
 0x151   :  { %2843 = vmatprep.subr.bf16.mxu1 %v3228_v1 }
 0x154   :  { %2844 = vmatpush3.bf16.msra.mxu1 %v3001_v49 }
 0x155   :  { %2845 = vmatprep.subr.bf16.mxu1 %v3228_v1 }
 0x158   :  { %2846 = vmatpush3.bf16.msra.mxu1 %v3002_v50 }
 0x159   :  { %2851 = vmatprep.subr.bf16.mxu1 %v3228_v1 }
 0x1fc   :  { %v538_v55 = vpop.f32.mrb[4].mxu0  ;;  %v581_v56 = vpop.f32.mrb[4].mxu1 }
 0x1fd   :  { %v588_v58 = vadd.f32 %v538_v55, %v338_v53  ;;  %v540_v59 = vpop.f32.mrb[5].mxu0  ;;  %v2829_v60 = vpop.f32.mrb[5].mxu1  ;;  %v616_v37 = vadd.f32 %v3450_v62, %v581_v56 }
 0x1fe   :  { %v542_v61 = vpop.f32.mrb[6].mxu0  ;;  %v584_v63 = vpop.f32.mrb[6].mxu1  ;;  %v602_v23 = vadd.f32 %v540_v59, %v339_v57 }
 0x1ff   :  { %v2516_v12 = vmul.f32 -1.442695, %v588_v58  ;;  %v589_v14 = vadd.f32 %v542_v61, %v341_v54  ;;  %v544_v18 = vpop.f32.mrb[7].mxu0  ;;  %v2830_v20 = vpop.f32.mrb[7].mxu1  ;;  %v617_v44 = vadd.f32 %v3450_v62, %v584_v63 }
 0x200   :  { %v603_v25 = vadd.f32 %v544_v18, %v342_v9  ;;  %v2518_v26 = vmul.f32 -1.442695, %v602_v23 }
 0x201   :  { %3087 = vpow2.f32 %v2516_v12  ;;  %v2517_v24 = vmul.f32 -1.442695, %v589_v14 }
 0x202   :  { %v2519_v27 = vmul.f32 -1.442695, %v603_v25 }
 0x203   :  { %3089 = vpow2.f32 %v2517_v24 }
 0x204   :  { %3091 = vpow2.f32 %v2518_v26 }
 0x205   :  { %3093 = vpow2.f32 %v2519_v27 }
 0x20b   :  { %v3088_v28 = vpop.eup %3087 }
 0x20c   :  { %v596_v29 = vadd.f32 1.0, %v3088_v28 }
 0x20d   :  { %v3090_v30 = vpop.eup %3089 }
 0x20e   :  { %3095 = vrcp.f32 %v596_v29  ;;  %v597_v31 = vadd.f32 1.0, %v3090_v30  ;;  %v3092_v32 = vpop.eup %3091 }
 0x20f   :  { %v3094_v33 = vpop.eup %3093  ;;  %v610_v35 = vadd.f32 1.0, %v3092_v32 }
 0x210   :  { %3097 = vrcp.f32 %v597_v31  ;;  %v611_v38 = vadd.f32 1.0, %v3094_v33 }
 0x211   :  { %3099 = vrcp.f32 %v610_v35  ;;  %v2522_v35 = vld [vmem:[%s4013_s0 + $0x38] ss:$12 sps:$4 sm:$0xff]  }
 0x212   :  { %3101 = vrcp.f32 %v611_v38 }
 0x218   :  { %v3096_v39 = vpop.eup %3095 }
 0x219   :  { %v618_v40 = vmul.f32 %v3096_v39, %v616_v37  ;;  %v642_v37 = vunpack.c.l.bf16 %v2522_v35 }
 0x21a   :  { %v3098_v45 = vpop.eup %3097 }
 0x21b   :  { %v620_v46 = vadd.f32 %v618_v40, %v340_v36  ;;  %v619_v0 = vmul.f32 %v3098_v45, %v617_v44  ;;  %v3100_v48 = vpop.eup %3099  ;;  %v645_v44 = vunpack.c.h.bf16 %v2522_v35 }
 0x21c   :  { %v3102_v49 = vpop.eup %3101  ;;  %v624_v50 = vsub.f32 1.0, %v3100_v48  ;;  %v628_v54 = vmul.f32 %v3100_v48, %v3457_v41 }
 0x21d   :  { %3103 = vtanh.f32 %v620_v46  ;;  %v621_v47 = vadd.f32 %v619_v0, %v343_v43  ;;  %v625_v52 = vsub.f32 1.0, %v3102_v49  ;;  %v629_v57 = vmul.f32 %v3102_v49, %v3459_v42 }
 0x21f   :  { %3105 = vtanh.f32 %v621_v47 }
 0x227   :  { %v3104_v51 = vpop.eup %3103 }
 0x228   :  { %v626_v53 = vmul.f32 %v3104_v51, %v624_v50 }
 0x229   :  { %v3106_v55 = vpop.eup %3105 }
 0x22a   :  { %v627_v56 = vmul.f32 %v3106_v55, %v625_v52  ;;  %v3530_v58 = vadd.f32 %v628_v54, %v626_v53 }
 0x22c   :  { %v3532_v59 = vadd.f32 %v629_v57, %v627_v56 }
 0x22e   :  { %v632_v60 = vpack.c.bf16 %v3532_v59, %v3530_v58 }
 0x230   :  { %2520 = vst [vmem:[%s4015_s3 + $0x8] sm:$0xff] %v632_v60  ;;  %839 = vmatmul.mubr.bf16.vlgmr.msra.gmra.mrb[8].mxu0 %v632_v60  ;;  %2848 = vmatmul.mubr.bf16.vlgmr.msra.gmra.mrb[8].mxu1 %v632_v60 }
 0x231   :  { %1109 = vmatpush1.bf16.msra.mxu0 %v3267_v3  ;;  %1140 = vmatprep.mubr.bf16.mxu0 %v3229_v2  ;;  %v3003_v3 = vld [vmem:[%s4012_s1 + $0x8] ss:$12 sps:$4 sm:$0xff]  }
 0x232   :  { %1110 = vmatprep.subr.bf16.mxu0 %v3275_v4  ;;  %2867 = vmatprep.mubr.msk.bf16.mxu1 %vm3230_vm0, %v3228_v1  ;;  %v3004_v4 = vld [vmem:[%s4012_s1 + $0x20] ss:$12 sps:$4 sm:$0xff]  }
 0x233   :  { %2852 = vmatpush3.bf16.msra.mxu1 %v3003_v3 }
 0x234   :  { %2853 = vmatprep.subr.bf16.mxu1 %v3228_v1 }
 0x235   :  { %1111 = vmatpush1.bf16.msra.mxu0 %v3281_v5  ;;  %v3005_v5 = vld [vmem:[%s4012_s1 + $0x38] ss:$12 sps:$4 sm:$0xff]  }
 0x236   :  { %1112 = vmatprep.subr.bf16.mxu0 %v3287_v6  ;;  %v3006_v6 = vld [vmem:[%s4012_s1 + $0x50] ss:$12 sps:$4 sm:$0xff]  }
 0x237   :  { %2854 = vmatpush3.bf16.msra.mxu1 %v3004_v4 }
 0x238   :  { %2855 = vmatprep.subr.bf16.mxu1 %v3228_v1 }
 0x239   :  { %1113 = vmatpush1.bf16.msra.mxu0 %v3293_v7  ;;  %v3007_v7 = vld [vmem:[%s4012_s1 + $0x68] ss:$12 sps:$4 sm:$0xff]  }
 0x23a   :  { %1114 = vmatprep.subr.bf16.mxu0 %v3299_v8  ;;  %v3008_v8 = vld [vmem:[%s4012_s1 + $0x80] ss:$12 sps:$4 sm:$0xff]  }
 0x23b   :  { %2856 = vmatpush3.bf16.msra.mxu1 %v3005_v5 }
 0x23c   :  { %2857 = vmatprep.subr.bf16.mxu1 %v3228_v1 }
 0x23d   :  { %1115 = vmatpush1.bf16.msra.mxu0 %v3308_v10  ;;  %v3009_v10 = vld [vmem:[%s4012_s1 + $0x98] ss:$12 sps:$4 sm:$0xff]  }
 0x23e   :  { %1116 = vmatprep.subr.bf16.mxu0 %v3314_v11  ;;  %v3010_v11 = vld [vmem:[%s4012_s1 + $0xb0] ss:$12 sps:$4 sm:$0xff]  }
 0x23f   :  { %2858 = vmatpush3.bf16.msra.mxu1 %v3006_v6  ;;  %v3014_v6 = vld [vmem:[%s4012_s1 + $0x8] ss:$12 sps:$4 sm:$0xff]  }
 0x240   :  { %2859 = vmatprep.subr.bf16.mxu1 %v3228_v1 }
 0x241   :  { %1117 = vmatpush1.bf16.msra.mxu0 %v3323_v13  ;;  %v2521_v13 = vld [vmem:[%s4013_s0 + $0x30] sm:$0xff] }
 0x242   :  { %1118 = vmatprep.subr.bf16.mxu0 %v3333_v15  ;;  %v2523_v15 = vld [vmem:[%s4013_s0 + $0x3c] sm:$0xff] }
 0x243   :  { %2860 = vmatpush3.bf16.msra.mxu1 %v3007_v7  ;;  %v644_v12 = vunpack.c.h.bf16 %v2523_v15  ;;  %v3632_v7 = vld [vmem:[%s4012_s1 + $0x1c] ss:$12 sps:$4 sm:$0xff]  }
 0x244   :  { %2861 = vmatprep.subr.bf16.mxu1 %v3228_v1 }
 0x245   :  { %1119 = vmatpush1.bf16.msra.mxu0 %v3339_v16  ;;  %v640_v16 = vunpack.c.l.bf16 %v2521_v13 }
 0x246   :  { %1120 = vmatprep.subr.bf16.mxu0 %v3344_v17  ;;  %v643_v17 = vunpack.c.l.bf16 %v2523_v15  ;;  %v3022_v15 = vld [vmem:[%s4012_s1 + $0x38] ss:$12 sps:$4 sm:$0xff]  }
 0x247   :  { %2862 = vmatpush3.bf16.msra.mxu1 %v3008_v8  ;;  %v3638_v8 = vld [vmem:[%s4012_s1 + $0x18] ss:$12 sps:$4 sm:$0xff]  }
 0x248   :  { %2863 = vmatprep.subr.bf16.mxu1 %v3228_v1 }
 0x249   :  { %1121 = vmatpush1.bf16.msra.mxu0 %v3355_v19 }
 0x24a   :  { %1122 = vmatprep.subr.bf16.mxu0 %v3363_v21 }
 0x24b   :  { %2864 = vmatpush3.bf16.msra.mxu1 %v3009_v10  ;;  %v3018_v10 = vld [vmem:[%s4012_s1 + $0x20] ss:$12 sps:$4 sm:$0xff]  }
 0x24c   :  { %2865 = vmatprep.subr.bf16.mxu1 %v3228_v1 }
 0x24d   :  { %1123 = vmatpush1.bf16.msra.mxu0 %v3371_v22  ;;  %v641_v22 = vunpack.c.h.bf16 %v2521_v13  ;;  %v3654_v13 = vld [vmem:[%s4012_s1 + $0x30] ss:$12 sps:$4 sm:$0xff]  }
 0x24f   :  { %2866 = vmatpush3.bf16.msra.mxu1 %v3010_v11  ;;  %v3648_v11 = vld [vmem:[%s4012_s1 + $0x34] ss:$12 sps:$4 sm:$0xff]  }
 0x250   :  { %2871 = vmatprep.subr.bf16.mxu1 %v3228_v1 }
 0x303   :  { %v840_v19 = vpop.f32.mrb[8].mxu0  ;;  %v883_v21 = vpop.f32.mrb[8].mxu1 }
 0x304   :  { %v890_v41 = vadd.f32 %v840_v19, %v640_v16  ;;  %v842_v42 = vpop.f32.mrb[9].mxu0  ;;  %v2849_v61 = vpop.f32.mrb[9].mxu1  ;;  %v918_v38 = vadd.f32 %v3450_v62, %v883_v21  ;;  %v3664_v16 = vld [vmem:[%s4012_s1 + $0x4c] ss:$12 sps:$4 sm:$0xff]   ;;  %v3026_v19 = vld [vmem:[%s4012_s1 + $0x50] ss:$12 sps:$4 sm:$0xff]  }
 0x305   :  { %v844_v63 = vpop.f32.mrb[10].mxu0  ;;  %v886_v9 = vpop.f32.mrb[10].mxu1  ;;  %v904_v24 = vadd.f32 %v842_v42, %v641_v22  ;;  %v3680_v21 = vld [vmem:[%s4012_s1 + $0x64] ss:$12 sps:$4 sm:$0xff]   ;;  %v3686_v22 = vld [vmem:[%s4012_s1 + $0x60] ss:$12 sps:$4 sm:$0xff]  }
 0x306   :  { %v2549_v14 = vmul.f32 -1.442695, %v890_v41  ;;  %v891_v18 = vadd.f32 %v844_v63, %v643_v17  ;;  %v846_v20 = vpop.f32.mrb[11].mxu0  ;;  %v2850_v23 = vpop.f32.mrb[11].mxu1  ;;  %v919_v45 = vadd.f32 %v3450_v62, %v886_v9  ;;  %v3670_v17 = vld [vmem:[%s4012_s1 + $0x48] ss:$12 sps:$4 sm:$0xff]  }
 0x307   :  { %v905_v26 = vadd.f32 %v846_v20, %v644_v12  ;;  %v2551_v27 = vmul.f32 -1.442695, %v904_v24  ;;  %v3030_v41 = vld [vmem:[%s4012_s1 + $0x68] ss:$12 sps:$4 sm:$0xff]   ;;  %v3701_v61 = vld [vmem:[%s4012_s1 + $0x78] ss:$12 sps:$4 sm:$0xff]  }
 0x308   :  { %3107 = vpow2.f32 %v2549_v14  ;;  %v2550_v25 = vmul.f32 -1.442695, %v891_v18  ;;  %v3695_v42 = vld [vmem:[%s4012_s1 + $0x7c] ss:$12 sps:$4 sm:$0xff]   ;;  %v3034_v63 = vld [vmem:[%s4012_s1 + $0x80] ss:$12 sps:$4 sm:$0xff]  }
 0x309   :  { %v2552_v28 = vmul.f32 -1.442695, %v905_v26  ;;  %v3711_v9 = vld [vmem:[%s4012_s1 + $0x94] ss:$12 sps:$4 sm:$0xff]   ;;  %v3717_v12 = vld [vmem:[%s4012_s1 + $0x90] ss:$12 sps:$4 sm:$0xff]  }
 0x30a   :  { %3109 = vpow2.f32 %v2550_v25  ;;  %v3038_v14 = vld [vmem:[%s4012_s1 + $0x98] ss:$12 sps:$4 sm:$0xff]   ;;  %v3733_v20 = vld [vmem:[%s4012_s1 + $0xa8] ss:$12 sps:$4 sm:$0xff]   ;;  %v3042_v23 = vld [vmem:[%s4012_s1 + $0xb0] ss:$12 sps:$4 sm:$0xff]  }
 0x30b   :  { %3111 = vpow2.f32 %v2551_v27  ;;  %v3727_v18 = vld [vmem:[%s4012_s1 + $0xac] ss:$12 sps:$4 sm:$0xff]  }
 0x30c   :  { %3113 = vpow2.f32 %v2552_v28  ;;  %v2554_v24 = vld [vmem:[%s4013_s0 + $0x48] sm:$0xff]  ;;  %v2556_v25 = vld [vmem:[%s4013_s0 + $0x54] sm:$0xff] }
 0x30d   :  { %v942_v26 = vunpack.c.l.bf16 %v2554_v24  ;;  %v945_v27 = vunpack.c.l.bf16 %v2556_v25 }
 0x312   :  { %v3108_v29 = vpop.eup %3107 }
 0x313   :  { %v898_v30 = vadd.f32 1.0, %v3108_v29 }
 0x314   :  { %v3110_v31 = vpop.eup %3109 }
 0x315   :  { %3115 = vrcp.f32 %v898_v30  ;;  %v899_v32 = vadd.f32 1.0, %v3110_v31  ;;  %v3112_v33 = vpop.eup %3111  ;;  %v943_v30 = vunpack.c.h.bf16 %v2554_v24 }
 0x316   :  { %v3114_v34 = vpop.eup %3113  ;;  %v912_v36 = vadd.f32 1.0, %v3112_v33 }
 0x317   :  { %3117 = vrcp.f32 %v899_v32  ;;  %v913_v39 = vadd.f32 1.0, %v3114_v34 }
 0x318   :  { %3119 = vrcp.f32 %v912_v36  ;;  %v946_v36 = vunpack.c.h.bf16 %v2556_v25 }
 0x319   :  { %3121 = vrcp.f32 %v913_v39 }
 0x31f   :  { %v3116_v40 = vpop.eup %3115 }
 0x320   :  { %v920_v43 = vmul.f32 %v3116_v40, %v918_v38 }
 0x321   :  { %v3118_v46 = vpop.eup %3117 }
 0x322   :  { %v922_v0 = vadd.f32 %v920_v43, %v642_v37  ;;  %v921_v47 = vmul.f32 %v3118_v46, %v919_v45  ;;  %v3120_v49 = vpop.eup %3119 }
 0x323   :  { %v3122_v50 = vpop.eup %3121  ;;  %v926_v51 = vsub.f32 1.0, %v3120_v49  ;;  %v930_v55 = vmul.f32 %v3120_v49, %v3530_v58  ;;  %v3617_v58 = vld [vmem:[%s4012_s1 + $0x4] ss:$12 sps:$4 sm:$0xff]  }
 0x324   :  { %3123 = vtanh.f32 %v922_v0  ;;  %v923_v48 = vadd.f32 %v921_v47, %v645_v44  ;;  %v927_v53 = vsub.f32 1.0, %v3122_v50  ;;  %v931_v60 = vmul.f32 %v3122_v50, %v3532_v59  ;;  %v3622_v59 = vld [vmem:[%s4012_s1] ss:$12 sps:$4 sm:$0xff]   ;;  %1410 = vmatprep.subr.bf16.mxu0 %v3617_v58 }
 0x326   :  { %3125 = vtanh.f32 %v923_v48 }
 0x32e   :  { %v3124_v52 = vpop.eup %3123 }
 0x32f   :  { %v928_v54 = vmul.f32 %v3124_v52, %v926_v51 }
 0x330   :  { %v3126_v56 = vpop.eup %3125 }
 0x331   :  { %v929_v57 = vmul.f32 %v3126_v56, %v927_v53  ;;  %v3602_v3 = vadd.f32 %v930_v55, %v928_v54  ;;  %v2555_v53 = vld [vmem:[%s4013_s0 + $0x50] ss:$12 sps:$4 sm:$0xff]  }
 0x332   :  { %v944_v55 = vunpack.c.l.bf16 %v2555_v53 }
 0x333   :  { %v3604_v4 = vadd.f32 %v931_v60, %v929_v57 }
 0x335   :  { %v934_v5 = vpack.c.bf16 %v3604_v4, %v3602_v3 }
 0x337   :  { %2553 = vst [vmem:[%s4015_s3 + $0x10] sm:$0xff] %v934_v5  ;;  %1141 = vmatmul.mubr.bf16.vlgmr.msra.gmra.mrb[12].mxu0 %v934_v5  ;;  %2868 = vmatmul.mubr.bf16.vlgmr.msra.gmra.mrb[12].mxu1 %v934_v5 }
 0x338   :  { %1442 = vmatprep.mubr.bf16.mxu0 %v3229_v2  ;;  %2887 = vmatprep.mubr.msk.bf16.mxu1 %vm3230_vm0, %v3228_v1 }
 0x339   :  { %1411 = vmatpush1.bf16.msra.mxu0 %v3622_v59  ;;  %2872 = vmatpush3.bf16.msra.mxu1 %v3014_v6  ;;  %v947_v6 = vunpack.c.h.bf16 %v2555_v53 }
 0x33a   :  { %2873 = vmatprep.subr.bf16.mxu1 %v3228_v1  ;;  %1412 = vmatprep.subr.bf16.mxu0 %v3632_v7 }
 0x33d   :  { %1413 = vmatpush1.bf16.msra.mxu0 %v3638_v8  ;;  %2874 = vmatpush3.bf16.msra.mxu1 %v3018_v10 }
 0x33e   :  { %2875 = vmatprep.subr.bf16.mxu1 %v3228_v1  ;;  %1414 = vmatprep.subr.bf16.mxu0 %v3648_v11 }
 0x341   :  { %1415 = vmatpush1.bf16.msra.mxu0 %v3654_v13  ;;  %2876 = vmatpush3.bf16.msra.mxu1 %v3022_v15 }
 0x342   :  { %2877 = vmatprep.subr.bf16.mxu1 %v3228_v1  ;;  %1416 = vmatprep.subr.bf16.mxu0 %v3664_v16 }
 0x345   :  { %1417 = vmatpush1.bf16.msra.mxu0 %v3670_v17  ;;  %2878 = vmatpush3.bf16.msra.mxu1 %v3026_v19 }
 0x346   :  { %2879 = vmatprep.subr.bf16.mxu1 %v3228_v1  ;;  %1418 = vmatprep.subr.bf16.mxu0 %v3680_v21 }
 0x349   :  { %1419 = vmatpush1.bf16.msra.mxu0 %v3686_v22  ;;  %2880 = vmatpush3.bf16.msra.mxu1 %v3030_v41 }
 0x34a   :  { %1420 = vmatprep.subr.bf16.mxu0 %v3695_v42  ;;  %2881 = vmatprep.subr.bf16.mxu1 %v3228_v1 }
 0x34d   :  { %1421 = vmatpush1.bf16.msra.mxu0 %v3701_v61  ;;  %2882 = vmatpush3.bf16.msra.mxu1 %v3034_v63 }
 0x34e   :  { %1422 = vmatprep.subr.bf16.mxu0 %v3711_v9  ;;  %2883 = vmatprep.subr.bf16.mxu1 %v3228_v1 }
 0x351   :  { %1423 = vmatpush1.bf16.msra.mxu0 %v3717_v12  ;;  %2884 = vmatpush3.bf16.msra.mxu1 %v3038_v14 }
 0x352   :  { %1424 = vmatprep.subr.bf16.mxu0 %v3727_v18  ;;  %2885 = vmatprep.subr.bf16.mxu1 %v3228_v1 }
 0x355   :  { %1425 = vmatpush1.bf16.msra.mxu0 %v3733_v20  ;;  %2886 = vmatpush3.bf16.msra.mxu1 %v3042_v23 }
 0x356   :  { %1712 = vmatprep.subr.bf16.mxu0 %v3617_v58  ;;  %2891 = vmatprep.subr.bf16.mxu1 %v3228_v1 }
 0x40a   :  { %v1142_v28 = vpop.f32.mrb[12].mxu0  ;;  %v1185_v29 = vpop.f32.mrb[12].mxu1 }
 0x40b   :  { %v1192_v31 = vadd.f32 %v1142_v28, %v942_v26  ;;  %v1144_v32 = vpop.f32.mrb[13].mxu0  ;;  %v2869_v33 = vpop.f32.mrb[13].mxu1  ;;  %v1220_v56 = vadd.f32 %v3450_v62, %v1185_v29 }
 0x40c   :  { %v1146_v34 = vpop.f32.mrb[14].mxu0  ;;  %v1188_v35 = vpop.f32.mrb[14].mxu1  ;;  %v1206_v43 = vadd.f32 %v1144_v32, %v943_v30 }
 0x40d   :  { %v2582_v37 = vmul.f32 -1.442695, %v1192_v31  ;;  %v1193_v38 = vadd.f32 %v1146_v34, %v945_v27  ;;  %v1148_v39 = vpop.f32.mrb[15].mxu0  ;;  %v2870_v40 = vpop.f32.mrb[15].mxu1  ;;  %v1221_v10 = vadd.f32 %v3450_v62, %v1188_v35  ;;  %v3045_v35 = vld [vmem:[%s4012_s1 + $0x38] ss:$12 sps:$4 sm:$0xff]  }
 0x40e   :  { %v1207_v45 = vadd.f32 %v1148_v39, %v946_v36  ;;  %v2584_v46 = vmul.f32 -1.442695, %v1206_v43  ;;  %v3046_v36 = vld [vmem:[%s4012_s1 + $0x50] ss:$12 sps:$4 sm:$0xff]   ;;  %v3049_v39 = vld [vmem:[%s4012_s1 + $0x98] ss:$12 sps:$4 sm:$0xff]  }
 0x40f   :  { %3127 = vpow2.f32 %v2582_v37  ;;  %v2583_v44 = vmul.f32 -1.442695, %v1193_v38  ;;  %v3047_v37 = vld [vmem:[%s4012_s1 + $0x68] ss:$12 sps:$4 sm:$0xff]   ;;  %v3048_v38 = vld [vmem:[%s4012_s1 + $0x80] ss:$12 sps:$4 sm:$0xff]  }
 0x410   :  { %v2585_v0 = vmul.f32 -1.442695, %v1207_v45  ;;  %v3050_v40 = vld [vmem:[%s4012_s1 + $0xb0] ss:$12 sps:$4 sm:$0xff]   ;;  %v2587_v43 = vld [vmem:[%s4013_s0 + $0x60] sm:$0xff] }
 0x411   :  { %3129 = vpow2.f32 %v2583_v44  ;;  %v2589_v44 = vld [vmem:[%s4013_s0 + $0x6c] sm:$0xff]  ;;  %v1244_v45 = vunpack.c.l.bf16 %v2587_v43 }
 0x412   :  { %3131 = vpow2.f32 %v2584_v46  ;;  %v1247_v46 = vunpack.c.l.bf16 %v2589_v44 }
 0x413   :  { %3133 = vpow2.f32 %v2585_v0 }
 0x419   :  { %v3128_v47 = vpop.eup %3127 }
 0x41a   :  { %v1200_v48 = vadd.f32 1.0, %v3128_v47 }
 0x41b   :  { %v3130_v49 = vpop.eup %3129 }
 0x41c   :  { %3135 = vrcp.f32 %v1200_v48  ;;  %v1201_v50 = vadd.f32 1.0, %v3130_v49  ;;  %v3132_v51 = vpop.eup %3131  ;;  %v1245_v48 = vunpack.c.h.bf16 %v2587_v43 }
 0x41d   :  { %v3134_v52 = vpop.eup %3133  ;;  %v1214_v54 = vadd.f32 1.0, %v3132_v51 }
 0x41e   :  { %3137 = vrcp.f32 %v1201_v50  ;;  %v1215_v57 = vadd.f32 1.0, %v3134_v52 }
 0x41f   :  { %3139 = vrcp.f32 %v1214_v54  ;;  %v1248_v54 = vunpack.c.h.bf16 %v2589_v44 }
 0x420   :  { %3141 = vrcp.f32 %v1215_v57 }
 0x426   :  { %v3136_v60 = vpop.eup %3135 }
 0x427   :  { %v1222_v5 = vmul.f32 %v3136_v60, %v1220_v56 }
 0x428   :  { %v3138_v15 = vpop.eup %3137 }
 0x429   :  { %v1224_v19 = vadd.f32 %v1222_v5, %v944_v55  ;;  %v1223_v41 = vmul.f32 %v3138_v15, %v1221_v10  ;;  %v3140_v14 = vpop.eup %3139 }
 0x42a   :  { %v3142_v23 = vpop.eup %3141  ;;  %v1228_v24 = vsub.f32 1.0, %v3140_v14  ;;  %v1232_v28 = vmul.f32 %v3140_v14, %v3602_v3  ;;  %v3043_v3 = vld [vmem:[%s4012_s1 + $0x8] ss:$12 sps:$4 sm:$0xff]  }
 0x42b   :  { %3143 = vtanh.f32 %v1224_v19  ;;  %v1225_v63 = vadd.f32 %v1223_v41, %v947_v6  ;;  %v1229_v26 = vsub.f32 1.0, %v3142_v23  ;;  %v1233_v31 = vmul.f32 %v3142_v23, %v3604_v4  ;;  %v3044_v4 = vld [vmem:[%s4012_s1 + $0x20] ss:$12 sps:$4 sm:$0xff]  }
 0x42d   :  { %3145 = vtanh.f32 %v1225_v63 }
 0x435   :  { %v3144_v25 = vpop.eup %3143 }
 0x436   :  { %v1230_v27 = vmul.f32 %v3144_v25, %v1228_v24 }
 0x437   :  { %v3146_v29 = vpop.eup %3145 }
 0x438   :  { %v1231_v30 = vmul.f32 %v3146_v29, %v1229_v26  ;;  %v3756_v32 = vadd.f32 %v1232_v28, %v1230_v27  ;;  %v2588_v26 = vld [vmem:[%s4013_s0 + $0x68] ss:$12 sps:$4 sm:$0xff]  }
 0x439   :  { %v1246_v28 = vunpack.c.l.bf16 %v2588_v26 }
 0x43a   :  { %v3758_v33 = vadd.f32 %v1233_v31, %v1231_v30 }
 0x43c   :  { %v1236_v34 = vpack.c.bf16 %v3758_v33, %v3756_v32 }
 0x43e   :  { %2586 = vst [vmem:[%s4015_s3 + $0x18] sm:$0xff] %v1236_v34  ;;  %1443 = vmatmul.mubr.bf16.vlgmr.msra.gmra.mrb[16].mxu0 %v1236_v34  ;;  %2888 = vmatmul.mubr.bf16.vlgmr.msra.gmra.mrb[16].mxu1 %v1236_v34 }
 0x43f   :  { %1713 = vmatpush1.bf16.msra.mxu0 %v3622_v59  ;;  %1744 = vmatprep.mubr.bf16.mxu0 %v3229_v2 }
 0x440   :  { %1714 = vmatprep.subr.bf16.mxu0 %v3632_v7  ;;  %2907 = vmatprep.mubr.msk.bf16.mxu1 %vm3230_vm0, %v3228_v1 }
 0x441   :  { %2892 = vmatpush3.bf16.msra.mxu1 %v3043_v3  ;;  %v1249_v3 = vunpack.c.h.bf16 %v2588_v26 }
 0x442   :  { %2893 = vmatprep.subr.bf16.mxu1 %v3228_v1 }
 0x443   :  { %1715 = vmatpush1.bf16.msra.mxu0 %v3638_v8 }
 0x444   :  { %1716 = vmatprep.subr.bf16.mxu0 %v3648_v11 }
 0x445   :  { %2894 = vmatpush3.bf16.msra.mxu1 %v3044_v4 }
 0x446   :  { %2895 = vmatprep.subr.bf16.mxu1 %v3228_v1 }
 0x447   :  { %1717 = vmatpush1.bf16.msra.mxu0 %v3654_v13 }
 0x448   :  { %1718 = vmatprep.subr.bf16.mxu0 %v3664_v16 }
 0x449   :  { %2896 = vmatpush3.bf16.msra.mxu1 %v3045_v35 }
 0x44a   :  { %2897 = vmatprep.subr.bf16.mxu1 %v3228_v1 }
 0x44b   :  { %1719 = vmatpush1.bf16.msra.mxu0 %v3670_v17 }
 0x44c   :  { %1720 = vmatprep.subr.bf16.mxu0 %v3680_v21 }
 0x44d   :  { %2898 = vmatpush3.bf16.msra.mxu1 %v3046_v36 }
 0x44e   :  { %2899 = vmatprep.subr.bf16.mxu1 %v3228_v1 }
 0x44f   :  { %1721 = vmatpush1.bf16.msra.mxu0 %v3686_v22 }
 0x450   :  { %1722 = vmatprep.subr.bf16.mxu0 %v3695_v42 }
 0x451   :  { %2900 = vmatpush3.bf16.msra.mxu1 %v3047_v37 }
 0x452   :  { %2901 = vmatprep.subr.bf16.mxu1 %v3228_v1 }
 0x453   :  { %1723 = vmatpush1.bf16.msra.mxu0 %v3701_v61 }
 0x454   :  { %1724 = vmatprep.subr.bf16.mxu0 %v3711_v9 }
 0x455   :  { %2902 = vmatpush3.bf16.msra.mxu1 %v3048_v38 }
 0x456   :  { %2903 = vmatprep.subr.bf16.mxu1 %v3228_v1 }
 0x457   :  { %1725 = vmatpush1.bf16.msra.mxu0 %v3717_v12 }
 0x458   :  { %1726 = vmatprep.subr.bf16.mxu0 %v3727_v18 }
 0x459   :  { %2904 = vmatpush3.bf16.msra.mxu1 %v3049_v39 }
 0x45a   :  { %2905 = vmatprep.subr.bf16.mxu1 %v3228_v1 }
 0x45b   :  { %1727 = vmatpush1.bf16.msra.mxu0 %v3733_v20 }
 0x45c   :  { %2014 = vmatprep.subr.bf16.mxu0 %v3617_v58 }
 0x45d   :  { %2906 = vmatpush3.bf16.msra.mxu1 %v3050_v40 }
 0x45e   :  { %2911 = vmatprep.subr.bf16.mxu1 %v3228_v1 }
 0x511   :  { %v1444_v0 = vpop.f32.mrb[16].mxu0  ;;  %v1487_v47 = vpop.f32.mrb[16].mxu1 }
 0x512   :  { %v1494_v49 = vadd.f32 %v1444_v0, %v1244_v45  ;;  %v1446_v50 = vpop.f32.mrb[17].mxu0  ;;  %v2889_v51 = vpop.f32.mrb[17].mxu1  ;;  %v1522_v29 = vadd.f32 %v3450_v62, %v1487_v47 }
 0x513   :  { %v1448_v52 = vpop.f32.mrb[18].mxu0  ;;  %v1490_v53 = vpop.f32.mrb[18].mxu1  ;;  %v1508_v5 = vadd.f32 %v1446_v50, %v1245_v48 }
 0x514   :  { %v2615_v55 = vmul.f32 -1.442695, %v1494_v49  ;;  %v1495_v56 = vadd.f32 %v1448_v52, %v1247_v46  ;;  %v1450_v57 = vpop.f32.mrb[19].mxu0  ;;  %v2890_v60 = vpop.f32.mrb[19].mxu1  ;;  %v1523_v4 = vadd.f32 %v3450_v62, %v1490_v53  ;;  %v3053_v52 = vld [vmem:[%s4012_s1 + $0x38] ss:$12 sps:$4 sm:$0xff]  }
 0x515   :  { %v1509_v10 = vadd.f32 %v1450_v57, %v1248_v54  ;;  %v2617_v15 = vmul.f32 -1.442695, %v1508_v5  ;;  %v3055_v53 = vld [vmem:[%s4012_s1 + $0x68] ss:$12 sps:$4 sm:$0xff]   ;;  %v3056_v54 = vld [vmem:[%s4012_s1 + $0x80] ss:$12 sps:$4 sm:$0xff]  }
 0x516   :  { %3147 = vpow2.f32 %v2615_v55  ;;  %v2616_v6 = vmul.f32 -1.442695, %v1495_v56  ;;  %v3057_v55 = vld [vmem:[%s4012_s1 + $0x98] ss:$12 sps:$4 sm:$0xff]   ;;  %v3058_v56 = vld [vmem:[%s4012_s1 + $0xb0] ss:$12 sps:$4 sm:$0xff]  }
 0x517   :  { %v2618_v19 = vmul.f32 -1.442695, %v1509_v10  ;;  %v2620_v57 = vld [vmem:[%s4013_s0 + $0x78] sm:$0xff]  ;;  %v2622_v60 = vld [vmem:[%s4013_s0 + $0x84] sm:$0xff] }
 0x518   :  { %3149 = vpow2.f32 %v2616_v6  ;;  %v1546_v5 = vunpack.c.l.bf16 %v2620_v57  ;;  %v1549_v6 = vunpack.c.l.bf16 %v2622_v60 }
 0x519   :  { %3151 = vpow2.f32 %v2617_v15 }
 0x51a   :  { %3153 = vpow2.f32 %v2618_v19  ;;  %v1547_v19 = vunpack.c.h.bf16 %v2620_v57 }
 0x520   :  { %v3148_v41 = vpop.eup %3147 }
 0x521   :  { %v1502_v63 = vadd.f32 1.0, %v3148_v41 }
 0x522   :  { %v3150_v14 = vpop.eup %3149 }
 0x523   :  { %3155 = vrcp.f32 %v1502_v63  ;;  %v1503_v23 = vadd.f32 1.0, %v3150_v14  ;;  %v3152_v24 = vpop.eup %3151 }
 0x524   :  { %v3154_v25 = vpop.eup %3153  ;;  %v1516_v27 = vadd.f32 1.0, %v3152_v24 }
 0x525   :  { %3157 = vrcp.f32 %v1503_v23  ;;  %v1517_v30 = vadd.f32 1.0, %v3154_v25  ;;  %v1550_v25 = vunpack.c.h.bf16 %v2622_v60 }
 0x526   :  { %3159 = vrcp.f32 %v1516_v27 }
 0x527   :  { %3161 = vrcp.f32 %v1517_v30 }
 0x52d   :  { %v3156_v31 = vpop.eup %3155 }
 0x52e   :  { %v1524_v34 = vmul.f32 %v3156_v31, %v1522_v29 }
 0x52f   :  { %v3158_v35 = vpop.eup %3157 }
 0x530   :  { %v1526_v36 = vadd.f32 %v1524_v34, %v1246_v28  ;;  %v1525_v37 = vmul.f32 %v3158_v35, %v1523_v4  ;;  %v3160_v39 = vpop.eup %3159 }
 0x531   :  { %v3162_v40 = vpop.eup %3161  ;;  %v1530_v43 = vsub.f32 1.0, %v3160_v39  ;;  %v1534_v0 = vmul.f32 %v3160_v39, %v3756_v32  ;;  %v3051_v32 = vld [vmem:[%s4012_s1 + $0x8] ss:$12 sps:$4 sm:$0xff]  }
 0x532   :  { %3163 = vtanh.f32 %v1526_v36  ;;  %v1527_v38 = vadd.f32 %v1525_v37, %v1249_v3  ;;  %v1531_v45 = vsub.f32 1.0, %v3162_v40  ;;  %v1535_v49 = vmul.f32 %v3162_v40, %v3758_v33  ;;  %v3052_v33 = vld [vmem:[%s4012_s1 + $0x20] ss:$12 sps:$4 sm:$0xff]  }
 0x534   :  { %3165 = vtanh.f32 %v1527_v38 }
 0x53c   :  { %v3164_v44 = vpop.eup %3163 }
 0x53d   :  { %v1532_v46 = vmul.f32 %v3164_v44, %v1530_v43  ;;  %v2621_v43 = vld [vmem:[%s4013_s0 + $0x80] ss:$12 sps:$4 sm:$0xff]  }
 0x53e   :  { %v3166_v47 = vpop.eup %3165 }
 0x53f   :  { %v1533_v48 = vmul.f32 %v3166_v47, %v1531_v45  ;;  %v3829_v62 = vadd.f32 %v1534_v0, %v1532_v46  ;;  %v1548_v45 = vunpack.c.l.bf16 %v2621_v43  ;;  %v3901_v46 = vld [vmem:[%s4014_s2] ss:$0 sm:$0xff] }
 0x541   :  { %v3831_v50 = vadd.f32 %v1535_v49, %v1533_v48 }
 0x543   :  { %v1538_v51 = vpack.c.bf16 %v3831_v50, %v3829_v62 }
 0x545   :  { %2619 = vst [vmem:[%s4015_s3 + $0x20] sm:$0xff] %v1538_v51  ;;  %1745 = vmatmul.mubr.bf16.vlgmr.msra.gmra.mrb[20].mxu0 %v1538_v51  ;;  %2908 = vmatmul.mubr.bf16.vlgmr.msra.gmra.mrb[20].mxu1 %v1538_v51  ;;  %v1551_v51 = vunpack.c.h.bf16 %v2621_v43 }
 0x546   :  { %2015 = vmatpush1.bf16.msra.mxu0 %v3622_v59  ;;  %2046 = vmatprep.mubr.bf16.mxu0 %v3229_v2 }
 0x547   :  { %2016 = vmatprep.subr.bf16.mxu0 %v3632_v7  ;;  %2927 = vmatprep.mubr.msk.bf16.mxu1 %vm3230_vm0, %v3228_v1 }
 0x548   :  { %2912 = vmatpush3.bf16.msra.mxu1 %v3051_v32 }
 0x549   :  { %2913 = vmatprep.subr.bf16.mxu1 %v3228_v1 }
 0x54a   :  { %2017 = vmatpush1.bf16.msra.mxu0 %v3638_v8 }
 0x54b   :  { %2018 = vmatprep.subr.bf16.mxu0 %v3648_v11 }
 0x54c   :  { %2914 = vmatpush3.bf16.msra.mxu1 %v3052_v33 }
 0x54d   :  { %2915 = vmatprep.subr.bf16.mxu1 %v3228_v1 }
 0x54e   :  { %2019 = vmatpush1.bf16.msra.mxu0 %v3654_v13 }
 0x54f   :  { %2020 = vmatprep.subr.bf16.mxu0 %v3664_v16 }
 0x550   :  { %2916 = vmatpush3.bf16.msra.mxu1 %v3053_v52 }
 0x551   :  { %2917 = vmatprep.subr.bf16.mxu1 %v3228_v1 }
 0x552   :  { %2021 = vmatpush1.bf16.msra.mxu0 %v3670_v17 }
 0x553   :  { %2022 = vmatprep.subr.bf16.mxu0 %v3680_v21 }
 0x556   :  { %2023 = vmatpush1.bf16.msra.mxu0 %v3686_v22 }
 0x557   :  { %2024 = vmatprep.subr.bf16.mxu0 %v3695_v42 }
 0x55a   :  { %2025 = vmatpush1.bf16.msra.mxu0 %v3701_v61 }
 0x55b   :  { %2026 = vmatprep.subr.bf16.mxu0 %v3711_v9 }
 0x55e   :  { %2027 = vmatpush1.bf16.msra.mxu0 %v3717_v12 }
 0x55f   :  { %2028 = vmatprep.subr.bf16.mxu0 %v3727_v18 }
 0x562   :  { %2029 = vmatpush1.bf16.msra.mxu0 %v3733_v20 }
 0x563   :  { %2316 = vmatprep.subr.bf16.mxu0 %v3617_v58  ;;  %v3054_v58 = vld [vmem:[%s4012_s1 + $0x50] ss:$12 sps:$4 sm:$0xff]  }
 0x564   :  { %2918 = vmatpush3.bf16.msra.mxu1 %v3054_v58 }
 0x565   :  { %2919 = vmatprep.subr.bf16.mxu1 %v3228_v1 }
 0x568   :  { %2920 = vmatpush3.bf16.msra.mxu1 %v3055_v53 }
 0x569   :  { %2921 = vmatprep.subr.bf16.mxu1 %v3228_v1 }
 0x56c   :  { %2922 = vmatpush3.bf16.msra.mxu1 %v3056_v54 }
 0x56d   :  { %2923 = vmatprep.subr.bf16.mxu1 %v3228_v1 }
 0x570   :  { %2924 = vmatpush3.bf16.msra.mxu1 %v3057_v55 }
 0x571   :  { %2925 = vmatprep.subr.bf16.mxu1 %v3228_v1 }
 0x574   :  { %2926 = vmatpush3.bf16.msra.mxu1 %v3058_v56 }
 0x575   :  { %2931 = vmatprep.subr.bf16.mxu1 %v3228_v1 }
 0x618   :  { %v1746_v10 = vpop.f32.mrb[20].mxu0  ;;  %v1789_v15 = vpop.f32.mrb[20].mxu1 }
 0x619   :  { %v1796_v41 = vadd.f32 %v1746_v10, %v1546_v5  ;;  %v1748_v63 = vpop.f32.mrb[21].mxu0  ;;  %v2909_v14 = vpop.f32.mrb[21].mxu1  ;;  %v1824_v0 = vadd.f32 %v3901_v46, %v1789_v15 }
 0x61a   :  { %v1750_v23 = vpop.f32.mrb[22].mxu0  ;;  %v1792_v24 = vpop.f32.mrb[22].mxu1  ;;  %v1810_v30 = vadd.f32 %v1748_v63, %v1547_v19 }
 0x61b   :  { %v2648_v26 = vmul.f32 -1.442695, %v1796_v41  ;;  %v1797_v27 = vadd.f32 %v1750_v23, %v1549_v6  ;;  %v1752_v28 = vpop.f32.mrb[23].mxu0  ;;  %v2910_v29 = vpop.f32.mrb[23].mxu1  ;;  %v1825_v32 = vadd.f32 %v3901_v46, %v1792_v24 }
 0x61c   :  { %v1811_v34 = vadd.f32 %v1752_v28, %v1550_v25  ;;  %v2650_v3 = vmul.f32 -1.442695, %v1810_v30 }
 0x61d   :  { %3167 = vpow2.f32 %v2648_v26  ;;  %v2649_v31 = vmul.f32 -1.442695, %v1797_v27 }
 0x61e   :  { %v2651_v4 = vmul.f32 -1.442695, %v1811_v34 }
 0x61f   :  { %3169 = vpow2.f32 %v2649_v31 }
 0x620   :  { %3171 = vpow2.f32 %v2650_v3 }
 0x621   :  { %3173 = vpow2.f32 %v2651_v4 }
 0x627   :  { %v3168_v35 = vpop.eup %3167 }
 0x628   :  { %v1804_v36 = vadd.f32 1.0, %v3168_v35 }
 0x629   :  { %v3170_v37 = vpop.eup %3169 }
 0x62a   :  { %3175 = vrcp.f32 %v1804_v36  ;;  %v1805_v38 = vadd.f32 1.0, %v3170_v37  ;;  %v3172_v39 = vpop.eup %3171 }
 0x62b   :  { %v3174_v40 = vpop.eup %3173  ;;  %v1818_v44 = vadd.f32 1.0, %v3172_v39 }
 0x62c   :  { %3177 = vrcp.f32 %v1805_v38  ;;  %v1819_v47 = vadd.f32 1.0, %v3174_v40  ;;  %v2654_v40 = vld [vmem:[%s4013_s0 + $0x98] ss:$12 sps:$4 sm:$0xff]  }
 0x62d   :  { %3179 = vrcp.f32 %v1818_v44  ;;  %v1850_v44 = vunpack.c.l.bf16 %v2654_v40 }
 0x62e   :  { %3181 = vrcp.f32 %v1819_v47 }
 0x634   :  { %v3176_v48 = vpop.eup %3175 }
 0x635   :  { %v1826_v49 = vmul.f32 %v3176_v48, %v1824_v0 }
 0x636   :  { %v3178_v33 = vpop.eup %3177 }
 0x637   :  { %v1828_v52 = vadd.f32 %v1826_v49, %v1548_v45  ;;  %v1827_v58 = vmul.f32 %v3178_v33, %v1825_v32  ;;  %v3180_v54 = vpop.eup %3179  ;;  %v1853_v49 = vunpack.c.h.bf16 %v2654_v40 }
 0x638   :  { %v3182_v55 = vpop.eup %3181  ;;  %v1832_v56 = vsub.f32 1.0, %v3180_v54  ;;  %v1836_v6 = vmul.f32 %v3180_v54, %v3829_v62 }
 0x639   :  { %3183 = vtanh.f32 %v1828_v52  ;;  %v1829_v53 = vadd.f32 %v1827_v58, %v1551_v51  ;;  %v1833_v60 = vsub.f32 1.0, %v3182_v55  ;;  %v1837_v19 = vmul.f32 %v3182_v55, %v3831_v50 }
 0x63b   :  { %3185 = vtanh.f32 %v1829_v53 }
 0x643   :  { %v3184_v57 = vpop.eup %3183 }
 0x644   :  { %v1834_v5 = vmul.f32 %v3184_v57, %v1832_v56 }
 0x645   :  { %v3186_v10 = vpop.eup %3185 }
 0x646   :  { %v1835_v15 = vmul.f32 %v3186_v10, %v1833_v60  ;;  %v3907_v41 = vadd.f32 %v1836_v6, %v1834_v5 }
 0x648   :  { %v3909_v63 = vadd.f32 %v1837_v19, %v1835_v15 }
 0x64a   :  { %v1840_v14 = vpack.c.bf16 %v3909_v63, %v3907_v41 }
 0x64c   :  { %2652 = vst [vmem:[%s4015_s3 + $0x28] sm:$0xff] %v1840_v14  ;;  %2047 = vmatmul.mubr.bf16.vlgmr.msra.gmra.mrb[24].mxu0 %v1840_v14  ;;  %2928 = vmatmul.mubr.bf16.vlgmr.msra.gmra.mrb[24].mxu1 %v1840_v14 }
 0x64d   :  { %2317 = vmatpush1.bf16.msra.mxu0 %v3622_v59  ;;  %2348 = vmatprep.mubr.bf16.mxu0 %v3229_v2  ;;  %v3059_v2 = vld [vmem:[%s4012_s1 + $0x8] ss:$12 sps:$4 sm:$0xff]   ;;  %v3060_v59 = vld [vmem:[%s4012_s1 + $0x20] ss:$12 sps:$4 sm:$0xff]  }
 0x64e   :  { %2318 = vmatprep.subr.bf16.mxu0 %v3632_v7  ;;  %2947 = vmatprep.mubr.msk.bf16.mxu1 %vm3230_vm0, %v3228_v1  ;;  %v3061_v7 = vld [vmem:[%s4012_s1 + $0x38] ss:$12 sps:$4 sm:$0xff]  }
 0x64f   :  { %2932 = vmatpush3.bf16.msra.mxu1 %v3059_v2 }
 0x650   :  { %2933 = vmatprep.subr.bf16.mxu1 %v3228_v1 }
 0x651   :  { %2319 = vmatpush1.bf16.msra.mxu0 %v3638_v8  ;;  %v3062_v8 = vld [vmem:[%s4012_s1 + $0x50] ss:$12 sps:$4 sm:$0xff]  }
 0x652   :  { %2320 = vmatprep.subr.bf16.mxu0 %v3648_v11  ;;  %v3063_v11 = vld [vmem:[%s4012_s1 + $0x68] ss:$12 sps:$4 sm:$0xff]  }
 0x653   :  { %2934 = vmatpush3.bf16.msra.mxu1 %v3060_v59 }
 0x654   :  { %2935 = vmatprep.subr.bf16.mxu1 %v3228_v1 }
 0x655   :  { %2321 = vmatpush1.bf16.msra.mxu0 %v3654_v13  ;;  %v3064_v13 = vld [vmem:[%s4012_s1 + $0x80] ss:$12 sps:$4 sm:$0xff]  }
 0x656   :  { %2322 = vmatprep.subr.bf16.mxu0 %v3664_v16  ;;  %v3065_v16 = vld [vmem:[%s4012_s1 + $0x98] ss:$12 sps:$4 sm:$0xff]  }
 0x657   :  { %2936 = vmatpush3.bf16.msra.mxu1 %v3061_v7 }
 0x658   :  { %2937 = vmatprep.subr.bf16.mxu1 %v3228_v1 }
 0x659   :  { %2323 = vmatpush1.bf16.msra.mxu0 %v3670_v17  ;;  %v3066_v17 = vld [vmem:[%s4012_s1 + $0xb0] ss:$12 sps:$4 sm:$0xff]  }
 0x65a   :  { %2324 = vmatprep.subr.bf16.mxu0 %v3680_v21  ;;  %v2653_v21 = vld [vmem:[%s4013_s0 + $0x90] sm:$0xff] }
 0x65b   :  { %2938 = vmatpush3.bf16.msra.mxu1 %v3062_v8 }
 0x65c   :  { %2939 = vmatprep.subr.bf16.mxu1 %v3228_v1 }
 0x65d   :  { %2325 = vmatpush1.bf16.msra.mxu0 %v3686_v22  ;;  %v2655_v22 = vld [vmem:[%s4013_s0 + $0x9c] sm:$0xff] }
 0x65e   :  { %2326 = vmatprep.subr.bf16.mxu0 %v3695_v42  ;;  %v1848_v42 = vunpack.c.l.bf16 %v2653_v21 }
 0x65f   :  { %2940 = vmatpush3.bf16.msra.mxu1 %v3063_v11 }
 0x660   :  { %2941 = vmatprep.subr.bf16.mxu1 %v3228_v1 }
 0x661   :  { %2327 = vmatpush1.bf16.msra.mxu0 %v3701_v61  ;;  %v1851_v61 = vunpack.c.l.bf16 %v2655_v22 }
 0x662   :  { %2328 = vmatprep.subr.bf16.mxu0 %v3711_v9 }
 0x663   :  { %2942 = vmatpush3.bf16.msra.mxu1 %v3064_v13 }
 0x664   :  { %2943 = vmatprep.subr.bf16.mxu1 %v3228_v1 }
 0x665   :  { %2329 = vmatpush1.bf16.msra.mxu0 %v3717_v12 }
 0x666   :  { %2330 = vmatprep.subr.bf16.mxu0 %v3727_v18  ;;  %v1849_v18 = vunpack.c.h.bf16 %v2653_v21 }
 0x667   :  { %2944 = vmatpush3.bf16.msra.mxu1 %v3065_v16 }
 0x668   :  { %2945 = vmatprep.subr.bf16.mxu1 %v3228_v1  ;;  %v1852_v1 = vunpack.c.h.bf16 %v2655_v22 }
 0x669   :  { %2331 = vmatpush1.bf16.msra.mxu0 %v3733_v20 }
 0x66b   :  { %2946 = vmatpush3.bf16.msra.mxu1 %v3066_v17 }
 0x71f   :  { %v2048_v9 = vpop.f32.mrb[24].mxu0  ;;  %v2091_v12 = vpop.f32.mrb[24].mxu1 }
 0x720   :  { %v2098_v20 = vadd.f32 %v2048_v9, %v1848_v42  ;;  %v2050_v62 = vpop.f32.mrb[25].mxu0  ;;  %v2929_v50 = vpop.f32.mrb[25].mxu1  ;;  %v2126_v45 = vadd.f32 %v3901_v46, %v2091_v12 }
 0x721   :  { %v2052_v23 = vpop.f32.mrb[26].mxu0  ;;  %v2094_v24 = vpop.f32.mrb[26].mxu1  ;;  %v2112_v29 = vadd.f32 %v2050_v62, %v1849_v18 }
 0x722   :  { %v2681_v25 = vmul.f32 -1.442695, %v2098_v20  ;;  %v2099_v26 = vadd.f32 %v2052_v23, %v1851_v61  ;;  %v2054_v27 = vpop.f32.mrb[27].mxu0  ;;  %v2930_v28 = vpop.f32.mrb[27].mxu1  ;;  %v2127_v51 = vadd.f32 %v3901_v46, %v2094_v24 }
 0x723   :  { %v2113_v31 = vadd.f32 %v2054_v27, %v1852_v1  ;;  %v2683_v34 = vmul.f32 -1.442695, %v2112_v29 }
 0x724   :  { %3187 = vpow2.f32 %v2681_v25  ;;  %v2682_v30 = vmul.f32 -1.442695, %v2099_v26 }
 0x725   :  { %v2684_v3 = vmul.f32 -1.442695, %v2113_v31  ;;  %v2687_v31 = vld [vmem:[%s4013_s0 + $0xb0] sm:$0xf] }
 0x726   :  { %3189 = vpow2.f32 %v2682_v30 }
 0x727   :  { %3191 = vpow2.f32 %v2683_v34 }
 0x728   :  { %3193 = vpow2.f32 %v2684_v3  ;;  %v2689_v3 = vld [vmem:[%s4013_s0 + $0xbc] sm:$0xf] }
 0x72e   :  { %v3188_v4 = vpop.eup %3187 }
 0x72f   :  { %v2106_v35 = vadd.f32 1.0, %v3188_v4  ;;  %v2152_v4 = vunpack.c.l.bf16 %v2687_v31 }
 0x730   :  { %v3190_v36 = vpop.eup %3189 }
 0x731   :  { %3195 = vrcp.f32 %v2106_v35  ;;  %v2107_v37 = vadd.f32 1.0, %v3190_v36  ;;  %v3192_v38 = vpop.eup %3191 }
 0x732   :  { %v3194_v39 = vpop.eup %3193  ;;  %v2120_v43 = vadd.f32 1.0, %v3192_v38 }
 0x733   :  { %3197 = vrcp.f32 %v2107_v37  ;;  %v2121_v0 = vadd.f32 1.0, %v3194_v39  ;;  %v2155_v39 = vunpack.c.l.bf16 %v2689_v3 }
 0x734   :  { %3199 = vrcp.f32 %v2120_v43 }
 0x735   :  { %3201 = vrcp.f32 %v2121_v0 }
 0x73b   :  { %v3196_v47 = vpop.eup %3195 }
 0x73c   :  { %v2128_v48 = vmul.f32 %v3196_v47, %v2126_v45 }
 0x73d   :  { %v3198_v32 = vpop.eup %3197 }
 0x73e   :  { %v2130_v33 = vadd.f32 %v2128_v48, %v1850_v44  ;;  %v2129_v52 = vmul.f32 %v3198_v32, %v2127_v51  ;;  %v3200_v53 = vpop.eup %3199 }
 0x73f   :  { %v3202_v54 = vpop.eup %3201  ;;  %v2134_v55 = vsub.f32 1.0, %v3200_v53  ;;  %v2138_v5 = vmul.f32 %v3200_v53, %v3907_v41  ;;  %v2686_v41 = vld [vmem:[%s4013_s0 + $0xa8] sm:$0xff] }
 0x740   :  { %3203 = vtanh.f32 %v2130_v33  ;;  %v2131_v58 = vadd.f32 %v2129_v52, %v1853_v49  ;;  %v2135_v57 = vsub.f32 1.0, %v3202_v54  ;;  %v2139_v15 = vmul.f32 %v3202_v54, %v3909_v63  ;;  %v2688_v63 = vld [vmem:[%s4013_s0 + $0xb4] sm:$0xff] }
 0x741   :  { %v2150_v59 = vunpack.c.l.bf16 %v2686_v41  ;;  %v2153_v7 = vunpack.c.l.bf16 %v2688_v63  ;;  %v2151_v13 = vunpack.c.h.bf16 %v2686_v41  ;;  %v2154_v61 = vunpack.c.h.bf16 %v2688_v63 }
 0x742   :  { %3205 = vtanh.f32 %v2131_v58 }
 0x74a   :  { %v3204_v56 = vpop.eup %3203 }
 0x74b   :  { %v2136_v60 = vmul.f32 %v3204_v56, %v2134_v55 }
 0x74c   :  { %v3206_v6 = vpop.eup %3205 }
 0x74d   :  { %v2137_v10 = vmul.f32 %v3206_v6, %v2135_v57  ;;  %v3978_v19 = vadd.f32 %v2138_v5, %v2136_v60 }
 0x74f   :  { %v3980_v14 = vadd.f32 %v2139_v15, %v2137_v10 }
 0x751   :  { %v2142_v2 = vpack.c.bf16 %v3980_v14, %v3978_v19 }
 0x753   :  { %2685 = vst [vmem:[%s4015_s3 + $0x30] sm:$0xff] %v2142_v2  ;;  %2349 = vmatmul.mubr.bf16.vlgmr.msra.gmra.mrb[28].mxu0 %v2142_v2  ;;  %2948 = vmatmul.mubr.bf16.vlgmr.msra.gmra.mrb[28].mxu1 %v2142_v2 }
 0x826   :  { %v2350_v8 = vpop.f32.mrb[28].mxu0  ;;  %v2393_v11 = vpop.f32.mrb[28].mxu1 }
 0x827   :  { %v2400_v16 = vadd.f32 %v2350_v8, %v2150_v59  ;;  %v2352_v17 = vpop.f32.mrb[29].mxu0  ;;  %v2949_v21 = vpop.f32.mrb[29].mxu1  ;;  %v2428_v35 = vadd.f32 %v3901_v46, %v2393_v11 }
 0x828   :  { %v2354_v22 = vpop.f32.mrb[30].mxu0  ;;  %v2396_v42 = vpop.f32.mrb[30].mxu1  ;;  %v2414_v62 = vadd.f32 %v2352_v17, %v2151_v13 }
 0x829   :  { %v2714_v9 = vmul.f32 -1.442695, %v2400_v16  ;;  %v2401_v12 = vadd.f32 %v2354_v22, %v2153_v7  ;;  %v2356_v18 = vpop.f32.mrb[31].mxu0  ;;  %v2950_v20 = vpop.f32.mrb[31].mxu1  ;;  %v2429_v40 = vadd.f32 %v3901_v46, %v2396_v42 }
 0x82a   :  { %v2415_v23 = vadd.f32 %v2356_v18, %v2154_v61  ;;  %v2716_v24 = vmul.f32 -1.442695, %v2414_v62 }
 0x82b   :  { %3207 = vpow2.f32 %v2714_v9  ;;  %v2715_v50 = vmul.f32 -1.442695, %v2401_v12 }
 0x82c   :  { %v2717_v1 = vmul.f32 -1.442695, %v2415_v23 }
 0x82d   :  { %3209 = vpow2.f32 %v2715_v50 }
 0x82e   :  { %3211 = vpow2.f32 %v2716_v24 }
 0x82f   :  { %3213 = vpow2.f32 %v2717_v1 }
 0x835   :  { %v3208_v25 = vpop.eup %3207 }
 0x836   :  { %v2408_v26 = vadd.f32 1.0, %v3208_v25 }
 0x837   :  { %v3210_v27 = vpop.eup %3209 }
 0x838   :  { %3215 = vrcp.f32 %v2408_v26  ;;  %v2409_v28 = vadd.f32 1.0, %v3210_v27  ;;  %v3212_v29 = vpop.eup %3211 }
 0x839   :  { %v3214_v30 = vpop.eup %3213  ;;  %v2422_v34 = vadd.f32 1.0, %v3212_v29 }
 0x83a   :  { %3217 = vrcp.f32 %v2409_v28  ;;  %v2423_v36 = vadd.f32 1.0, %v3214_v30 }
 0x83b   :  { %3219 = vrcp.f32 %v2422_v34 }
 0x83c   :  { %3221 = vrcp.f32 %v2423_v36 }
 0x842   :  { %v3216_v37 = vpop.eup %3215 }
 0x843   :  { %v2430_v38 = vmul.f32 %v3216_v37, %v2428_v35 }
 0x844   :  { %v3218_v43 = vpop.eup %3217 }
 0x845   :  { %v2432_v44 = vadd.f32 %v2430_v38, %v2152_v4  ;;  %v2431_v45 = vmul.f32 %v3218_v43, %v2429_v40  ;;  %v3220_v47 = vpop.eup %3219 }
 0x846   :  { %v3222_v48 = vpop.eup %3221  ;;  %v2436_v49 = vsub.f32 1.0, %v3220_v47  ;;  %v2440_v33 = vmul.f32 %v3220_v47, %v3978_v19 }
 0x847   :  { %3223 = vtanh.f32 %v2432_v44  ;;  %v2433_v0 = vadd.f32 %v2431_v45, %v2155_v39  ;;  %v2437_v52 = vsub.f32 1.0, %v3222_v48  ;;  %v2441_v46 = vmul.f32 %v3222_v48, %v3980_v14 }
 0x849   :  { %3225 = vtanh.f32 %v2433_v0 }
 0x851   :  { %v3224_v51 = vpop.eup %3223 }
 0x852   :  { %v2438_v32 = vmul.f32 %v3224_v51, %v2436_v49 }
 0x853   :  { %v3226_v58 = vpop.eup %3225 }
 0x854   :  { %v2442_v53 = vadd.f32 %v2440_v33, %v2438_v32  ;;  %v2439_v54 = vmul.f32 %v3226_v58, %v2437_v52 }
 0x856   :  { %2449 = vst [vmem:[%s4016_s4] sm:$0xff] %v2442_v53  ;;  %v2443_v55 = vadd.f32 %v2441_v46, %v2439_v54 }
 0x858   :  { %v2444_v56 = vpack.c.bf16 %v2443_v55, %v2442_v53  ;;  %2450 = vst [vmem:[%s4016_s4 + $0x8] sm:$0xff] %v2443_v55 }
 0x85a   :  { %2718 = vst [vmem:[%s4015_s3 + $0x38] sm:$0xff] %v2444_v56 }

// kernel: encoder_forward.3
= control target key start
LH: loop header
LB: loop body
LE: loop exit
PB: predicated region body
PF: predicated region fallthrough
CT: control target
= control target key end

     0   :  { %v3242_v1 = vmov 0.0   ;;  %v3243_v2 = vmov 0   ;;  %vm3244_vm0 = vmmov 0   ;;  %v3245_v26 = vmov 0.0|0.0   ;;  %s4064_s1 = inlined_call_operand.vmem [shape: bf16[128,384], index: 1, kind: input, shape index: {}]   ;;  %s4065_s0 = inlined_call_operand.vmem [shape: bf16[8,16,384], index: 0, kind: input, shape index: {}]   ;;  %s4066_s2 = inlined_call_operand.vmem [shape: f32[1,128], index: 2, kind: input, shape index: {}]   ;;  %s4067_s3 = inlined_call_operand.vmem [shape: f32[8,16,128], index: 3, kind: output, shape index: {0}]   ;;  %s4068_s4 = inlined_call_operand.vmem [shape: f32[16,128], index: 4, kind: output, shape index: {1}]  }
   0x1   :  { %v3274_v0 = vld [vmem:[%s4064_s1 + $0x4] ss:$12 sps:$4 sm:$0xff]   ;;  %2805 = vmatprep.subr.bf16.mxu1 %v3242_v1  ;;  %235 = vmatprep.mubr.bf16.mxu0 %v3243_v2  ;;  %v3281_v3 = vld [vmem:[%s4064_s1] ss:$12 sps:$4 sm:$0xff]   ;;  %v3289_v4 = vld [vmem:[%s4064_s1 + $0x1c] ss:$12 sps:$4 sm:$0xff]  }
   0x2   :  { %2821 = vmatprep.mubr.msk.bf16.mxu1 %vm3244_vm0, %v3242_v1  ;;  %203 = vmatprep.subr.bf16.mxu0 %v3274_v0  ;;  %v3295_v5 = vld [vmem:[%s4064_s1 + $0x18] ss:$12 sps:$4 sm:$0xff]   ;;  %v3301_v6 = vld [vmem:[%s4064_s1 + $0x34] ss:$12 sps:$4 sm:$0xff]   ;;  %v3307_v7 = vld [vmem:[%s4064_s1 + $0x30] ss:$12 sps:$4 sm:$0xff]  }
   0x3   :  { %204 = vmatpush1.bf16.msra.mxu0 %v3281_v3  ;;  %v3313_v8 = vld [vmem:[%s4064_s1 + $0x4c] ss:$12 sps:$4 sm:$0xff]   ;;  %v2989_v9 = vld [vmem:[%s4064_s1 + $0x8] ss:$12 sps:$4 sm:$0xff]   ;;  %v3328_v11 = vld [vmem:[%s4064_s1 + $0x64] ss:$12 sps:$4 sm:$0xff]  }
   0x4   :  { %205 = vmatprep.subr.bf16.mxu0 %v3289_v4  ;;  %v3322_v10 = vld [vmem:[%s4064_s1 + $0x48] ss:$12 sps:$4 sm:$0xff]   ;;  %2806 = vmatpush3.bf16.msra.mxu1 %v2989_v9  ;;  %v2993_v12 = vld [vmem:[%s4064_s1 + $0x20] ss:$12 sps:$4 sm:$0xff]   ;;  %v2995_v14 = vld [vmem:[%s4064_s1 + $0x38] ss:$12 sps:$4 sm:$0xff]  }
   0x5   :  { %2807 = vmatprep.subr.bf16.mxu1 %v3242_v1  ;;  %v3337_v13 = vld [vmem:[%s4064_s1 + $0x60] ss:$12 sps:$4 sm:$0xff]   ;;  %v3347_v15 = vld [vmem:[%s4064_s1 + $0x7c] ss:$12 sps:$4 sm:$0xff]   ;;  %v3353_v16 = vld [vmem:[%s4064_s1 + $0x78] ss:$12 sps:$4 sm:$0xff]  }
   0x6   :  { %v3358_v17 = vld [vmem:[%s4064_s1 + $0x94] ss:$12 sps:$4 sm:$0xff]   ;;  %v2996_v18 = vld [vmem:[%s4064_s1 + $0x50] ss:$12 sps:$4 sm:$0xff]   ;;  %v3377_v21 = vld [vmem:[%s4064_s1 + $0xac] ss:$12 sps:$4 sm:$0xff]  }
   0x7   :  { %206 = vmatpush1.bf16.msra.mxu0 %v3295_v5  ;;  %v3369_v19 = vld [vmem:[%s4064_s1 + $0x90] ss:$12 sps:$4 sm:$0xff]   ;;  %v2997_v20 = vld [vmem:[%s4064_s1 + $0x68] ss:$12 sps:$4 sm:$0xff]   ;;  %v2998_v23 = vld [vmem:[%s4064_s1 + $0x80] ss:$12 sps:$4 sm:$0xff]  }
   0x8   :  { %207 = vmatprep.subr.bf16.mxu0 %v3301_v6  ;;  %2808 = vmatpush3.bf16.msra.mxu1 %v2993_v12  ;;  %v3385_v22 = vld [vmem:[%s4064_s1 + $0xa8] ss:$12 sps:$4 sm:$0xff]   ;;  %v2999_v24 = vld [vmem:[%s4064_s1 + $0x98] ss:$12 sps:$4 sm:$0xff]   ;;  %v3000_v25 = vld [vmem:[%s4064_s1 + $0xb0] ss:$12 sps:$4 sm:$0xff]  }
   0x9   :  { %2809 = vmatprep.subr.bf16.mxu1 %v3242_v1  ;;  %v3001_v27 = vld [vmem:[%s4064_s1 + $0x8] ss:$12 sps:$4 sm:$0xff]   ;;  %v3002_v28 = vld [vmem:[%s4064_s1 + $0x20] ss:$12 sps:$4 sm:$0xff]   ;;  %v3003_v29 = vld [vmem:[%s4064_s1 + $0x38] ss:$12 sps:$4 sm:$0xff]  }
   0xa   :  { %v3004_v30 = vld [vmem:[%s4064_s1 + $0x50] ss:$12 sps:$4 sm:$0xff]   ;;  %v3005_v31 = vld [vmem:[%s4064_s1 + $0x68] ss:$12 sps:$4 sm:$0xff]   ;;  %v3006_v32 = vld [vmem:[%s4064_s1 + $0x80] ss:$12 sps:$4 sm:$0xff]  }
   0xb   :  { %208 = vmatpush1.bf16.msra.mxu0 %v3307_v7  ;;  %v3007_v33 = vld [vmem:[%s4064_s1 + $0x98] ss:$12 sps:$4 sm:$0xff]   ;;  %v3008_v34 = vld [vmem:[%s4064_s1 + $0xb0] ss:$12 sps:$4 sm:$0xff]   ;;  %v3464_v62 = vld [vmem:[%s4066_s2] ss:$0 sm:$0xff] }
   0xc   :  { %209 = vmatprep.subr.bf16.mxu0 %v3313_v8  ;;  %2810 = vmatpush3.bf16.msra.mxu1 %v2995_v14  ;;  %v32_v35 = vld [vmem:[%s4065_s0] sm:$0xff]  ;;  %v34_v36 = vld [vmem:[%s4065_s0 + $0xc] sm:$0xff]  ;;  %v33_v9 = vld [vmem:[%s4065_s0 + $0x8] ss:$12 sps:$4 sm:$0xff]  }
   0xd   :  { %2811 = vmatprep.subr.bf16.mxu1 %v3242_v1  ;;  %v36_v37 = vunpack.c.l.bf16 %v32_v35  ;;  %v39_v38 = vunpack.c.l.bf16 %v34_v36  ;;  %v37_v40 = vunpack.c.h.bf16 %v32_v35  ;;  %v40_v44 = vunpack.c.h.bf16 %v34_v36 }
   0xf   :  { %210 = vmatpush1.bf16.msra.mxu0 %v3322_v10 }
  0x10   :  { %211 = vmatprep.subr.bf16.mxu0 %v3328_v11  ;;  %2812 = vmatpush3.bf16.msra.mxu1 %v2996_v18 }
  0x11   :  { %2813 = vmatprep.subr.bf16.mxu1 %v3242_v1 }
  0x13   :  { %212 = vmatpush1.bf16.msra.mxu0 %v3337_v13 }
  0x14   :  { %213 = vmatprep.subr.bf16.mxu0 %v3347_v15  ;;  %2814 = vmatpush3.bf16.msra.mxu1 %v2997_v20  ;;  %v38_v20 = vunpack.c.l.bf16 %v33_v9 }
  0x15   :  { %2815 = vmatprep.subr.bf16.mxu1 %v3242_v1 }
  0x17   :  { %214 = vmatpush1.bf16.msra.mxu0 %v3353_v16 }
  0x18   :  { %215 = vmatprep.subr.bf16.mxu0 %v3358_v17  ;;  %2816 = vmatpush3.bf16.msra.mxu1 %v2998_v23 }
  0x19   :  { %2817 = vmatprep.subr.bf16.mxu1 %v3242_v1 }
  0x1b   :  { %216 = vmatpush1.bf16.msra.mxu0 %v3369_v19 }
  0x1c   :  { %217 = vmatprep.subr.bf16.mxu0 %v3377_v21  ;;  %2818 = vmatpush3.bf16.msra.mxu1 %v2999_v24 }
  0x1d   :  { %2819 = vmatprep.subr.bf16.mxu1 %v3242_v1 }
  0x1f   :  { %218 = vmatpush1.bf16.msra.mxu0 %v3385_v22 }
  0x20   :  { %505 = vmatprep.subr.bf16.mxu0 %v3274_v0  ;;  %2820 = vmatpush3.bf16.msra.mxu1 %v3000_v25  ;;  %v41_v25 = vunpack.c.h.bf16 %v33_v9 }
  0x21   :  { %2825 = vmatprep.subr.bf16.mxu1 %v3242_v1 }
  0x22   :  { %236 = vmatmul.mubr.bf16.vlgmr.msra.gmra.mrb[0].mxu0 %v3245_v26 }
  0x23   :  { %506 = vmatpush1.bf16.msra.mxu0 %v3281_v3  ;;  %537 = vmatprep.mubr.bf16.mxu0 %v3243_v2 }
  0x24   :  { %507 = vmatprep.subr.bf16.mxu0 %v3289_v4  ;;  %2822 = vmatmul.mubr.bf16.vlgmr.msra.gmra.mrb[0].mxu1 %v3245_v26 }
  0x25   :  { %2841 = vmatprep.mubr.msk.bf16.mxu1 %vm3244_vm0, %v3242_v1  ;;  %2826 = vmatpush3.bf16.msra.mxu1 %v3001_v27 }
  0x26   :  { %2827 = vmatprep.subr.bf16.mxu1 %v3242_v1 }
  0x27   :  { %508 = vmatpush1.bf16.msra.mxu0 %v3295_v5 }
  0x28   :  { %509 = vmatprep.subr.bf16.mxu0 %v3301_v6 }
  0x29   :  { %2828 = vmatpush3.bf16.msra.mxu1 %v3002_v28 }
  0x2a   :  { %2829 = vmatprep.subr.bf16.mxu1 %v3242_v1 }
  0x2b   :  { %510 = vmatpush1.bf16.msra.mxu0 %v3307_v7 }
  0x2c   :  { %511 = vmatprep.subr.bf16.mxu0 %v3313_v8 }
  0x2d   :  { %2830 = vmatpush3.bf16.msra.mxu1 %v3003_v29 }
  0x2e   :  { %2831 = vmatprep.subr.bf16.mxu1 %v3242_v1 }
  0x2f   :  { %512 = vmatpush1.bf16.msra.mxu0 %v3322_v10 }
  0x30   :  { %513 = vmatprep.subr.bf16.mxu0 %v3328_v11 }
  0x31   :  { %2832 = vmatpush3.bf16.msra.mxu1 %v3004_v30 }
  0x32   :  { %2833 = vmatprep.subr.bf16.mxu1 %v3242_v1 }
  0x33   :  { %514 = vmatpush1.bf16.msra.mxu0 %v3337_v13 }
  0x34   :  { %515 = vmatprep.subr.bf16.mxu0 %v3347_v15 }
  0x35   :  { %2834 = vmatpush3.bf16.msra.mxu1 %v3005_v31 }
  0x36   :  { %2835 = vmatprep.subr.bf16.mxu1 %v3242_v1 }
  0x37   :  { %516 = vmatpush1.bf16.msra.mxu0 %v3353_v16 }
  0x38   :  { %517 = vmatprep.subr.bf16.mxu0 %v3358_v17 }
  0x39   :  { %2836 = vmatpush3.bf16.msra.mxu1 %v3006_v32 }
  0x3a   :  { %2837 = vmatprep.subr.bf16.mxu1 %v3242_v1 }
  0x3b   :  { %518 = vmatpush1.bf16.msra.mxu0 %v3369_v19 }
  0x3c   :  { %519 = vmatprep.subr.bf16.mxu0 %v3377_v21 }
  0x3d   :  { %2838 = vmatpush3.bf16.msra.mxu1 %v3007_v33 }
  0x3e   :  { %2839 = vmatprep.subr.bf16.mxu1 %v3242_v1 }
  0x3f   :  { %520 = vmatpush1.bf16.msra.mxu0 %v3385_v22 }
  0x40   :  { %808 = vmatprep.subr.bf16.mxu0 %v3274_v0 }
  0x41   :  { %2840 = vmatpush3.bf16.msra.mxu1 %v3008_v34 }
  0x42   :  { %2845 = vmatprep.subr.bf16.mxu1 %v3242_v1 }
  0xf5   :  { %v237_v39 = vpop.f32.mrb[0].mxu0 }
  0xf6   :  { %v287_v41 = vadd.f32 %v237_v39, %v36_v37  ;;  %v239_v42 = vpop.f32.mrb[1].mxu0 }
  0xf7   :  { %v241_v43 = vpop.f32.mrb[2].mxu0  ;;  %v301_v48 = vadd.f32 %v239_v42, %v37_v40  ;;  %v280_v52 = vpop.f32.mrb[0].mxu1 }
  0xf8   :  { %v2491_v45 = vmul.f32 -1.442695, %v287_v41  ;;  %v288_v46 = vadd.f32 %v241_v43, %v39_v38  ;;  %v243_v47 = vpop.f32.mrb[3].mxu0  ;;  %v2823_v53 = vpop.f32.mrb[1].mxu1  ;;  %v315_v14 = vadd.f32 %v3464_v62, %v280_v52  ;;  %v2497_v52 = vld [vmem:[%s4065_s0 + $0x24] sm:$0xff] }
  0xf9   :  { %v302_v50 = vadd.f32 %v243_v47, %v40_v44  ;;  %v2493_v51 = vmul.f32 -1.442695, %v301_v48  ;;  %v283_v55 = vpop.f32.mrb[2].mxu1  ;;  %v3009_v44 = vld [vmem:[%s4064_s1 + $0x8] ss:$12 sps:$4 sm:$0xff]   ;;  %v342_v9 = vunpack.c.h.bf16 %v2497_v52 }
  0xfa   :  { %3081 = vpow2.f32 %v2491_v45  ;;  %v2492_v49 = vmul.f32 -1.442695, %v288_v46  ;;  %v2824_v56 = vpop.f32.mrb[3].mxu1  ;;  %v316_v26 = vadd.f32 %v3464_v62, %v283_v55  ;;  %v3010_v45 = vld [vmem:[%s4064_s1 + $0x20] ss:$12 sps:$4 sm:$0xff]  }
  0xfb   :  { %v2494_v54 = vmul.f32 -1.442695, %v302_v50  ;;  %v3011_v46 = vld [vmem:[%s4064_s1 + $0x38] ss:$12 sps:$4 sm:$0xff]   ;;  %v3013_v47 = vld [vmem:[%s4064_s1 + $0x68] ss:$12 sps:$4 sm:$0xff]  }
  0xfc   :  { %3083 = vpow2.f32 %v2492_v49  ;;  %v3014_v48 = vld [vmem:[%s4064_s1 + $0x80] ss:$12 sps:$4 sm:$0xff]   ;;  %v3015_v49 = vld [vmem:[%s4064_s1 + $0x98] ss:$12 sps:$4 sm:$0xff]   ;;  %v3016_v50 = vld [vmem:[%s4064_s1 + $0xb0] ss:$12 sps:$4 sm:$0xff]  }
  0xfd   :  { %3085 = vpow2.f32 %v2493_v51  ;;  %v2495_v51 = vld [vmem:[%s4065_s0 + $0x18] sm:$0xff] }
  0xfe   :  { %3087 = vpow2.f32 %v2494_v54  ;;  %v338_v53 = vunpack.c.l.bf16 %v2495_v51  ;;  %v341_v54 = vunpack.c.l.bf16 %v2497_v52 }
 0x104   :  { %v3082_v57 = vpop.eup %3081 }
 0x105   :  { %v295_v58 = vadd.f32 1.0, %v3082_v57  ;;  %v339_v57 = vunpack.c.h.bf16 %v2495_v51 }
 0x106   :  { %v3084_v59 = vpop.eup %3083 }
 0x107   :  { %3089 = vrcp.f32 %v295_v58  ;;  %v296_v60 = vadd.f32 1.0, %v3084_v59  ;;  %v3086_v61 = vpop.eup %3085 }
 0x108   :  { %v3088_v63 = vpop.eup %3087  ;;  %v309_v12 = vadd.f32 1.0, %v3086_v61 }
 0x109   :  { %3091 = vrcp.f32 %v296_v60  ;;  %v310_v18 = vadd.f32 1.0, %v3088_v63 }
 0x10a   :  { %3093 = vrcp.f32 %v309_v12 }
 0x10b   :  { %3095 = vrcp.f32 %v310_v18 }
 0x111   :  { %v3090_v23 = vpop.eup %3089 }
 0x112   :  { %v317_v24 = vmul.f32 %v3090_v23, %v315_v14 }
 0x113   :  { %v3092_v27 = vpop.eup %3091 }
 0x114   :  { %v319_v28 = vadd.f32 %v317_v24, %v38_v20  ;;  %v318_v29 = vmul.f32 %v3092_v27, %v316_v26  ;;  %v3094_v31 = vpop.eup %3093 }
 0x115   :  { %v3096_v32 = vpop.eup %3095  ;;  %v323_v33 = vsub.f32 1.0, %v3094_v31  ;;  %v327_v37 = vmul.f32 0.0, %v3094_v31 }
 0x116   :  { %3097 = vtanh.f32 %v319_v28  ;;  %v320_v30 = vadd.f32 %v318_v29, %v41_v25  ;;  %v324_v35 = vsub.f32 1.0, %v3096_v32  ;;  %v328_v40 = vmul.f32 0.0, %v3096_v32 }
 0x118   :  { %3099 = vtanh.f32 %v320_v30 }
 0x120   :  { %v3098_v34 = vpop.eup %3097 }
 0x121   :  { %v325_v36 = vmul.f32 %v3098_v34, %v323_v33  ;;  %v2496_v34 = vld [vmem:[%s4065_s0 + $0x20] ss:$12 sps:$4 sm:$0xff]  }
 0x122   :  { %v3100_v38 = vpop.eup %3099 }
 0x123   :  { %v326_v39 = vmul.f32 %v3100_v38, %v324_v35  ;;  %v3471_v41 = vadd.f32 %v327_v37, %v325_v36  ;;  %v340_v36 = vunpack.c.l.bf16 %v2496_v34 }
 0x125   :  { %v3473_v42 = vadd.f32 %v328_v40, %v326_v39  ;;  %331 = vst [vmem:[%s4067_s3] sm:$0xff] %v3471_v41 }
 0x127   :  { %332 = vst [vmem:[%s4067_s3 + $0x8] sm:$0xff] %v3473_v42  ;;  %v344_v43 = vpack.c.bf16 %v3473_v42, %v3471_v41 }
 0x129   :  { %538 = vmatmul.mubr.bf16.vlgmr.msra.gmra.mrb[4].mxu0 %v344_v43  ;;  %2842 = vmatmul.mubr.bf16.vlgmr.msra.gmra.mrb[4].mxu1 %v344_v43  ;;  %v343_v43 = vunpack.c.h.bf16 %v2496_v34 }
 0x12a   :  { %809 = vmatpush1.bf16.msra.mxu0 %v3281_v3  ;;  %840 = vmatprep.mubr.bf16.mxu0 %v3243_v2 }
 0x12b   :  { %810 = vmatprep.subr.bf16.mxu0 %v3289_v4  ;;  %2861 = vmatprep.mubr.msk.bf16.mxu1 %vm3244_vm0, %v3242_v1 }
 0x12c   :  { %2846 = vmatpush3.bf16.msra.mxu1 %v3009_v44 }
 0x12d   :  { %2847 = vmatprep.subr.bf16.mxu1 %v3242_v1 }
 0x12e   :  { %811 = vmatpush1.bf16.msra.mxu0 %v3295_v5 }
 0x12f   :  { %812 = vmatprep.subr.bf16.mxu0 %v3301_v6 }
 0x130   :  { %2848 = vmatpush3.bf16.msra.mxu1 %v3010_v45 }
 0x131   :  { %2849 = vmatprep.subr.bf16.mxu1 %v3242_v1 }
 0x132   :  { %813 = vmatpush1.bf16.msra.mxu0 %v3307_v7 }
 0x133   :  { %814 = vmatprep.subr.bf16.mxu0 %v3313_v8 }
 0x134   :  { %2850 = vmatpush3.bf16.msra.mxu1 %v3011_v46 }
 0x135   :  { %2851 = vmatprep.subr.bf16.mxu1 %v3242_v1 }
 0x136   :  { %815 = vmatpush1.bf16.msra.mxu0 %v3322_v10 }
 0x137   :  { %816 = vmatprep.subr.bf16.mxu0 %v3328_v11 }
 0x13a   :  { %817 = vmatpush1.bf16.msra.mxu0 %v3337_v13 }
 0x13b   :  { %818 = vmatprep.subr.bf16.mxu0 %v3347_v15 }
 0x13e   :  { %819 = vmatpush1.bf16.msra.mxu0 %v3353_v16 }
 0x13f   :  { %820 = vmatprep.subr.bf16.mxu0 %v3358_v17 }
 0x142   :  { %821 = vmatpush1.bf16.msra.mxu0 %v3369_v19 }
 0x143   :  { %822 = vmatprep.subr.bf16.mxu0 %v3377_v21 }
 0x146   :  { %823 = vmatpush1.bf16.msra.mxu0 %v3385_v22 }
 0x147   :  { %1111 = vmatprep.subr.bf16.mxu0 %v3274_v0  ;;  %v3012_v0 = vld [vmem:[%s4064_s1 + $0x50] ss:$12 sps:$4 sm:$0xff]  }
 0x148   :  { %2852 = vmatpush3.bf16.msra.mxu1 %v3012_v0 }
 0x149   :  { %2853 = vmatprep.subr.bf16.mxu1 %v3242_v1 }
 0x14c   :  { %2854 = vmatpush3.bf16.msra.mxu1 %v3013_v47 }
 0x14d   :  { %2855 = vmatprep.subr.bf16.mxu1 %v3242_v1 }
 0x150   :  { %2856 = vmatpush3.bf16.msra.mxu1 %v3014_v48 }
 0x151   :  { %2857 = vmatprep.subr.bf16.mxu1 %v3242_v1 }
 0x154   :  { %2858 = vmatpush3.bf16.msra.mxu1 %v3015_v49 }
 0x155   :  { %2859 = vmatprep.subr.bf16.mxu1 %v3242_v1 }
 0x158   :  { %2860 = vmatpush3.bf16.msra.mxu1 %v3016_v50 }
 0x159   :  { %2865 = vmatprep.subr.bf16.mxu1 %v3242_v1 }
 0x1fc   :  { %v539_v55 = vpop.f32.mrb[4].mxu0  ;;  %v582_v56 = vpop.f32.mrb[4].mxu1 }
 0x1fd   :  { %v589_v58 = vadd.f32 %v539_v55, %v338_v53  ;;  %v541_v59 = vpop.f32.mrb[5].mxu0  ;;  %v2843_v60 = vpop.f32.mrb[5].mxu1  ;;  %v617_v37 = vadd.f32 %v3464_v62, %v582_v56 }
 0x1fe   :  { %v543_v61 = vpop.f32.mrb[6].mxu0  ;;  %v585_v63 = vpop.f32.mrb[6].mxu1  ;;  %v603_v23 = vadd.f32 %v541_v59, %v339_v57 }
 0x1ff   :  { %v2523_v12 = vmul.f32 -1.442695, %v589_v58  ;;  %v590_v14 = vadd.f32 %v543_v61, %v341_v54  ;;  %v545_v18 = vpop.f32.mrb[7].mxu0  ;;  %v2844_v20 = vpop.f32.mrb[7].mxu1  ;;  %v618_v44 = vadd.f32 %v3464_v62, %v585_v63 }
 0x200   :  { %v604_v25 = vadd.f32 %v545_v18, %v342_v9  ;;  %v2525_v26 = vmul.f32 -1.442695, %v603_v23 }
 0x201   :  { %3101 = vpow2.f32 %v2523_v12  ;;  %v2524_v24 = vmul.f32 -1.442695, %v590_v14 }
 0x202   :  { %v2526_v27 = vmul.f32 -1.442695, %v604_v25 }
 0x203   :  { %3103 = vpow2.f32 %v2524_v24 }
 0x204   :  { %3105 = vpow2.f32 %v2525_v26 }
 0x205   :  { %3107 = vpow2.f32 %v2526_v27 }
 0x20b   :  { %v3102_v28 = vpop.eup %3101 }
 0x20c   :  { %v597_v29 = vadd.f32 1.0, %v3102_v28 }
 0x20d   :  { %v3104_v30 = vpop.eup %3103 }
 0x20e   :  { %3109 = vrcp.f32 %v597_v29  ;;  %v598_v31 = vadd.f32 1.0, %v3104_v30  ;;  %v3106_v32 = vpop.eup %3105 }
 0x20f   :  { %v3108_v33 = vpop.eup %3107  ;;  %v611_v35 = vadd.f32 1.0, %v3106_v32 }
 0x210   :  { %3111 = vrcp.f32 %v598_v31  ;;  %v612_v38 = vadd.f32 1.0, %v3108_v33 }
 0x211   :  { %3113 = vrcp.f32 %v611_v35  ;;  %v2530_v35 = vld [vmem:[%s4065_s0 + $0x38] ss:$12 sps:$4 sm:$0xff]  }
 0x212   :  { %3115 = vrcp.f32 %v612_v38 }
 0x218   :  { %v3110_v39 = vpop.eup %3109 }
 0x219   :  { %v619_v40 = vmul.f32 %v3110_v39, %v617_v37  ;;  %v643_v37 = vunpack.c.l.bf16 %v2530_v35 }
 0x21a   :  { %v3112_v45 = vpop.eup %3111 }
 0x21b   :  { %v621_v46 = vadd.f32 %v619_v40, %v340_v36  ;;  %v620_v0 = vmul.f32 %v3112_v45, %v618_v44  ;;  %v3114_v48 = vpop.eup %3113  ;;  %v646_v44 = vunpack.c.h.bf16 %v2530_v35 }
 0x21c   :  { %v3116_v49 = vpop.eup %3115  ;;  %v625_v50 = vsub.f32 1.0, %v3114_v48  ;;  %v629_v54 = vmul.f32 %v3114_v48, %v3471_v41 }
 0x21d   :  { %3117 = vtanh.f32 %v621_v46  ;;  %v622_v47 = vadd.f32 %v620_v0, %v343_v43  ;;  %v626_v52 = vsub.f32 1.0, %v3116_v49  ;;  %v630_v57 = vmul.f32 %v3116_v49, %v3473_v42 }
 0x21f   :  { %3119 = vtanh.f32 %v622_v47 }
 0x227   :  { %v3118_v51 = vpop.eup %3117 }
 0x228   :  { %v627_v53 = vmul.f32 %v3118_v51, %v625_v50 }
 0x229   :  { %v3120_v55 = vpop.eup %3119 }
 0x22a   :  { %v628_v56 = vmul.f32 %v3120_v55, %v626_v52  ;;  %v3549_v58 = vadd.f32 %v629_v54, %v627_v53 }
 0x22c   :  { %v3551_v59 = vadd.f32 %v630_v57, %v628_v56  ;;  %2527 = vst [vmem:[%s4067_s3 + $0x10] sm:$0xff] %v3549_v58 }
 0x22e   :  { %2528 = vst [vmem:[%s4067_s3 + $0x18] sm:$0xff] %v3551_v59  ;;  %v647_v41 = vpack.c.bf16 %v3551_v59, %v3549_v58 }
 0x230   :  { %841 = vmatmul.mubr.bf16.vlgmr.msra.gmra.mrb[8].mxu0 %v647_v41  ;;  %2862 = vmatmul.mubr.bf16.vlgmr.msra.gmra.mrb[8].mxu1 %v647_v41 }
 0x231   :  { %1112 = vmatpush1.bf16.msra.mxu0 %v3281_v3  ;;  %1143 = vmatprep.mubr.bf16.mxu0 %v3243_v2  ;;  %v3017_v3 = vld [vmem:[%s4064_s1 + $0x8] ss:$12 sps:$4 sm:$0xff]  }
 0x232   :  { %1113 = vmatprep.subr.bf16.mxu0 %v3289_v4  ;;  %2881 = vmatprep.mubr.msk.bf16.mxu1 %vm3244_vm0, %v3242_v1  ;;  %v3018_v4 = vld [vmem:[%s4064_s1 + $0x20] ss:$12 sps:$4 sm:$0xff]  }
 0x233   :  { %2866 = vmatpush3.bf16.msra.mxu1 %v3017_v3 }
 0x234   :  { %2867 = vmatprep.subr.bf16.mxu1 %v3242_v1 }
 0x235   :  { %1114 = vmatpush1.bf16.msra.mxu0 %v3295_v5  ;;  %v3019_v5 = vld [vmem:[%s4064_s1 + $0x38] ss:$12 sps:$4 sm:$0xff]  }
 0x236   :  { %1115 = vmatprep.subr.bf16.mxu0 %v3301_v6  ;;  %v3020_v6 = vld [vmem:[%s4064_s1 + $0x50] ss:$12 sps:$4 sm:$0xff]  }
 0x237   :  { %2868 = vmatpush3.bf16.msra.mxu1 %v3018_v4 }
 0x238   :  { %2869 = vmatprep.subr.bf16.mxu1 %v3242_v1 }
 0x239   :  { %1116 = vmatpush1.bf16.msra.mxu0 %v3307_v7  ;;  %v3021_v7 = vld [vmem:[%s4064_s1 + $0x68] ss:$12 sps:$4 sm:$0xff]  }
 0x23a   :  { %1117 = vmatprep.subr.bf16.mxu0 %v3313_v8  ;;  %v3022_v8 = vld [vmem:[%s4064_s1 + $0x80] ss:$12 sps:$4 sm:$0xff]  }
 0x23b   :  { %2870 = vmatpush3.bf16.msra.mxu1 %v3019_v5  ;;  %v3651_v5 = vld [vmem:[%s4064_s1] ss:$12 sps:$4 sm:$0xff]  }
 0x23c   :  { %2871 = vmatprep.subr.bf16.mxu1 %v3242_v1 }
 0x23d   :  { %1118 = vmatpush1.bf16.msra.mxu0 %v3322_v10  ;;  %v3023_v10 = vld [vmem:[%s4064_s1 + $0x98] ss:$12 sps:$4 sm:$0xff]  }
 0x23e   :  { %1119 = vmatprep.subr.bf16.mxu0 %v3328_v11  ;;  %v3024_v11 = vld [vmem:[%s4064_s1 + $0xb0] ss:$12 sps:$4 sm:$0xff]  }
 0x23f   :  { %2872 = vmatpush3.bf16.msra.mxu1 %v3020_v6  ;;  %v3028_v6 = vld [vmem:[%s4064_s1 + $0x8] ss:$12 sps:$4 sm:$0xff]  }
 0x240   :  { %2873 = vmatprep.subr.bf16.mxu1 %v3242_v1 }
 0x241   :  { %1120 = vmatpush1.bf16.msra.mxu0 %v3337_v13  ;;  %v2529_v13 = vld [vmem:[%s4065_s0 + $0x30] sm:$0xff] }
 0x242   :  { %1121 = vmatprep.subr.bf16.mxu0 %v3347_v15  ;;  %v2531_v15 = vld [vmem:[%s4065_s0 + $0x3c] sm:$0xff] }
 0x243   :  { %2874 = vmatpush3.bf16.msra.mxu1 %v3021_v7  ;;  %v645_v12 = vunpack.c.h.bf16 %v2531_v15  ;;  %v3661_v7 = vld [vmem:[%s4064_s1 + $0x1c] ss:$12 sps:$4 sm:$0xff]  }
 0x244   :  { %2875 = vmatprep.subr.bf16.mxu1 %v3242_v1 }
 0x245   :  { %1122 = vmatpush1.bf16.msra.mxu0 %v3353_v16  ;;  %v641_v16 = vunpack.c.l.bf16 %v2529_v13 }
 0x246   :  { %1123 = vmatprep.subr.bf16.mxu0 %v3358_v17  ;;  %v644_v17 = vunpack.c.l.bf16 %v2531_v15  ;;  %v3036_v15 = vld [vmem:[%s4064_s1 + $0x38] ss:$12 sps:$4 sm:$0xff]  }
 0x247   :  { %2876 = vmatpush3.bf16.msra.mxu1 %v3022_v8  ;;  %v3667_v8 = vld [vmem:[%s4064_s1 + $0x18] ss:$12 sps:$4 sm:$0xff]  }
 0x248   :  { %2877 = vmatprep.subr.bf16.mxu1 %v3242_v1 }
 0x249   :  { %1124 = vmatpush1.bf16.msra.mxu0 %v3369_v19 }
 0x24a   :  { %1125 = vmatprep.subr.bf16.mxu0 %v3377_v21 }
 0x24b   :  { %2878 = vmatpush3.bf16.msra.mxu1 %v3023_v10  ;;  %v3032_v10 = vld [vmem:[%s4064_s1 + $0x20] ss:$12 sps:$4 sm:$0xff]  }
 0x24c   :  { %2879 = vmatprep.subr.bf16.mxu1 %v3242_v1 }
 0x24d   :  { %1126 = vmatpush1.bf16.msra.mxu0 %v3385_v22  ;;  %v642_v22 = vunpack.c.h.bf16 %v2529_v13  ;;  %v3683_v13 = vld [vmem:[%s4064_s1 + $0x30] ss:$12 sps:$4 sm:$0xff]  }
 0x24f   :  { %2880 = vmatpush3.bf16.msra.mxu1 %v3024_v11  ;;  %v3677_v11 = vld [vmem:[%s4064_s1 + $0x34] ss:$12 sps:$4 sm:$0xff]  }
 0x250   :  { %2885 = vmatprep.subr.bf16.mxu1 %v3242_v1 }
 0x303   :  { %v842_v19 = vpop.f32.mrb[8].mxu0  ;;  %v885_v21 = vpop.f32.mrb[8].mxu1 }
 0x304   :  { %v892_v42 = vadd.f32 %v842_v19, %v641_v16  ;;  %v844_v60 = vpop.f32.mrb[9].mxu0  ;;  %v2863_v61 = vpop.f32.mrb[9].mxu1  ;;  %v920_v38 = vadd.f32 %v3464_v62, %v885_v21  ;;  %v3693_v16 = vld [vmem:[%s4064_s1 + $0x4c] ss:$12 sps:$4 sm:$0xff]   ;;  %v3040_v19 = vld [vmem:[%s4064_s1 + $0x50] ss:$12 sps:$4 sm:$0xff]  }
 0x305   :  { %v846_v63 = vpop.f32.mrb[10].mxu0  ;;  %v888_v9 = vpop.f32.mrb[10].mxu1  ;;  %v906_v24 = vadd.f32 %v844_v60, %v642_v22  ;;  %v3709_v21 = vld [vmem:[%s4064_s1 + $0x64] ss:$12 sps:$4 sm:$0xff]   ;;  %v3715_v22 = vld [vmem:[%s4064_s1 + $0x60] ss:$12 sps:$4 sm:$0xff]  }
 0x306   :  { %v2557_v14 = vmul.f32 -1.442695, %v892_v42  ;;  %v893_v18 = vadd.f32 %v846_v63, %v644_v17  ;;  %v848_v20 = vpop.f32.mrb[11].mxu0  ;;  %v2864_v23 = vpop.f32.mrb[11].mxu1  ;;  %v921_v45 = vadd.f32 %v3464_v62, %v888_v9  ;;  %v3699_v17 = vld [vmem:[%s4064_s1 + $0x48] ss:$12 sps:$4 sm:$0xff]  }
 0x307   :  { %v907_v26 = vadd.f32 %v848_v20, %v645_v12  ;;  %v2559_v27 = vmul.f32 -1.442695, %v906_v24  ;;  %v3044_v42 = vld [vmem:[%s4064_s1 + $0x68] ss:$12 sps:$4 sm:$0xff]   ;;  %v3730_v61 = vld [vmem:[%s4064_s1 + $0x78] ss:$12 sps:$4 sm:$0xff]  }
 0x308   :  { %3121 = vpow2.f32 %v2557_v14  ;;  %v2558_v25 = vmul.f32 -1.442695, %v893_v18  ;;  %v3724_v60 = vld [vmem:[%s4064_s1 + $0x7c] ss:$12 sps:$4 sm:$0xff]   ;;  %v3048_v63 = vld [vmem:[%s4064_s1 + $0x80] ss:$12 sps:$4 sm:$0xff]  }
 0x309   :  { %v2560_v28 = vmul.f32 -1.442695, %v907_v26  ;;  %v3740_v9 = vld [vmem:[%s4064_s1 + $0x94] ss:$12 sps:$4 sm:$0xff]   ;;  %v3746_v12 = vld [vmem:[%s4064_s1 + $0x90] ss:$12 sps:$4 sm:$0xff]  }
 0x30a   :  { %3123 = vpow2.f32 %v2558_v25  ;;  %v3052_v14 = vld [vmem:[%s4064_s1 + $0x98] ss:$12 sps:$4 sm:$0xff]   ;;  %v3762_v20 = vld [vmem:[%s4064_s1 + $0xa8] ss:$12 sps:$4 sm:$0xff]   ;;  %v3056_v23 = vld [vmem:[%s4064_s1 + $0xb0] ss:$12 sps:$4 sm:$0xff]  }
 0x30b   :  { %3125 = vpow2.f32 %v2559_v27  ;;  %v3756_v18 = vld [vmem:[%s4064_s1 + $0xac] ss:$12 sps:$4 sm:$0xff]  }
 0x30c   :  { %3127 = vpow2.f32 %v2560_v28  ;;  %v2563_v24 = vld [vmem:[%s4065_s0 + $0x48] sm:$0xff]  ;;  %v2565_v25 = vld [vmem:[%s4065_s0 + $0x54] sm:$0xff] }
 0x30d   :  { %v944_v26 = vunpack.c.l.bf16 %v2563_v24  ;;  %v947_v27 = vunpack.c.l.bf16 %v2565_v25 }
 0x312   :  { %v3122_v29 = vpop.eup %3121 }
 0x313   :  { %v900_v30 = vadd.f32 1.0, %v3122_v29 }
 0x314   :  { %v3124_v31 = vpop.eup %3123 }
 0x315   :  { %3129 = vrcp.f32 %v900_v30  ;;  %v901_v32 = vadd.f32 1.0, %v3124_v31  ;;  %v3126_v33 = vpop.eup %3125  ;;  %v945_v30 = vunpack.c.h.bf16 %v2563_v24 }
 0x316   :  { %v3128_v34 = vpop.eup %3127  ;;  %v914_v36 = vadd.f32 1.0, %v3126_v33 }
 0x317   :  { %3131 = vrcp.f32 %v901_v32  ;;  %v915_v39 = vadd.f32 1.0, %v3128_v34 }
 0x318   :  { %3133 = vrcp.f32 %v914_v36  ;;  %v948_v36 = vunpack.c.h.bf16 %v2565_v25 }
 0x319   :  { %3135 = vrcp.f32 %v915_v39 }
 0x31f   :  { %v3130_v40 = vpop.eup %3129 }
 0x320   :  { %v922_v43 = vmul.f32 %v3130_v40, %v920_v38 }
 0x321   :  { %v3132_v46 = vpop.eup %3131 }
 0x322   :  { %v924_v0 = vadd.f32 %v922_v43, %v643_v37  ;;  %v923_v47 = vmul.f32 %v3132_v46, %v921_v45  ;;  %v3134_v49 = vpop.eup %3133 }
 0x323   :  { %v3136_v50 = vpop.eup %3135  ;;  %v928_v51 = vsub.f32 1.0, %v3134_v49  ;;  %v932_v55 = vmul.f32 %v3134_v49, %v3549_v58 }
 0x324   :  { %3137 = vtanh.f32 %v924_v0  ;;  %v925_v48 = vadd.f32 %v923_v47, %v646_v44  ;;  %v929_v53 = vsub.f32 1.0, %v3136_v50  ;;  %v933_v41 = vmul.f32 %v3136_v50, %v3551_v59  ;;  %v3646_v59 = vld [vmem:[%s4064_s1 + $0x4] ss:$12 sps:$4 sm:$0xff]  }
 0x325   :  { %1414 = vmatprep.subr.bf16.mxu0 %v3646_v59 }
 0x326   :  { %3139 = vtanh.f32 %v925_v48 }
 0x32e   :  { %v3138_v52 = vpop.eup %3137 }
 0x32f   :  { %v930_v54 = vmul.f32 %v3138_v52, %v928_v51 }
 0x330   :  { %v3140_v56 = vpop.eup %3139 }
 0x331   :  { %v931_v57 = vmul.f32 %v3140_v56, %v929_v53  ;;  %v3626_v3 = vadd.f32 %v932_v55, %v930_v54  ;;  %v2564_v53 = vld [vmem:[%s4065_s0 + $0x50] ss:$12 sps:$4 sm:$0xff]  }
 0x332   :  { %v946_v55 = vunpack.c.l.bf16 %v2564_v53 }
 0x333   :  { %v3628_v4 = vadd.f32 %v933_v41, %v931_v57  ;;  %2561 = vst [vmem:[%s4067_s3 + $0x20] sm:$0xff] %v3626_v3 }
 0x335   :  { %2562 = vst [vmem:[%s4067_s3 + $0x28] sm:$0xff] %v3628_v4  ;;  %v950_v58 = vpack.c.bf16 %v3628_v4, %v3626_v3 }
 0x337   :  { %1144 = vmatmul.mubr.bf16.vlgmr.msra.gmra.mrb[12].mxu0 %v950_v58  ;;  %2882 = vmatmul.mubr.bf16.vlgmr.msra.gmra.mrb[12].mxu1 %v950_v58 }
 0x338   :  { %1446 = vmatprep.mubr.bf16.mxu0 %v3243_v2  ;;  %2901 = vmatprep.mubr.msk.bf16.mxu1 %vm3244_vm0, %v3242_v1 }
 0x339   :  { %1415 = vmatpush1.bf16.msra.mxu0 %v3651_v5  ;;  %2886 = vmatpush3.bf16.msra.mxu1 %v3028_v6  ;;  %v949_v6 = vunpack.c.h.bf16 %v2564_v53 }
 0x33a   :  { %2887 = vmatprep.subr.bf16.mxu1 %v3242_v1  ;;  %1416 = vmatprep.subr.bf16.mxu0 %v3661_v7 }
 0x33d   :  { %1417 = vmatpush1.bf16.msra.mxu0 %v3667_v8  ;;  %2888 = vmatpush3.bf16.msra.mxu1 %v3032_v10 }
 0x33e   :  { %2889 = vmatprep.subr.bf16.mxu1 %v3242_v1  ;;  %1418 = vmatprep.subr.bf16.mxu0 %v3677_v11 }
 0x341   :  { %1419 = vmatpush1.bf16.msra.mxu0 %v3683_v13  ;;  %2890 = vmatpush3.bf16.msra.mxu1 %v3036_v15 }
 0x342   :  { %2891 = vmatprep.subr.bf16.mxu1 %v3242_v1  ;;  %1420 = vmatprep.subr.bf16.mxu0 %v3693_v16 }
 0x345   :  { %1421 = vmatpush1.bf16.msra.mxu0 %v3699_v17  ;;  %2892 = vmatpush3.bf16.msra.mxu1 %v3040_v19 }
 0x346   :  { %2893 = vmatprep.subr.bf16.mxu1 %v3242_v1  ;;  %1422 = vmatprep.subr.bf16.mxu0 %v3709_v21 }
 0x349   :  { %1423 = vmatpush1.bf16.msra.mxu0 %v3715_v22  ;;  %2894 = vmatpush3.bf16.msra.mxu1 %v3044_v42 }
 0x34a   :  { %1424 = vmatprep.subr.bf16.mxu0 %v3724_v60  ;;  %2895 = vmatprep.subr.bf16.mxu1 %v3242_v1 }
 0x34d   :  { %1425 = vmatpush1.bf16.msra.mxu0 %v3730_v61  ;;  %2896 = vmatpush3.bf16.msra.mxu1 %v3048_v63 }
 0x34e   :  { %1426 = vmatprep.subr.bf16.mxu0 %v3740_v9  ;;  %2897 = vmatprep.subr.bf16.mxu1 %v3242_v1 }
 0x351   :  { %1427 = vmatpush1.bf16.msra.mxu0 %v3746_v12  ;;  %2898 = vmatpush3.bf16.msra.mxu1 %v3052_v14 }
 0x352   :  { %1428 = vmatprep.subr.bf16.mxu0 %v3756_v18  ;;  %2899 = vmatprep.subr.bf16.mxu1 %v3242_v1 }
 0x355   :  { %1429 = vmatpush1.bf16.msra.mxu0 %v3762_v20  ;;  %2900 = vmatpush3.bf16.msra.mxu1 %v3056_v23 }
 0x356   :  { %1717 = vmatprep.subr.bf16.mxu0 %v3646_v59  ;;  %2905 = vmatprep.subr.bf16.mxu1 %v3242_v1 }
 0x40a   :  { %v1145_v28 = vpop.f32.mrb[12].mxu0  ;;  %v1188_v29 = vpop.f32.mrb[12].mxu1 }
 0x40b   :  { %v1195_v31 = vadd.f32 %v1145_v28, %v944_v26  ;;  %v1147_v32 = vpop.f32.mrb[13].mxu0  ;;  %v2883_v33 = vpop.f32.mrb[13].mxu1  ;;  %v1223_v56 = vadd.f32 %v3464_v62, %v1188_v29 }
 0x40c   :  { %v1149_v34 = vpop.f32.mrb[14].mxu0  ;;  %v1191_v35 = vpop.f32.mrb[14].mxu1  ;;  %v1209_v43 = vadd.f32 %v1147_v32, %v945_v30 }
 0x40d   :  { %v2591_v37 = vmul.f32 -1.442695, %v1195_v31  ;;  %v1196_v38 = vadd.f32 %v1149_v34, %v947_v27  ;;  %v1151_v39 = vpop.f32.mrb[15].mxu0  ;;  %v2884_v40 = vpop.f32.mrb[15].mxu1  ;;  %v1224_v10 = vadd.f32 %v3464_v62, %v1191_v35  ;;  %v3058_v34 = vld [vmem:[%s4064_s1 + $0x20] ss:$12 sps:$4 sm:$0xff]  }
 0x40e   :  { %v1210_v45 = vadd.f32 %v1151_v39, %v948_v36  ;;  %v2593_v46 = vmul.f32 -1.442695, %v1209_v43  ;;  %v3059_v35 = vld [vmem:[%s4064_s1 + $0x38] ss:$12 sps:$4 sm:$0xff]   ;;  %v3060_v36 = vld [vmem:[%s4064_s1 + $0x50] ss:$12 sps:$4 sm:$0xff]  }
 0x40f   :  { %3141 = vpow2.f32 %v2591_v37  ;;  %v2592_v44 = vmul.f32 -1.442695, %v1196_v38  ;;  %v3061_v37 = vld [vmem:[%s4064_s1 + $0x68] ss:$12 sps:$4 sm:$0xff]   ;;  %v3062_v38 = vld [vmem:[%s4064_s1 + $0x80] ss:$12 sps:$4 sm:$0xff]  }
 0x410   :  { %v2594_v0 = vmul.f32 -1.442695, %v1210_v45  ;;  %v3063_v39 = vld [vmem:[%s4064_s1 + $0x98] ss:$12 sps:$4 sm:$0xff]   ;;  %v3064_v40 = vld [vmem:[%s4064_s1 + $0xb0] ss:$12 sps:$4 sm:$0xff]  }
 0x411   :  { %3143 = vpow2.f32 %v2592_v44  ;;  %v2597_v43 = vld [vmem:[%s4065_s0 + $0x60] sm:$0xff]  ;;  %v2599_v44 = vld [vmem:[%s4065_s0 + $0x6c] sm:$0xff] }
 0x412   :  { %3145 = vpow2.f32 %v2593_v46  ;;  %v1247_v45 = vunpack.c.l.bf16 %v2597_v43  ;;  %v1250_v46 = vunpack.c.l.bf16 %v2599_v44 }
 0x413   :  { %3147 = vpow2.f32 %v2594_v0 }
 0x419   :  { %v3142_v47 = vpop.eup %3141 }
 0x41a   :  { %v1203_v48 = vadd.f32 1.0, %v3142_v47 }
 0x41b   :  { %v3144_v49 = vpop.eup %3143 }
 0x41c   :  { %3149 = vrcp.f32 %v1203_v48  ;;  %v1204_v50 = vadd.f32 1.0, %v3144_v49  ;;  %v3146_v51 = vpop.eup %3145  ;;  %v1248_v48 = vunpack.c.h.bf16 %v2597_v43 }
 0x41d   :  { %v3148_v52 = vpop.eup %3147  ;;  %v1217_v54 = vadd.f32 1.0, %v3146_v51 }
 0x41e   :  { %3151 = vrcp.f32 %v1204_v50  ;;  %v1218_v57 = vadd.f32 1.0, %v3148_v52 }
 0x41f   :  { %3153 = vrcp.f32 %v1217_v54  ;;  %v1251_v54 = vunpack.c.h.bf16 %v2599_v44 }
 0x420   :  { %3155 = vrcp.f32 %v1218_v57 }
 0x426   :  { %v3150_v41 = vpop.eup %3149 }
 0x427   :  { %v1225_v58 = vmul.f32 %v3150_v41, %v1223_v56 }
 0x428   :  { %v3152_v15 = vpop.eup %3151 }
 0x429   :  { %v1227_v19 = vadd.f32 %v1225_v58, %v946_v55  ;;  %v1226_v42 = vmul.f32 %v3152_v15, %v1224_v10  ;;  %v3154_v14 = vpop.eup %3153 }
 0x42a   :  { %v3156_v23 = vpop.eup %3155  ;;  %v1231_v24 = vsub.f32 1.0, %v3154_v14  ;;  %v1235_v28 = vmul.f32 %v3154_v14, %v3626_v3 }
 0x42b   :  { %3157 = vtanh.f32 %v1227_v19  ;;  %v1228_v63 = vadd.f32 %v1226_v42, %v949_v6  ;;  %v1232_v26 = vsub.f32 1.0, %v3156_v23  ;;  %v1236_v31 = vmul.f32 %v3156_v23, %v3628_v4  ;;  %v3057_v4 = vld [vmem:[%s4064_s1 + $0x8] ss:$12 sps:$4 sm:$0xff]  }
 0x42d   :  { %3159 = vtanh.f32 %v1228_v63 }
 0x435   :  { %v3158_v25 = vpop.eup %3157 }
 0x436   :  { %v1233_v27 = vmul.f32 %v3158_v25, %v1231_v24 }
 0x437   :  { %v3160_v29 = vpop.eup %3159 }
 0x438   :  { %v1234_v30 = vmul.f32 %v3160_v29, %v1232_v26  ;;  %v3785_v32 = vadd.f32 %v1235_v28, %v1233_v27  ;;  %v2598_v26 = vld [vmem:[%s4065_s0 + $0x68] ss:$12 sps:$4 sm:$0xff]  }
 0x439   :  { %v1249_v28 = vunpack.c.l.bf16 %v2598_v26 }
 0x43a   :  { %v3787_v33 = vadd.f32 %v1236_v31, %v1234_v30  ;;  %2595 = vst [vmem:[%s4067_s3 + $0x30] sm:$0xff] %v3785_v32 }
 0x43c   :  { %2596 = vst [vmem:[%s4067_s3 + $0x38] sm:$0xff] %v3787_v33  ;;  %v1253_v3 = vpack.c.bf16 %v3787_v33, %v3785_v32 }
 0x43e   :  { %1447 = vmatmul.mubr.bf16.vlgmr.msra.gmra.mrb[16].mxu0 %v1253_v3  ;;  %2902 = vmatmul.mubr.bf16.vlgmr.msra.gmra.mrb[16].mxu1 %v1253_v3 }
 0x43f   :  { %1718 = vmatpush1.bf16.msra.mxu0 %v3651_v5  ;;  %1749 = vmatprep.mubr.bf16.mxu0 %v3243_v2 }
 0x440   :  { %1719 = vmatprep.subr.bf16.mxu0 %v3661_v7  ;;  %2921 = vmatprep.mubr.msk.bf16.mxu1 %vm3244_vm0, %v3242_v1 }
 0x441   :  { %2906 = vmatpush3.bf16.msra.mxu1 %v3057_v4  ;;  %v1252_v4 = vunpack.c.h.bf16 %v2598_v26 }
 0x442   :  { %2907 = vmatprep.subr.bf16.mxu1 %v3242_v1 }
 0x443   :  { %1720 = vmatpush1.bf16.msra.mxu0 %v3667_v8 }
 0x444   :  { %1721 = vmatprep.subr.bf16.mxu0 %v3677_v11 }
 0x445   :  { %2908 = vmatpush3.bf16.msra.mxu1 %v3058_v34 }
 0x446   :  { %2909 = vmatprep.subr.bf16.mxu1 %v3242_v1 }
 0x447   :  { %1722 = vmatpush1.bf16.msra.mxu0 %v3683_v13 }
 0x448   :  { %1723 = vmatprep.subr.bf16.mxu0 %v3693_v16 }
 0x449   :  { %2910 = vmatpush3.bf16.msra.mxu1 %v3059_v35 }
 0x44a   :  { %2911 = vmatprep.subr.bf16.mxu1 %v3242_v1 }
 0x44b   :  { %1724 = vmatpush1.bf16.msra.mxu0 %v3699_v17 }
 0x44c   :  { %1725 = vmatprep.subr.bf16.mxu0 %v3709_v21 }
 0x44d   :  { %2912 = vmatpush3.bf16.msra.mxu1 %v3060_v36 }
 0x44e   :  { %2913 = vmatprep.subr.bf16.mxu1 %v3242_v1 }
 0x44f   :  { %1726 = vmatpush1.bf16.msra.mxu0 %v3715_v22 }
 0x450   :  { %1727 = vmatprep.subr.bf16.mxu0 %v3724_v60 }
 0x451   :  { %2914 = vmatpush3.bf16.msra.mxu1 %v3061_v37 }
 0x452   :  { %2915 = vmatprep.subr.bf16.mxu1 %v3242_v1 }
 0x453   :  { %1728 = vmatpush1.bf16.msra.mxu0 %v3730_v61 }
 0x454   :  { %1729 = vmatprep.subr.bf16.mxu0 %v3740_v9 }
 0x455   :  { %2916 = vmatpush3.bf16.msra.mxu1 %v3062_v38 }
 0x456   :  { %2917 = vmatprep.subr.bf16.mxu1 %v3242_v1 }
 0x457   :  { %1730 = vmatpush1.bf16.msra.mxu0 %v3746_v12 }
 0x458   :  { %1731 = vmatprep.subr.bf16.mxu0 %v3756_v18 }
 0x459   :  { %2918 = vmatpush3.bf16.msra.mxu1 %v3063_v39 }
 0x45a   :  { %2919 = vmatprep.subr.bf16.mxu1 %v3242_v1 }
 0x45b   :  { %1732 = vmatpush1.bf16.msra.mxu0 %v3762_v20 }
 0x45c   :  { %2020 = vmatprep.subr.bf16.mxu0 %v3646_v59 }
 0x45d   :  { %2920 = vmatpush3.bf16.msra.mxu1 %v3064_v40 }
 0x45e   :  { %2925 = vmatprep.subr.bf16.mxu1 %v3242_v1 }
 0x511   :  { %v1448_v0 = vpop.f32.mrb[16].mxu0  ;;  %v1491_v47 = vpop.f32.mrb[16].mxu1 }
 0x512   :  { %v1498_v49 = vadd.f32 %v1448_v0, %v1247_v45  ;;  %v1450_v50 = vpop.f32.mrb[17].mxu0  ;;  %v2903_v51 = vpop.f32.mrb[17].mxu1  ;;  %v1526_v29 = vadd.f32 %v3464_v62, %v1491_v47 }
 0x513   :  { %v1452_v52 = vpop.f32.mrb[18].mxu0  ;;  %v1494_v53 = vpop.f32.mrb[18].mxu1  ;;  %v1512_v58 = vadd.f32 %v1450_v50, %v1248_v48  ;;  %v3066_v51 = vld [vmem:[%s4064_s1 + $0x20] ss:$12 sps:$4 sm:$0xff]  }
 0x514   :  { %v2625_v55 = vmul.f32 -1.442695, %v1498_v49  ;;  %v1499_v56 = vadd.f32 %v1452_v52, %v1250_v46  ;;  %v1454_v57 = vpop.f32.mrb[19].mxu0  ;;  %v2904_v41 = vpop.f32.mrb[19].mxu1  ;;  %v1527_v34 = vadd.f32 %v3464_v62, %v1494_v53  ;;  %v3067_v52 = vld [vmem:[%s4064_s1 + $0x38] ss:$12 sps:$4 sm:$0xff]  }
 0x515   :  { %v1513_v10 = vadd.f32 %v1454_v57, %v1251_v54  ;;  %v2627_v15 = vmul.f32 -1.442695, %v1512_v58  ;;  %v3069_v53 = vld [vmem:[%s4064_s1 + $0x68] ss:$12 sps:$4 sm:$0xff]   ;;  %v3070_v54 = vld [vmem:[%s4064_s1 + $0x80] ss:$12 sps:$4 sm:$0xff]  }
 0x516   :  { %3161 = vpow2.f32 %v2625_v55  ;;  %v2626_v6 = vmul.f32 -1.442695, %v1499_v56  ;;  %v3071_v55 = vld [vmem:[%s4064_s1 + $0x98] ss:$12 sps:$4 sm:$0xff]   ;;  %v3072_v56 = vld [vmem:[%s4064_s1 + $0xb0] ss:$12 sps:$4 sm:$0xff]  }
 0x517   :  { %v2628_v19 = vmul.f32 -1.442695, %v1513_v10  ;;  %v2631_v57 = vld [vmem:[%s4065_s0 + $0x78] sm:$0xff]  ;;  %v2633_v41 = vld [vmem:[%s4065_s0 + $0x84] sm:$0xff] }
 0x518   :  { %3163 = vpow2.f32 %v2626_v6  ;;  %v1550_v58 = vunpack.c.l.bf16 %v2631_v57  ;;  %v1553_v6 = vunpack.c.l.bf16 %v2633_v41 }
 0x519   :  { %3165 = vpow2.f32 %v2627_v15 }
 0x51a   :  { %3167 = vpow2.f32 %v2628_v19  ;;  %v1551_v19 = vunpack.c.h.bf16 %v2631_v57 }
 0x520   :  { %v3162_v42 = vpop.eup %3161 }
 0x521   :  { %v1506_v63 = vadd.f32 1.0, %v3162_v42 }
 0x522   :  { %v3164_v14 = vpop.eup %3163 }
 0x523   :  { %3169 = vrcp.f32 %v1506_v63  ;;  %v1507_v23 = vadd.f32 1.0, %v3164_v14  ;;  %v3166_v24 = vpop.eup %3165 }
 0x524   :  { %v3168_v25 = vpop.eup %3167  ;;  %v1520_v27 = vadd.f32 1.0, %v3166_v24 }
 0x525   :  { %3171 = vrcp.f32 %v1507_v23  ;;  %v1521_v30 = vadd.f32 1.0, %v3168_v25  ;;  %v1554_v25 = vunpack.c.h.bf16 %v2633_v41 }
 0x526   :  { %3173 = vrcp.f32 %v1520_v27 }
 0x527   :  { %3175 = vrcp.f32 %v1521_v30 }
 0x52d   :  { %v3170_v31 = vpop.eup %3169 }
 0x52e   :  { %v1528_v3 = vmul.f32 %v3170_v31, %v1526_v29 }
 0x52f   :  { %v3172_v35 = vpop.eup %3171 }
 0x530   :  { %v1530_v36 = vadd.f32 %v1528_v3, %v1249_v28  ;;  %v1529_v37 = vmul.f32 %v3172_v35, %v1527_v34  ;;  %v3174_v39 = vpop.eup %3173 }
 0x531   :  { %v3176_v40 = vpop.eup %3175  ;;  %v1534_v43 = vsub.f32 1.0, %v3174_v39  ;;  %v1538_v0 = vmul.f32 %v3174_v39, %v3785_v32 }
 0x532   :  { %3177 = vtanh.f32 %v1530_v36  ;;  %v1531_v38 = vadd.f32 %v1529_v37, %v1252_v4  ;;  %v1535_v45 = vsub.f32 1.0, %v3176_v40  ;;  %v1539_v49 = vmul.f32 %v3176_v40, %v3787_v33  ;;  %v3065_v33 = vld [vmem:[%s4064_s1 + $0x8] ss:$12 sps:$4 sm:$0xff]  }
 0x534   :  { %3179 = vtanh.f32 %v1531_v38 }
 0x53c   :  { %v3178_v44 = vpop.eup %3177 }
 0x53d   :  { %v1536_v46 = vmul.f32 %v3178_v44, %v1534_v43  ;;  %v2632_v43 = vld [vmem:[%s4065_s0 + $0x80] ss:$12 sps:$4 sm:$0xff]  }
 0x53e   :  { %v3180_v47 = vpop.eup %3179 }
 0x53f   :  { %v1537_v48 = vmul.f32 %v3180_v47, %v1535_v45  ;;  %v3863_v62 = vadd.f32 %v1538_v0, %v1536_v46  ;;  %v1552_v45 = vunpack.c.l.bf16 %v2632_v43  ;;  %v3940_v46 = vld [vmem:[%s4066_s2] ss:$0 sm:$0xff] }
 0x541   :  { %v3865_v50 = vadd.f32 %v1539_v49, %v1537_v48  ;;  %2629 = vst [vmem:[%s4067_s3 + $0x40] sm:$0xff] %v3863_v62 }
 0x543   :  { %2630 = vst [vmem:[%s4067_s3 + $0x48] sm:$0xff] %v3865_v50  ;;  %v1556_v32 = vpack.c.bf16 %v3865_v50, %v3863_v62 }
 0x545   :  { %1750 = vmatmul.mubr.bf16.vlgmr.msra.gmra.mrb[20].mxu0 %v1556_v32  ;;  %2922 = vmatmul.mubr.bf16.vlgmr.msra.gmra.mrb[20].mxu1 %v1556_v32  ;;  %v1555_v32 = vunpack.c.h.bf16 %v2632_v43 }
 0x546   :  { %2021 = vmatpush1.bf16.msra.mxu0 %v3651_v5  ;;  %2052 = vmatprep.mubr.bf16.mxu0 %v3243_v2 }
 0x547   :  { %2022 = vmatprep.subr.bf16.mxu0 %v3661_v7  ;;  %2941 = vmatprep.mubr.msk.bf16.mxu1 %vm3244_vm0, %v3242_v1 }
 0x548   :  { %2926 = vmatpush3.bf16.msra.mxu1 %v3065_v33 }
 0x549   :  { %2927 = vmatprep.subr.bf16.mxu1 %v3242_v1 }
 0x54a   :  { %2023 = vmatpush1.bf16.msra.mxu0 %v3667_v8 }
 0x54b   :  { %2024 = vmatprep.subr.bf16.mxu0 %v3677_v11 }
 0x54c   :  { %2928 = vmatpush3.bf16.msra.mxu1 %v3066_v51 }
 0x54d   :  { %2929 = vmatprep.subr.bf16.mxu1 %v3242_v1 }
 0x54e   :  { %2025 = vmatpush1.bf16.msra.mxu0 %v3683_v13 }
 0x54f   :  { %2026 = vmatprep.subr.bf16.mxu0 %v3693_v16 }
 0x550   :  { %2930 = vmatpush3.bf16.msra.mxu1 %v3067_v52 }
 0x551   :  { %2931 = vmatprep.subr.bf16.mxu1 %v3242_v1 }
 0x552   :  { %2027 = vmatpush1.bf16.msra.mxu0 %v3699_v17 }
 0x553   :  { %2028 = vmatprep.subr.bf16.mxu0 %v3709_v21 }
 0x556   :  { %2029 = vmatpush1.bf16.msra.mxu0 %v3715_v22 }
 0x557   :  { %2030 = vmatprep.subr.bf16.mxu0 %v3724_v60 }
 0x55a   :  { %2031 = vmatpush1.bf16.msra.mxu0 %v3730_v61 }
 0x55b   :  { %2032 = vmatprep.subr.bf16.mxu0 %v3740_v9 }
 0x55e   :  { %2033 = vmatpush1.bf16.msra.mxu0 %v3746_v12 }
 0x55f   :  { %2034 = vmatprep.subr.bf16.mxu0 %v3756_v18 }
 0x562   :  { %2035 = vmatpush1.bf16.msra.mxu0 %v3762_v20 }
 0x563   :  { %2323 = vmatprep.subr.bf16.mxu0 %v3646_v59  ;;  %v3068_v59 = vld [vmem:[%s4064_s1 + $0x50] ss:$12 sps:$4 sm:$0xff]  }
 0x564   :  { %2932 = vmatpush3.bf16.msra.mxu1 %v3068_v59 }
 0x565   :  { %2933 = vmatprep.subr.bf16.mxu1 %v3242_v1 }
 0x568   :  { %2934 = vmatpush3.bf16.msra.mxu1 %v3069_v53 }
 0x569   :  { %2935 = vmatprep.subr.bf16.mxu1 %v3242_v1 }
 0x56c   :  { %2936 = vmatpush3.bf16.msra.mxu1 %v3070_v54 }
 0x56d   :  { %2937 = vmatprep.subr.bf16.mxu1 %v3242_v1 }
 0x570   :  { %2938 = vmatpush3.bf16.msra.mxu1 %v3071_v55 }
 0x571   :  { %2939 = vmatprep.subr.bf16.mxu1 %v3242_v1 }
 0x574   :  { %2940 = vmatpush3.bf16.msra.mxu1 %v3072_v56 }
 0x575   :  { %2945 = vmatprep.subr.bf16.mxu1 %v3242_v1 }
 0x618   :  { %v1751_v10 = vpop.f32.mrb[20].mxu0  ;;  %v1794_v15 = vpop.f32.mrb[20].mxu1 }
 0x619   :  { %v1801_v42 = vadd.f32 %v1751_v10, %v1550_v58  ;;  %v1753_v63 = vpop.f32.mrb[21].mxu0  ;;  %v2923_v14 = vpop.f32.mrb[21].mxu1  ;;  %v1829_v0 = vadd.f32 %v3940_v46, %v1794_v15 }
 0x61a   :  { %v1755_v23 = vpop.f32.mrb[22].mxu0  ;;  %v1797_v24 = vpop.f32.mrb[22].mxu1  ;;  %v1815_v30 = vadd.f32 %v1753_v63, %v1551_v19 }
 0x61b   :  { %v2659_v26 = vmul.f32 -1.442695, %v1801_v42  ;;  %v1802_v27 = vadd.f32 %v1755_v23, %v1553_v6  ;;  %v1757_v28 = vpop.f32.mrb[23].mxu0  ;;  %v2924_v29 = vpop.f32.mrb[23].mxu1  ;;  %v1830_v33 = vadd.f32 %v3940_v46, %v1797_v24 }
 0x61c   :  { %v1816_v3 = vadd.f32 %v1757_v28, %v1554_v25  ;;  %v2661_v4 = vmul.f32 -1.442695, %v1815_v30 }
 0x61d   :  { %3181 = vpow2.f32 %v2659_v26  ;;  %v2660_v31 = vmul.f32 -1.442695, %v1802_v27 }
 0x61e   :  { %v2662_v34 = vmul.f32 -1.442695, %v1816_v3 }
 0x61f   :  { %3183 = vpow2.f32 %v2660_v31 }
 0x620   :  { %3185 = vpow2.f32 %v2661_v4 }
 0x621   :  { %3187 = vpow2.f32 %v2662_v34 }
 0x627   :  { %v3182_v35 = vpop.eup %3181 }
 0x628   :  { %v1809_v36 = vadd.f32 1.0, %v3182_v35 }
 0x629   :  { %v3184_v37 = vpop.eup %3183 }
 0x62a   :  { %3189 = vrcp.f32 %v1809_v36  ;;  %v1810_v38 = vadd.f32 1.0, %v3184_v37  ;;  %v3186_v39 = vpop.eup %3185 }
 0x62b   :  { %v3188_v40 = vpop.eup %3187  ;;  %v1823_v44 = vadd.f32 1.0, %v3186_v39 }
 0x62c   :  { %3191 = vrcp.f32 %v1810_v38  ;;  %v1824_v47 = vadd.f32 1.0, %v3188_v40  ;;  %v2666_v40 = vld [vmem:[%s4065_s0 + $0x98] ss:$12 sps:$4 sm:$0xff]  }
 0x62d   :  { %3193 = vrcp.f32 %v1823_v44  ;;  %v1855_v44 = vunpack.c.l.bf16 %v2666_v40 }
 0x62e   :  { %3195 = vrcp.f32 %v1824_v47 }
 0x634   :  { %v3190_v48 = vpop.eup %3189 }
 0x635   :  { %v1831_v49 = vmul.f32 %v3190_v48, %v1829_v0 }
 0x636   :  { %v3192_v51 = vpop.eup %3191 }
 0x637   :  { %v1833_v52 = vadd.f32 %v1831_v49, %v1552_v45  ;;  %v1832_v59 = vmul.f32 %v3192_v51, %v1830_v33  ;;  %v3194_v54 = vpop.eup %3193  ;;  %v1858_v49 = vunpack.c.h.bf16 %v2666_v40 }
 0x638   :  { %v3196_v55 = vpop.eup %3195  ;;  %v1837_v56 = vsub.f32 1.0, %v3194_v54  ;;  %v1841_v6 = vmul.f32 %v3194_v54, %v3863_v62 }
 0x639   :  { %3197 = vtanh.f32 %v1833_v52  ;;  %v1834_v53 = vadd.f32 %v1832_v59, %v1555_v32  ;;  %v1838_v41 = vsub.f32 1.0, %v3196_v55  ;;  %v1842_v19 = vmul.f32 %v3196_v55, %v3865_v50 }
 0x63b   :  { %3199 = vtanh.f32 %v1834_v53 }
 0x643   :  { %v3198_v57 = vpop.eup %3197 }
 0x644   :  { %v1839_v58 = vmul.f32 %v3198_v57, %v1837_v56 }
 0x645   :  { %v3200_v10 = vpop.eup %3199 }
 0x646   :  { %v1840_v15 = vmul.f32 %v3200_v10, %v1838_v41  ;;  %v3946_v42 = vadd.f32 %v1841_v6, %v1839_v58 }
 0x648   :  { %v3948_v63 = vadd.f32 %v1842_v19, %v1840_v15  ;;  %2663 = vst [vmem:[%s4067_s3 + $0x50] sm:$0xff] %v3946_v42 }
 0x64a   :  { %2664 = vst [vmem:[%s4067_s3 + $0x58] sm:$0xff] %v3948_v63  ;;  %v1859_v62 = vpack.c.bf16 %v3948_v63, %v3946_v42 }
 0x64c   :  { %2053 = vmatmul.mubr.bf16.vlgmr.msra.gmra.mrb[24].mxu0 %v1859_v62  ;;  %2942 = vmatmul.mubr.bf16.vlgmr.msra.gmra.mrb[24].mxu1 %v1859_v62 }
 0x64d   :  { %2324 = vmatpush1.bf16.msra.mxu0 %v3651_v5  ;;  %2355 = vmatprep.mubr.bf16.mxu0 %v3243_v2  ;;  %v3073_v2 = vld [vmem:[%s4064_s1 + $0x8] ss:$12 sps:$4 sm:$0xff]   ;;  %v3074_v5 = vld [vmem:[%s4064_s1 + $0x20] ss:$12 sps:$4 sm:$0xff]  }
 0x64e   :  { %2325 = vmatprep.subr.bf16.mxu0 %v3661_v7  ;;  %2961 = vmatprep.mubr.msk.bf16.mxu1 %vm3244_vm0, %v3242_v1  ;;  %v3075_v7 = vld [vmem:[%s4064_s1 + $0x38] ss:$12 sps:$4 sm:$0xff]  }
 0x64f   :  { %2946 = vmatpush3.bf16.msra.mxu1 %v3073_v2  ;;  %v2701_v2 = vld [vmem:[%s4065_s0 + $0xb4] sm:$0xff] }
 0x650   :  { %2947 = vmatprep.subr.bf16.mxu1 %v3242_v1 }
 0x651   :  { %2326 = vmatpush1.bf16.msra.mxu0 %v3667_v8  ;;  %v3076_v8 = vld [vmem:[%s4064_s1 + $0x50] ss:$12 sps:$4 sm:$0xff]  }
 0x652   :  { %2327 = vmatprep.subr.bf16.mxu0 %v3677_v11  ;;  %v3077_v11 = vld [vmem:[%s4064_s1 + $0x68] ss:$12 sps:$4 sm:$0xff]  }
 0x653   :  { %2948 = vmatpush3.bf16.msra.mxu1 %v3074_v5 }
 0x654   :  { %2949 = vmatprep.subr.bf16.mxu1 %v3242_v1 }
 0x655   :  { %2328 = vmatpush1.bf16.msra.mxu0 %v3683_v13  ;;  %v3078_v13 = vld [vmem:[%s4064_s1 + $0x80] ss:$12 sps:$4 sm:$0xff]  }
 0x656   :  { %2329 = vmatprep.subr.bf16.mxu0 %v3693_v16  ;;  %v3079_v16 = vld [vmem:[%s4064_s1 + $0x98] ss:$12 sps:$4 sm:$0xff]  }
 0x657   :  { %2950 = vmatpush3.bf16.msra.mxu1 %v3075_v7  ;;  %v2159_v7 = vunpack.c.l.bf16 %v2701_v2 }
 0x658   :  { %2951 = vmatprep.subr.bf16.mxu1 %v3242_v1 }
 0x659   :  { %2330 = vmatpush1.bf16.msra.mxu0 %v3699_v17  ;;  %v3080_v17 = vld [vmem:[%s4064_s1 + $0xb0] ss:$12 sps:$4 sm:$0xff]  }
 0x65a   :  { %2331 = vmatprep.subr.bf16.mxu0 %v3709_v21  ;;  %v2665_v21 = vld [vmem:[%s4065_s0 + $0x90] sm:$0xff] }
 0x65b   :  { %2952 = vmatpush3.bf16.msra.mxu1 %v3076_v8 }
 0x65c   :  { %2953 = vmatprep.subr.bf16.mxu1 %v3242_v1 }
 0x65d   :  { %2332 = vmatpush1.bf16.msra.mxu0 %v3715_v22  ;;  %v2667_v22 = vld [vmem:[%s4065_s0 + $0x9c] sm:$0xff] }
 0x65e   :  { %2333 = vmatprep.subr.bf16.mxu0 %v3724_v60  ;;  %v1853_v60 = vunpack.c.l.bf16 %v2665_v21 }
 0x65f   :  { %2954 = vmatpush3.bf16.msra.mxu1 %v3077_v11 }
 0x660   :  { %2955 = vmatprep.subr.bf16.mxu1 %v3242_v1 }
 0x661   :  { %2334 = vmatpush1.bf16.msra.mxu0 %v3730_v61  ;;  %v1856_v61 = vunpack.c.l.bf16 %v2667_v22 }
 0x662   :  { %2335 = vmatprep.subr.bf16.mxu0 %v3740_v9 }
 0x663   :  { %2956 = vmatpush3.bf16.msra.mxu1 %v3078_v13 }
 0x664   :  { %2957 = vmatprep.subr.bf16.mxu1 %v3242_v1 }
 0x665   :  { %2336 = vmatpush1.bf16.msra.mxu0 %v3746_v12 }
 0x666   :  { %2337 = vmatprep.subr.bf16.mxu0 %v3756_v18  ;;  %v1854_v18 = vunpack.c.h.bf16 %v2665_v21 }
 0x667   :  { %2958 = vmatpush3.bf16.msra.mxu1 %v3079_v16 }
 0x668   :  { %2959 = vmatprep.subr.bf16.mxu1 %v3242_v1  ;;  %v1857_v1 = vunpack.c.h.bf16 %v2667_v22 }
 0x669   :  { %2338 = vmatpush1.bf16.msra.mxu0 %v3762_v20 }
 0x66b   :  { %2960 = vmatpush3.bf16.msra.mxu1 %v3080_v17 }
 0x71f   :  { %v2054_v9 = vpop.f32.mrb[24].mxu0  ;;  %v2097_v12 = vpop.f32.mrb[24].mxu1 }
 0x720   :  { %v2104_v20 = vadd.f32 %v2054_v9, %v1853_v60  ;;  %v2056_v50 = vpop.f32.mrb[25].mxu0  ;;  %v2943_v14 = vpop.f32.mrb[25].mxu1  ;;  %v2132_v45 = vadd.f32 %v3940_v46, %v2097_v12 }
 0x721   :  { %v2058_v23 = vpop.f32.mrb[26].mxu0  ;;  %v2100_v24 = vpop.f32.mrb[26].mxu1  ;;  %v2118_v29 = vadd.f32 %v2056_v50, %v1854_v18 }
 0x722   :  { %v2693_v25 = vmul.f32 -1.442695, %v2104_v20  ;;  %v2105_v26 = vadd.f32 %v2058_v23, %v1856_v61  ;;  %v2060_v27 = vpop.f32.mrb[27].mxu0  ;;  %v2944_v28 = vpop.f32.mrb[27].mxu1  ;;  %v2133_v32 = vadd.f32 %v3940_v46, %v2100_v24  ;;  %v2160_v61 = vunpack.c.h.bf16 %v2701_v2 }
 0x723   :  { %v2119_v31 = vadd.f32 %v2060_v27, %v1857_v1  ;;  %v2695_v3 = vmul.f32 -1.442695, %v2118_v29 }
 0x724   :  { %3201 = vpow2.f32 %v2693_v25  ;;  %v2694_v30 = vmul.f32 -1.442695, %v2105_v26 }
 0x725   :  { %v2696_v4 = vmul.f32 -1.442695, %v2119_v31  ;;  %v2700_v31 = vld [vmem:[%s4065_s0 + $0xb0] sm:$0xf] }
 0x726   :  { %3203 = vpow2.f32 %v2694_v30 }
 0x727   :  { %3205 = vpow2.f32 %v2695_v3 }
 0x728   :  { %3207 = vpow2.f32 %v2696_v4  ;;  %v2702_v4 = vld [vmem:[%s4065_s0 + $0xbc] sm:$0xf] }
 0x72e   :  { %v3202_v34 = vpop.eup %3201 }
 0x72f   :  { %v2112_v35 = vadd.f32 1.0, %v3202_v34  ;;  %v2158_v34 = vunpack.c.l.bf16 %v2700_v31 }
 0x730   :  { %v3204_v36 = vpop.eup %3203 }
 0x731   :  { %3209 = vrcp.f32 %v2112_v35  ;;  %v2113_v37 = vadd.f32 1.0, %v3204_v36  ;;  %v3206_v38 = vpop.eup %3205 }
 0x732   :  { %v3208_v39 = vpop.eup %3207  ;;  %v2126_v43 = vadd.f32 1.0, %v3206_v38 }
 0x733   :  { %3211 = vrcp.f32 %v2113_v37  ;;  %v2127_v0 = vadd.f32 1.0, %v3208_v39  ;;  %v2161_v39 = vunpack.c.l.bf16 %v2702_v4 }
 0x734   :  { %3213 = vrcp.f32 %v2126_v43 }
 0x735   :  { %3215 = vrcp.f32 %v2127_v0 }
 0x73b   :  { %v3210_v47 = vpop.eup %3209 }
 0x73c   :  { %v2134_v48 = vmul.f32 %v3210_v47, %v2132_v45 }
 0x73d   :  { %v3212_v33 = vpop.eup %3211 }
 0x73e   :  { %v2136_v51 = vadd.f32 %v2134_v48, %v1855_v44  ;;  %v2135_v52 = vmul.f32 %v3212_v33, %v2133_v32  ;;  %v3214_v53 = vpop.eup %3213 }
 0x73f   :  { %v3216_v54 = vpop.eup %3215  ;;  %v2140_v55 = vsub.f32 1.0, %v3214_v53  ;;  %v2144_v58 = vmul.f32 %v3214_v53, %v3946_v42 }
 0x740   :  { %3217 = vtanh.f32 %v2136_v51  ;;  %v2137_v59 = vadd.f32 %v2135_v52, %v1858_v49  ;;  %v2141_v57 = vsub.f32 1.0, %v3216_v54  ;;  %v2145_v15 = vmul.f32 %v3216_v54, %v3948_v63  ;;  %v2699_v63 = vld [vmem:[%s4065_s0 + $0xa8] sm:$0xff] }
 0x741   :  { %v2156_v5 = vunpack.c.l.bf16 %v2699_v63  ;;  %v2157_v13 = vunpack.c.h.bf16 %v2699_v63 }
 0x742   :  { %3219 = vtanh.f32 %v2137_v59 }
 0x74a   :  { %v3218_v56 = vpop.eup %3217 }
 0x74b   :  { %v2142_v41 = vmul.f32 %v3218_v56, %v2140_v55 }
 0x74c   :  { %v3220_v6 = vpop.eup %3219 }
 0x74d   :  { %v2143_v10 = vmul.f32 %v3220_v6, %v2141_v57  ;;  %v4022_v19 = vadd.f32 %v2144_v58, %v2142_v41 }
 0x74f   :  { %v4024_v62 = vadd.f32 %v2145_v15, %v2143_v10  ;;  %2697 = vst [vmem:[%s4067_s3 + $0x60] sm:$0xff] %v4022_v19 }
 0x751   :  { %2698 = vst [vmem:[%s4067_s3 + $0x68] sm:$0xff] %v4024_v62  ;;  %v2162_v42 = vpack.c.bf16 %v4024_v62, %v4022_v19 }
 0x753   :  { %2356 = vmatmul.mubr.bf16.vlgmr.msra.gmra.mrb[28].mxu0 %v2162_v42  ;;  %2962 = vmatmul.mubr.bf16.vlgmr.msra.gmra.mrb[28].mxu1 %v2162_v42 }
 0x826   :  { %v2357_v8 = vpop.f32.mrb[28].mxu0  ;;  %v2400_v11 = vpop.f32.mrb[28].mxu1 }
 0x827   :  { %v2407_v16 = vadd.f32 %v2357_v8, %v2156_v5  ;;  %v2359_v17 = vpop.f32.mrb[29].mxu0  ;;  %v2963_v21 = vpop.f32.mrb[29].mxu1  ;;  %v2435_v35 = vadd.f32 %v3940_v46, %v2400_v11 }
 0x828   :  { %v2361_v22 = vpop.f32.mrb[30].mxu0  ;;  %v2403_v60 = vpop.f32.mrb[30].mxu1  ;;  %v2421_v50 = vadd.f32 %v2359_v17, %v2157_v13 }
 0x829   :  { %v2727_v9 = vmul.f32 -1.442695, %v2407_v16  ;;  %v2408_v12 = vadd.f32 %v2361_v22, %v2159_v7  ;;  %v2363_v18 = vpop.f32.mrb[31].mxu0  ;;  %v2964_v20 = vpop.f32.mrb[31].mxu1  ;;  %v2436_v40 = vadd.f32 %v3940_v46, %v2403_v60 }
 0x82a   :  { %v2422_v23 = vadd.f32 %v2363_v18, %v2160_v61  ;;  %v2729_v24 = vmul.f32 -1.442695, %v2421_v50 }
 0x82b   :  { %3221 = vpow2.f32 %v2727_v9  ;;  %v2728_v14 = vmul.f32 -1.442695, %v2408_v12 }
 0x82c   :  { %v2730_v1 = vmul.f32 -1.442695, %v2422_v23 }
 0x82d   :  { %3223 = vpow2.f32 %v2728_v14 }
 0x82e   :  { %3225 = vpow2.f32 %v2729_v24 }
 0x82f   :  { %3227 = vpow2.f32 %v2730_v1 }
 0x835   :  { %v3222_v25 = vpop.eup %3221 }
 0x836   :  { %v2415_v26 = vadd.f32 1.0, %v3222_v25 }
 0x837   :  { %v3224_v27 = vpop.eup %3223 }
 0x838   :  { %3229 = vrcp.f32 %v2415_v26  ;;  %v2416_v28 = vadd.f32 1.0, %v3224_v27  ;;  %v3226_v29 = vpop.eup %3225 }
 0x839   :  { %v3228_v30 = vpop.eup %3227  ;;  %v2429_v3 = vadd.f32 1.0, %v3226_v29 }
 0x83a   :  { %3231 = vrcp.f32 %v2416_v28  ;;  %v2430_v36 = vadd.f32 1.0, %v3228_v30 }
 0x83b   :  { %3233 = vrcp.f32 %v2429_v3 }
 0x83c   :  { %3235 = vrcp.f32 %v2430_v36 }
 0x842   :  { %v3230_v37 = vpop.eup %3229 }
 0x843   :  { %v2437_v38 = vmul.f32 %v3230_v37, %v2435_v35 }
 0x844   :  { %v3232_v43 = vpop.eup %3231 }
 0x845   :  { %v2439_v44 = vadd.f32 %v2437_v38, %v2158_v34  ;;  %v2438_v45 = vmul.f32 %v3232_v43, %v2436_v40  ;;  %v3234_v47 = vpop.eup %3233 }
 0x846   :  { %v3236_v48 = vpop.eup %3235  ;;  %v2443_v49 = vsub.f32 1.0, %v3234_v47  ;;  %v2447_v51 = vmul.f32 %v3234_v47, %v4022_v19 }
 0x847   :  { %3237 = vtanh.f32 %v2439_v44  ;;  %v2440_v0 = vadd.f32 %v2438_v45, %v2161_v39  ;;  %v2444_v52 = vsub.f32 1.0, %v3236_v48  ;;  %v2448_v46 = vmul.f32 %v3236_v48, %v4024_v62 }
 0x849   :  { %3239 = vtanh.f32 %v2440_v0 }
 0x851   :  { %v3238_v32 = vpop.eup %3237 }
 0x852   :  { %v2445_v33 = vmul.f32 %v3238_v32, %v2443_v49 }
 0x853   :  { %v3240_v59 = vpop.eup %3239 }
 0x854   :  { %v2449_v53 = vadd.f32 %v2447_v51, %v2445_v33  ;;  %v2446_v54 = vmul.f32 %v3240_v59, %v2444_v52 }
 0x856   :  { %2731 = vst [vmem:[%s4067_s3 + $0x70] sm:$0xff] %v2449_v53  ;;  %2456 = vst [vmem:[%s4068_s4] sm:$0xff] %v2449_v53  ;;  %v2450_v55 = vadd.f32 %v2448_v46, %v2446_v54 }
 0x858   :  { %2732 = vst [vmem:[%s4067_s3 + $0x78] sm:$0xff] %v2450_v55  ;;  %2457 = vst [vmem:[%s4068_s4 + $0x8] sm:$0xff] %v2450_v55 }

</bundles_post_ra>
